<compile_context>
chip_gen: v7x
topology: tpu7x:2x2x1
jax: 0.10.0
libtpu: 0.0.40
codegen_flags: <defaults>
</compile_context>

<pallas_src>
import functools

import jax
import jax.numpy as jnp
from jax import lax
from jax.experimental import pallas as pl
from jax.experimental.pallas import tpu as pltpu


# --------------------------- fused Pallas kernel ----------------------------

def _deform_conv_kernel(a_ref, x_ref, wp_ref, pc_ref, wc_ref, o_ref, gath_ref,
                        *, C, N, Hp, Wp):
    # a_ref  : (1, 9*C, T)   im2col patches of this HW tile (for p_conv)
    # x_ref  : (1, C, Hp, Wp) full zero-padded input image (for sampling)
    # wp_ref : (2N, 9*C)     p_conv weight, tap-major / channel-minor
    # pc_ref : (2N, T)       p_conv bias + p_0 + p_n constant for this tile
    # wc_ref : (OC, N*C)     main conv weight, point-major / channel-minor
    # o_ref  : (1, OC, T)
    # gath_ref: (N*C, T)     f32 VMEM scratch holding the sampled values
    T = pc_ref.shape[1]

    # ---- p_conv (3x3 / pad 1) as one matmul, fused with bias + p_0 + p_n ----
    p = jnp.dot(wp_ref[...], a_ref[0],
                preferred_element_type=jnp.float32) + pc_ref[...]        # (2N, T)
    px = p[:N]                                                           # (N, T)
    py = p[N:]                                                           # (N, T)

    # ---- clipped corner coords + factored bilinear weights, all (N, T) ----
    ltx = jnp.clip(jnp.floor(px), 0.0, Hp - 1.0)
    lty = jnp.clip(jnp.floor(py), 0.0, Wp - 1.0)
    rbx = jnp.clip(jnp.floor(px) + 1.0, 0.0, Hp - 1.0)
    rby = jnp.clip(jnp.floor(py) + 1.0, 0.0, Wp - 1.0)
    pxc = jnp.clip(px, 0.0, Hp - 1.0)
    pyc = jnp.clip(py, 0.0, Wp - 1.0)

    wx_lt = 1.0 + (ltx - pxc)
    wx_rb = 1.0 - (rbx - pxc)
    wy_lt = 1.0 + (lty - pyc)
    wy_rb = 1.0 - (rby - pyc)

    ix_lt = ltx.astype(jnp.int32)
    ix_rb = rbx.astype(jnp.int32)
    iy_lt = lty.astype(jnp.int32)
    iy_rb = rby.astype(jnp.int32)

    iota_h = lax.broadcasted_iota(jnp.int32, (Hp, T), 0)
    iota_w = lax.broadcasted_iota(jnp.int32, (Wp, T), 0)

    x3 = x_ref[0]                                   # (C, Hp, Wp)
    xcs = [x3[c] for c in range(C)]                 # C x (Hp, Wp)

    # ---- separable bilinear gather per sampling point ----
    for n in range(N):
        # weighted column one-hot (Wp, T) and row one-hot (Hp, T)
        Sy = (jnp.where(iota_w == iy_lt[n:n + 1], wy_lt[n:n + 1], 0.0)
              + jnp.where(iota_w == iy_rb[n:n + 1], wy_rb[n:n + 1], 0.0))
        Sx = (jnp.where(iota_h == ix_lt[n:n + 1], wx_lt[n:n + 1], 0.0)
              + jnp.where(iota_h == ix_rb[n:n + 1], wx_rb[n:n + 1], 0.0))
        for c in range(C):
            colg = jnp.dot(xcs[c], Sy, preferred_element_type=jnp.float32)  # (Hp, T)
            gath_ref[pl.ds(n * C + c, 1), :] = jnp.sum(
                colg * Sx, axis=0, keepdims=True)                           # (1, T)

    # ---- final conv: one long-K MXU matmul ----
    o_ref[0] = jnp.dot(wc_ref[...], gath_ref[...],
                       preferred_element_type=jnp.float32)                  # (OC, T)


# ------------------------------ wrapper -------------------------------------

def _pick_hw_tile(hw):
    if hw % 128 != 0:
        return hw
    for t in (512, 256, 128):
        if hw % t == 0:
            return t
    return hw


def deform_conv2d_forward(x, w_p, b_p, w_c, *, ks=3, padding=1, stride=1):
    """x:(B,C,H,W) f32; w_p:(2N,C,3,3), b_p:(2N,), w_c:(OC,C,ks,ks) -> (B,OC,H,W)."""
    B, C, H, W = x.shape
    N = ks * ks
    OC = w_c.shape[0]
    assert stride == 1
    HW = H * W

    # -- im2col patches for p_conv (3x3 / pad 1), tap-major / channel-minor --
    #    A[b, (u*3+v)*C + c, i*W + j] = xp1[b, c, i+u, j+v]
    xp1 = jnp.pad(x, ((0, 0), (0, 0), (1, 1), (1, 1)))
    taps = [xp1[:, :, u:u + H, v:v + W] for u in range(3) for v in range(3)]
    A = jnp.stack(taps, axis=1).reshape(B, 9 * C, HW)

    # p_conv weight regrouped to match A's row ordering
    wp_mat = jnp.transpose(w_p, (0, 2, 3, 1)).reshape(2 * N, 9 * C)

    # -- constant (bias + p_0 + p_n), shape (2N, HW) --
    half = (ks - 1) // 2
    rng = jnp.arange(-half, half + 1, dtype=jnp.float32)
    pnx = jnp.repeat(rng, ks)                                  # n = u*ks+v -> dx
    pny = jnp.tile(rng, ks)                                    # n = u*ks+v -> dy
    p0x = jnp.arange(1, H * stride + 1, stride, dtype=jnp.float32)
    p0y = jnp.arange(1, W * stride + 1, stride, dtype=jnp.float32)
    cx = jnp.broadcast_to(pnx[:, None, None] + p0x[None, :, None], (N, H, W))
    cy = jnp.broadcast_to(pny[:, None, None] + p0y[None, None, :], (N, H, W))
    pconst = jnp.concatenate([cx, cy], axis=0).reshape(2 * N, HW) + b_p[:, None]

    # -- zero-padded input for the deformable sampling --
    xpad = jnp.pad(x, ((0, 0), (0, 0), (padding, padding), (padding, padding)))
    Hp, Wpd = xpad.shape[2], xpad.shape[3]

    # -- main conv weight: wc_mat[o, n*C + c] = w_c[o, c, u, v], n = u*ks+v --
    wc_mat = jnp.transpose(w_c, (0, 2, 3, 1)).reshape(OC, N * C)

    # -- tiling over HW (lanes) --
    T = _pick_hw_tile(HW)
    grid = (B, HW // T)

    kernel = functools.partial(_deform_conv_kernel, C=C, N=N, Hp=Hp, Wp=Wpd)
    out = pl.pallas_call(
        kernel,
        out_shape=jax.ShapeDtypeStruct((B, OC, HW), jnp.float32),
        grid=grid,
        in_specs=[
            pl.BlockSpec((1, 9 * C, T), lambda b, t: (b, 0, t)),
            pl.BlockSpec((1, C, Hp, Wpd), lambda b, t: (b, 0, 0, 0)),
            pl.BlockSpec((2 * N, 9 * C), lambda b, t: (0, 0)),
            pl.BlockSpec((2 * N, T), lambda b, t: (0, t)),
            pl.BlockSpec((OC, N * C), lambda b, t: (0, 0)),
        ],
        out_specs=pl.BlockSpec((1, OC, T), lambda b, t: (b, 0, t)),
        scratch_shapes=[pltpu.VMEM((N * C, T), jnp.float32)],
        compiler_params=pltpu.CompilerParams(
            dimension_semantics=("parallel", "parallel"),
            vmem_limit_bytes=32 * 1024 * 1024),
    )(A, xpad, wp_mat, pconst, wc_mat)

    return out.reshape(B, OC, H, W)     # already NCHW


# --------------------- pure-JAX reference (for checking) --------------------

def reference_forward(x, w_p, b_p, w_c, *, ks=3, padding=1, stride=1):
    B, C, H, W = x.shape
    N = ks * ks
    OC = w_c.shape[0]
    offset = lax.conv_general_dilated(
        x, w_p, window_strides=(stride, stride), padding=((1, 1), (1, 1)),
        dimension_numbers=("NCHW", "OIHW", "NCHW"),
        precision=lax.Precision.HIGHEST) + b_p[None, :, None, None]
    off = jnp.transpose(offset, (0, 2, 3, 1))
    xpad = jnp.pad(x, ((0, 0), (0, 0), (padding, padding), (padding, padding)))
    Hp, Wp = xpad.shape[2], xpad.shape[3]
    half = (ks - 1) // 2
    rng = jnp.arange(-half, half + 1, dtype=jnp.float32)
    pnx = jnp.repeat(rng, ks)
    pny = jnp.tile(rng, ks)
    p0x = jnp.arange(1, H * stride + 1, stride, dtype=jnp.float32)
    p0y = jnp.arange(1, W * stride + 1, stride, dtype=jnp.float32)
    px = p0x[None, :, None, None] + pnx[None, None, None, :] + off[..., :N]
    py = p0y[None, None, :, None] + pny[None, None, None, :] + off[..., N:]
    ltx = jnp.floor(px); lty = jnp.floor(py)
    rbx = ltx + 1.0; rby = lty + 1.0
    ltx = jnp.clip(ltx, 0, Hp - 1); lty = jnp.clip(lty, 0, Wp - 1)
    rbx = jnp.clip(rbx, 0, Hp - 1); rby = jnp.clip(rby, 0, Wp - 1)
    pxc = jnp.clip(px, 0, Hp - 1); pyc = jnp.clip(py, 0, Wp - 1)
    g_lt = (1 + (ltx - pxc)) * (1 + (lty - pyc))
    g_rb = (1 - (rbx - pxc)) * (1 - (rby - pyc))
    g_lb = (1 + (ltx - pxc)) * (1 - (rby - pyc))
    g_rt = (1 - (rbx - pxc)) * (1 + (lty - pyc))
    xflat = xpad.reshape(B, C, Hp * Wp)

    def gather(ix, iy):
        idx = (ix * Wp + iy).astype(jnp.int32).reshape(B, 1, -1)
        idx = jnp.broadcast_to(idx, (B, C, H * W * N))
        return jnp.take_along_axis(xflat, idx, axis=-1).reshape(B, C, H, W, N)

    x_lt = gather(ltx, lty); x_rb = gather(rbx, rby)
    x_lb = gather(ltx, rby); x_rt = gather(rbx, lty)
    x_off = (g_lt[:, None] * x_lt + g_rb[:, None] * x_rb
             + g_lb[:, None] * x_lb + g_rt[:, None] * x_rt)
    w2 = w_c.reshape(OC, C, N)
    return jnp.einsum("bchwn,ocn->bohw", x_off, w2,
                      precision=lax.Precision.HIGHEST)


# ------------------------------- main ---------------------------------------

if __name__ == "__main__":
    key = jax.random.PRNGKey(0)
    k1, k2, k3, k4 = jax.random.split(key, 4)
    B, C, H, W = 2, 4, 16, 16
    OC, ks = 8, 3
    N = ks * ks

    x = jax.random.normal(k1, (B, C, H, W), jnp.float32)
    # p_conv params (module zero-inits the weight; small nonzero values are used
    # here so the offset / sampling path is actually exercised).
    w_p = 0.05 * jax.random.normal(k2, (2 * N, C, ks, ks), jnp.float32)
    b_p = jax.random.uniform(k3, (2 * N,), jnp.float32, -0.5, 0.5)
    # main conv (bias=None in the module -> no bias term)
    w_c = 0.1 * jax.random.normal(k4, (OC, C, ks, ks), jnp.float32)

    out = deform_conv2d_forward(x, w_p, b_p, w_c, ks=ks, padding=1, stride=1)
    out = jax.block_until_ready(out)

    ref = reference_forward(x, w_p, b_p, w_c, ks=ks, padding=1, stride=1)
    assert out.shape == (B, OC, H, W)
    assert bool(jnp.all(jnp.isfinite(out)))
    max_err = float(jnp.max(jnp.abs(out - ref)))
    assert jnp.allclose(out, ref, atol=1e-2, rtol=1e-2), f"max_err={max_err}"
    print("KERNEL_OK")
</pallas_src>

<mosaic_0001>
module attributes {stable_mosaic.version = 11 : i64} {
  func.func @_deform_conv_kernel(%arg0: i32, %arg1: i32, %arg2: memref<1x36x256xf32, #tpu.memory_space<vmem>>, %arg3: memref<1x4x18x18xf32, #tpu.memory_space<vmem>>, %arg4: memref<18x36xf32, #tpu.memory_space<vmem>>, %arg5: memref<18x256xf32, #tpu.memory_space<vmem>>, %arg6: memref<8x36xf32, #tpu.memory_space<vmem>>, %arg7: memref<1x8x256xf32, #tpu.memory_space<vmem>>, %arg8: memref<36x256xf32, #tpu.memory_space<vmem>>) attributes {dimension_semantics = [#tpu.dimension_semantics<parallel>, #tpu.dimension_semantics<parallel>], iteration_bounds = array<i64: 2, 1>, scalar_prefetch = 0 : i64, scratch_operands = 1 : i64, tpu.core_type = #tpu.core_type<tc>, window_params = [{transform_indices = @transform_0, window_bounds = array<i64: 1, 36, 256>}, {transform_indices = @transform_1, window_bounds = array<i64: 1, 4, 18, 18>}, {pipeline_mode = #tpu.pipeline_mode<synchronous>, transform_indices = @transform_2, window_bounds = array<i64: 18, 36>}, {transform_indices = @transform_3, window_bounds = array<i64: 18, 256>}, {pipeline_mode = #tpu.pipeline_mode<synchronous>, transform_indices = @transform_4, window_bounds = array<i64: 8, 36>}, {transform_indices = @transform_5, window_bounds = array<i64: 1, 8, 256>}]} {
    %c0 = arith.constant 0 : index
    %c0_0 = arith.constant 0 : index
    %0 = vector.load %arg4[%c0, %c0_0] : memref<18x36xf32, #tpu.memory_space<vmem>>, vector<18x36xf32>
    %c0_1 = arith.constant 0 : index
    %c0_2 = arith.constant 0 : index
    %c0_3 = arith.constant 0 : index
    %1 = vector.load %arg2[%c0_1, %c0_2, %c0_3] : memref<1x36x256xf32, #tpu.memory_space<vmem>>, vector<1x36x256xf32>
    %2 = vector.shape_cast %1 : vector<1x36x256xf32> to vector<36x256xf32>
    %cst = arith.constant dense<0.000000e+00> : vector<18x256xf32>
    %3 = tpu.matmul %0, %2, %cst {dimension_numbers = #tpu.dot_dimension_numbers<[1], [0], [0], [1], [0, 0, 1, 1], [], []>} : vector<18x36xf32>, vector<36x256xf32>, vector<18x256xf32> -> vector<18x256xf32>
    %c0_4 = arith.constant 0 : index
    %c0_5 = arith.constant 0 : index
    %4 = vector.load %arg5[%c0_4, %c0_5] : memref<18x256xf32, #tpu.memory_space<vmem>>, vector<18x256xf32>
    %5 = arith.addf %3, %4 : vector<18x256xf32>
    %6 = vector.extract_strided_slice %5 {offsets = [0, 0], sizes = [9, 256], strides = [1, 1]} : vector<18x256xf32> to vector<9x256xf32>
    %7 = vector.extract_strided_slice %5 {offsets = [9, 0], sizes = [9, 256], strides = [1, 1]} : vector<18x256xf32> to vector<9x256xf32>
    %8 = math.floor %6 : vector<9x256xf32>
    %cst_6 = arith.constant 0.000000e+00 : f32
    %cst_7 = arith.constant 1.700000e+01 : f32
    %9 = vector.broadcast %cst_6 : f32 to vector<9x256xf32>
    %10 = arith.maximumf %9, %8 : vector<9x256xf32>
    %11 = vector.broadcast %cst_7 : f32 to vector<9x256xf32>
    %12 = arith.minimumf %11, %10 : vector<9x256xf32>
    %13 = math.floor %7 : vector<9x256xf32>
    %cst_8 = arith.constant 0.000000e+00 : f32
    %cst_9 = arith.constant 1.700000e+01 : f32
    %14 = vector.broadcast %cst_8 : f32 to vector<9x256xf32>
    %15 = arith.maximumf %14, %13 : vector<9x256xf32>
    %16 = vector.broadcast %cst_9 : f32 to vector<9x256xf32>
    %17 = arith.minimumf %16, %15 : vector<9x256xf32>
    %18 = math.floor %6 : vector<9x256xf32>
    %cst_10 = arith.constant 1.000000e+00 : f32
    %19 = vector.broadcast %cst_10 : f32 to vector<9x256xf32>
    %20 = arith.addf %18, %19 : vector<9x256xf32>
    %cst_11 = arith.constant 0.000000e+00 : f32
    %cst_12 = arith.constant 1.700000e+01 : f32
    %21 = vector.broadcast %cst_11 : f32 to vector<9x256xf32>
    %22 = arith.maximumf %21, %20 : vector<9x256xf32>
    %23 = vector.broadcast %cst_12 : f32 to vector<9x256xf32>
    %24 = arith.minimumf %23, %22 : vector<9x256xf32>
    %25 = math.floor %7 : vector<9x256xf32>
    %cst_13 = arith.constant 1.000000e+00 : f32
    %26 = vector.broadcast %cst_13 : f32 to vector<9x256xf32>
    %27 = arith.addf %25, %26 : vector<9x256xf32>
    %cst_14 = arith.constant 0.000000e+00 : f32
    %cst_15 = arith.constant 1.700000e+01 : f32
    %28 = vector.broadcast %cst_14 : f32 to vector<9x256xf32>
    %29 = arith.maximumf %28, %27 : vector<9x256xf32>
    %30 = vector.broadcast %cst_15 : f32 to vector<9x256xf32>
    %31 = arith.minimumf %30, %29 : vector<9x256xf32>
    %cst_16 = arith.constant 0.000000e+00 : f32
    %cst_17 = arith.constant 1.700000e+01 : f32
    %32 = vector.broadcast %cst_16 : f32 to vector<9x256xf32>
    %33 = arith.maximumf %32, %6 : vector<9x256xf32>
    %34 = vector.broadcast %cst_17 : f32 to vector<9x256xf32>
    %35 = arith.minimumf %34, %33 : vector<9x256xf32>
    %cst_18 = arith.constant 0.000000e+00 : f32
    %cst_19 = arith.constant 1.700000e+01 : f32
    %36 = vector.broadcast %cst_18 : f32 to vector<9x256xf32>
    %37 = arith.maximumf %36, %7 : vector<9x256xf32>
    %38 = vector.broadcast %cst_19 : f32 to vector<9x256xf32>
    %39 = arith.minimumf %38, %37 : vector<9x256xf32>
    %40 = arith.subf %12, %35 : vector<9x256xf32>
    %cst_20 = arith.constant 1.000000e+00 : f32
    %41 = vector.broadcast %cst_20 : f32 to vector<9x256xf32>
    %42 = arith.addf %41, %40 : vector<9x256xf32>
    %43 = arith.subf %24, %35 : vector<9x256xf32>
    %cst_21 = arith.constant 1.000000e+00 : f32
    %44 = vector.broadcast %cst_21 : f32 to vector<9x256xf32>
    %45 = arith.subf %44, %43 : vector<9x256xf32>
    %46 = arith.subf %17, %39 : vector<9x256xf32>
    %cst_22 = arith.constant 1.000000e+00 : f32
    %47 = vector.broadcast %cst_22 : f32 to vector<9x256xf32>
    %48 = arith.addf %47, %46 : vector<9x256xf32>
    %49 = arith.subf %31, %39 : vector<9x256xf32>
    %cst_23 = arith.constant 1.000000e+00 : f32
    %50 = vector.broadcast %cst_23 : f32 to vector<9x256xf32>
    %51 = arith.subf %50, %49 : vector<9x256xf32>
    %52 = arith.fptosi %12 : vector<9x256xf32> to vector<9x256xi32>
    %53 = arith.fptosi %24 : vector<9x256xf32> to vector<9x256xi32>
    %54 = arith.fptosi %17 : vector<9x256xf32> to vector<9x256xi32>
    %55 = arith.fptosi %31 : vector<9x256xf32> to vector<9x256xi32>
    %56 = tpu.iota {dimensions = array<i32: 0>} : vector<18x256xi32>
    %57 = tpu.iota {dimensions = array<i32: 0>} : vector<18x256xi32>
    %c0_24 = arith.constant 0 : index
    %c0_25 = arith.constant 0 : index
    %c0_26 = arith.constant 0 : index
    %c0_27 = arith.constant 0 : index
    %58 = vector.load %arg3[%c0_24, %c0_25, %c0_26, %c0_27] : memref<1x4x18x18xf32, #tpu.memory_space<vmem>>, vector<1x4x18x18xf32>
    %59 = vector.shape_cast %58 : vector<1x4x18x18xf32> to vector<4x18x18xf32>
    %60 = vector.extract_strided_slice %59 {offsets = [0, 0, 0], sizes = [1, 18, 18], strides = [1, 1, 1]} : vector<4x18x18xf32> to vector<1x18x18xf32>
    %61 = vector.shape_cast %60 : vector<1x18x18xf32> to vector<18x18xf32>
    %62 = vector.extract_strided_slice %59 {offsets = [1, 0, 0], sizes = [1, 18, 18], strides = [1, 1, 1]} : vector<4x18x18xf32> to vector<1x18x18xf32>
    %63 = vector.shape_cast %62 : vector<1x18x18xf32> to vector<18x18xf32>
    %64 = vector.extract_strided_slice %59 {offsets = [2, 0, 0], sizes = [1, 18, 18], strides = [1, 1, 1]} : vector<4x18x18xf32> to vector<1x18x18xf32>
    %65 = vector.shape_cast %64 : vector<1x18x18xf32> to vector<18x18xf32>
    %66 = vector.extract_strided_slice %59 {offsets = [3, 0, 0], sizes = [1, 18, 18], strides = [1, 1, 1]} : vector<4x18x18xf32> to vector<1x18x18xf32>
    %67 = vector.shape_cast %66 : vector<1x18x18xf32> to vector<18x18xf32>
    %68 = vector.extract_strided_slice %54 {offsets = [0, 0], sizes = [1, 256], strides = [1, 1]} : vector<9x256xi32> to vector<1x256xi32>
    %69 = vector.broadcast %68 : vector<1x256xi32> to vector<18x256xi32>
    %70 = arith.cmpi eq, %57, %69 : vector<18x256xi32>
    %71 = vector.extract_strided_slice %48 {offsets = [0, 0], sizes = [1, 256], strides = [1, 1]} : vector<9x256xf32> to vector<1x256xf32>
    %cst_28 = arith.constant 0.000000e+00 : f32
    %72 = vector.shape_cast %71 : vector<1x256xf32> to vector<1x256xf32>
    %73 = vector.broadcast %72 : vector<1x256xf32> to vector<18x256xf32>
    %74 = vector.broadcast %cst_28 : f32 to vector<18x256xf32>
    %75 = arith.select %70, %73, %74 : vector<18x256xi1>, vector<18x256xf32>
    %76 = vector.extract_strided_slice %55 {offsets = [0, 0], sizes = [1, 256], strides = [1, 1]} : vector<9x256xi32> to vector<1x256xi32>
    %77 = vector.broadcast %76 : vector<1x256xi32> to vector<18x256xi32>
    %78 = arith.cmpi eq, %57, %77 : vector<18x256xi32>
    %79 = vector.extract_strided_slice %51 {offsets = [0, 0], sizes = [1, 256], strides = [1, 1]} : vector<9x256xf32> to vector<1x256xf32>
    %cst_29 = arith.constant 0.000000e+00 : f32
    %80 = vector.shape_cast %79 : vector<1x256xf32> to vector<1x256xf32>
    %81 = vector.broadcast %80 : vector<1x256xf32> to vector<18x256xf32>
    %82 = vector.broadcast %cst_29 : f32 to vector<18x256xf32>
    %83 = arith.select %78, %81, %82 : vector<18x256xi1>, vector<18x256xf32>
    %84 = arith.addf %75, %83 : vector<18x256xf32>
    %85 = vector.extract_strided_slice %52 {offsets = [0, 0], sizes = [1, 256], strides = [1, 1]} : vector<9x256xi32> to vector<1x256xi32>
    %86 = vector.broadcast %85 : vector<1x256xi32> to vector<18x256xi32>
    %87 = arith.cmpi eq, %56, %86 : vector<18x256xi32>
    %88 = vector.extract_strided_slice %42 {offsets = [0, 0], sizes = [1, 256], strides = [1, 1]} : vector<9x256xf32> to vector<1x256xf32>
    %cst_30 = arith.constant 0.000000e+00 : f32
    %89 = vector.shape_cast %88 : vector<1x256xf32> to vector<1x256xf32>
    %90 = vector.broadcast %89 : vector<1x256xf32> to vector<18x256xf32>
    %91 = vector.broadcast %cst_30 : f32 to vector<18x256xf32>
    %92 = arith.select %87, %90, %91 : vector<18x256xi1>, vector<18x256xf32>
    %93 = vector.extract_strided_slice %53 {offsets = [0, 0], sizes = [1, 256], strides = [1, 1]} : vector<9x256xi32> to vector<1x256xi32>
    %94 = vector.broadcast %93 : vector<1x256xi32> to vector<18x256xi32>
    %95 = arith.cmpi eq, %56, %94 : vector<18x256xi32>
    %96 = vector.extract_strided_slice %45 {offsets = [0, 0], sizes = [1, 256], strides = [1, 1]} : vector<9x256xf32> to vector<1x256xf32>
    %cst_31 = arith.constant 0.000000e+00 : f32
    %97 = vector.shape_cast %96 : vector<1x256xf32> to vector<1x256xf32>
    %98 = vector.broadcast %97 : vector<1x256xf32> to vector<18x256xf32>
    %99 = vector.broadcast %cst_31 : f32 to vector<18x256xf32>
    %100 = arith.select %95, %98, %99 : vector<18x256xi1>, vector<18x256xf32>
    %101 = arith.addf %92, %100 : vector<18x256xf32>
    %cst_32 = arith.constant dense<0.000000e+00> : vector<18x256xf32>
    %102 = tpu.matmul %61, %84, %cst_32 {dimension_numbers = #tpu.dot_dimension_numbers<[1], [0], [0], [1], [0, 0, 1, 1], [], []>} : vector<18x18xf32>, vector<18x256xf32>, vector<18x256xf32> -> vector<18x256xf32>
    %103 = arith.mulf %102, %101 : vector<18x256xf32>
    %cst_33 = arith.constant dense<0.000000e+00> : vector<256xf32>
    %104 = vector.multi_reduction <add>, %103, %cst_33 [0] : vector<18x256xf32> to vector<256xf32>
    %105 = vector.shape_cast %104 : vector<256xf32> to vector<1x256xf32>
    %c0_34 = arith.constant 0 : index
    %c0_35 = arith.constant 0 : index
    %106 = vector.load %arg8[%c0_34, %c0_35] : memref<36x256xf32, #tpu.memory_space<vmem>>, vector<1x256xf32>
    tpu.vector_store %arg8[%c0_34, %c0_35], %105 {strides = array<i32>} : memref<36x256xf32, #tpu.memory_space<vmem>>, vector<1x256xf32>,
    %cst_36 = arith.constant dense<0.000000e+00> : vector<18x256xf32>
    %107 = tpu.matmul %63, %84, %cst_36 {dimension_numbers = #tpu.dot_dimension_numbers<[1], [0], [0], [1], [0, 0, 1, 1], [], []>} : vector<18x18xf32>, vector<18x256xf32>, vector<18x256xf32> -> vector<18x256xf32>
    %108 = arith.mulf %107, %101 : vector<18x256xf32>
    %cst_37 = arith.constant dense<0.000000e+00> : vector<256xf32>
    %109 = vector.multi_reduction <add>, %108, %cst_37 [0] : vector<18x256xf32> to vector<256xf32>
    %110 = vector.shape_cast %109 : vector<256xf32> to vector<1x256xf32>
    %c1 = arith.constant 1 : index
    %c0_38 = arith.constant 0 : index
    %111 = vector.load %arg8[%c1, %c0_38] : memref<36x256xf32, #tpu.memory_space<vmem>>, vector<1x256xf32>
    tpu.vector_store %arg8[%c1, %c0_38], %110 {strides = array<i32>} : memref<36x256xf32, #tpu.memory_space<vmem>>, vector<1x256xf32>,
    %cst_39 = arith.constant dense<0.000000e+00> : vector<18x256xf32>
    %112 = tpu.matmul %65, %84, %cst_39 {dimension_numbers = #tpu.dot_dimension_numbers<[1], [0], [0], [1], [0, 0, 1, 1], [], []>} : vector<18x18xf32>, vector<18x256xf32>, vector<18x256xf32> -> vector<18x256xf32>
    %113 = arith.mulf %112, %101 : vector<18x256xf32>
    %cst_40 = arith.constant dense<0.000000e+00> : vector<256xf32>
    %114 = vector.multi_reduction <add>, %113, %cst_40 [0] : vector<18x256xf32> to vector<256xf32>
    %115 = vector.shape_cast %114 : vector<256xf32> to vector<1x256xf32>
    %c2 = arith.constant 2 : index
    %c0_41 = arith.constant 0 : index
    %116 = vector.load %arg8[%c2, %c0_41] : memref<36x256xf32, #tpu.memory_space<vmem>>, vector<1x256xf32>
    tpu.vector_store %arg8[%c2, %c0_41], %115 {strides = array<i32>} : memref<36x256xf32, #tpu.memory_space<vmem>>, vector<1x256xf32>,
    %cst_42 = arith.constant dense<0.000000e+00> : vector<18x256xf32>
    %117 = tpu.matmul %67, %84, %cst_42 {dimension_numbers = #tpu.dot_dimension_numbers<[1], [0], [0], [1], [0, 0, 1, 1], [], []>} : vector<18x18xf32>, vector<18x256xf32>, vector<18x256xf32> -> vector<18x256xf32>
    %118 = arith.mulf %117, %101 : vector<18x256xf32>
    %cst_43 = arith.constant dense<0.000000e+00> : vector<256xf32>
    %119 = vector.multi_reduction <add>, %118, %cst_43 [0] : vector<18x256xf32> to vector<256xf32>
    %120 = vector.shape_cast %119 : vector<256xf32> to vector<1x256xf32>
    %c3 = arith.constant 3 : index
    %c0_44 = arith.constant 0 : index
    %121 = vector.load %arg8[%c3, %c0_44] : memref<36x256xf32, #tpu.memory_space<vmem>>, vector<1x256xf32>
    tpu.vector_store %arg8[%c3, %c0_44], %120 {strides = array<i32>} : memref<36x256xf32, #tpu.memory_space<vmem>>, vector<1x256xf32>,
    %122 = vector.extract_strided_slice %54 {offsets = [1, 0], sizes = [1, 256], strides = [1, 1]} : vector<9x256xi32> to vector<1x256xi32>
    %123 = vector.broadcast %122 : vector<1x256xi32> to vector<18x256xi32>
    %124 = arith.cmpi eq, %57, %123 : vector<18x256xi32>
    %125 = vector.extract_strided_slice %48 {offsets = [1, 0], sizes = [1, 256], strides = [1, 1]} : vector<9x256xf32> to vector<1x256xf32>
    %cst_45 = arith.constant 0.000000e+00 : f32
    %126 = vector.shape_cast %125 : vector<1x256xf32> to vector<1x256xf32>
    %127 = vector.broadcast %126 : vector<1x256xf32> to vector<18x256xf32>
    %128 = vector.broadcast %cst_45 : f32 to vector<18x256xf32>
    %129 = arith.select %124, %127, %128 : vector<18x256xi1>, vector<18x256xf32>
    %130 = vector.extract_strided_slice %55 {offsets = [1, 0], sizes = [1, 256], strides = [1, 1]} : vector<9x256xi32> to vector<1x256xi32>
    %131 = vector.broadcast %130 : vector<1x256xi32> to vector<18x256xi32>
    %132 = arith.cmpi eq, %57, %131 : vector<18x256xi32>
    %133 = vector.extract_strided_slice %51 {offsets = [1, 0], sizes = [1, 256], strides = [1, 1]} : vector<9x256xf32> to vector<1x256xf32>
    %cst_46 = arith.constant 0.000000e+00 : f32
    %134 = vector.shape_cast %133 : vector<1x256xf32> to vector<1x256xf32>
    %135 = vector.broadcast %134 : vector<1x256xf32> to vector<18x256xf32>
    %136 = vector.broadcast %cst_46 : f32 to vector<18x256xf32>
    %137 = arith.select %132, %135, %136 : vector<18x256xi1>, vector<18x256xf32>
    %138 = arith.addf %129, %137 : vector<18x256xf32>
    %139 = vector.extract_strided_slice %52 {offsets = [1, 0], sizes = [1, 256], strides = [1, 1]} : vector<9x256xi32> to vector<1x256xi32>
    %140 = vector.broadcast %139 : vector<1x256xi32> to vector<18x256xi32>
    %141 = arith.cmpi eq, %56, %140 : vector<18x256xi32>
    %142 = vector.extract_strided_slice %42 {offsets = [1, 0], sizes = [1, 256], strides = [1, 1]} : vector<9x256xf32> to vector<1x256xf32>
    %cst_47 = arith.constant 0.000000e+00 : f32
    %143 = vector.shape_cast %142 : vector<1x256xf32> to vector<1x256xf32>
    %144 = vector.broadcast %143 : vector<1x256xf32> to vector<18x256xf32>
    %145 = vector.broadcast %cst_47 : f32 to vector<18x256xf32>
    %146 = arith.select %141, %144, %145 : vector<18x256xi1>, vector<18x256xf32>
    %147 = vector.extract_strided_slice %53 {offsets = [1, 0], sizes = [1, 256], strides = [1, 1]} : vector<9x256xi32> to vector<1x256xi32>
    %148 = vector.broadcast %147 : vector<1x256xi32> to vector<18x256xi32>
    %149 = arith.cmpi eq, %56, %148 : vector<18x256xi32>
    %150 = vector.extract_strided_slice %45 {offsets = [1, 0], sizes = [1, 256], strides = [1, 1]} : vector<9x256xf32> to vector<1x256xf32>
    %cst_48 = arith.constant 0.000000e+00 : f32
    %151 = vector.shape_cast %150 : vector<1x256xf32> to vector<1x256xf32>
    %152 = vector.broadcast %151 : vector<1x256xf32> to vector<18x256xf32>
    %153 = vector.broadcast %cst_48 : f32 to vector<18x256xf32>
    %154 = arith.select %149, %152, %153 : vector<18x256xi1>, vector<18x256xf32>
    %155 = arith.addf %146, %154 : vector<18x256xf32>
    %cst_49 = arith.constant dense<0.000000e+00> : vector<18x256xf32>
    %156 = tpu.matmul %61, %138, %cst_49 {dimension_numbers = #tpu.dot_dimension_numbers<[1], [0], [0], [1], [0, 0, 1, 1], [], []>} : vector<18x18xf32>, vector<18x256xf32>, vector<18x256xf32> -> vector<18x256xf32>
    %157 = arith.mulf %156, %155 : vector<18x256xf32>
    %cst_50 = arith.constant dense<0.000000e+00> : vector<256xf32>
    %158 = vector.multi_reduction <add>, %157, %cst_50 [0] : vector<18x256xf32> to vector<256xf32>
    %159 = vector.shape_cast %158 : vector<256xf32> to vector<1x256xf32>
    %c4 = arith.constant 4 : index
    %c0_51 = arith.constant 0 : index
    %160 = vector.load %arg8[%c4, %c0_51] : memref<36x256xf32, #tpu.memory_space<vmem>>, vector<1x256xf32>
    tpu.vector_store %arg8[%c4, %c0_51], %159 {strides = array<i32>} : memref<36x256xf32, #tpu.memory_space<vmem>>, vector<1x256xf32>,
    %cst_52 = arith.constant dense<0.000000e+00> : vector<18x256xf32>
    %161 = tpu.matmul %63, %138, %cst_52 {dimension_numbers = #tpu.dot_dimension_numbers<[1], [0], [0], [1], [0, 0, 1, 1], [], []>} : vector<18x18xf32>, vector<18x256xf32>, vector<18x256xf32> -> vector<18x256xf32>
    %162 = arith.mulf %161, %155 : vector<18x256xf32>
    %cst_53 = arith.constant dense<0.000000e+00> : vector<256xf32>
    %163 = vector.multi_reduction <add>, %162, %cst_53 [0] : vector<18x256xf32> to vector<256xf32>
    %164 = vector.shape_cast %163 : vector<256xf32> to vector<1x256xf32>
    %c5 = arith.constant 5 : index
    %c0_54 = arith.constant 0 : index
    %165 = vector.load %arg8[%c5, %c0_54] : memref<36x256xf32, #tpu.memory_space<vmem>>, vector<1x256xf32>
    tpu.vector_store %arg8[%c5, %c0_54], %164 {strides = array<i32>} : memref<36x256xf32, #tpu.memory_space<vmem>>, vector<1x256xf32>,
    %cst_55 = arith.constant dense<0.000000e+00> : vector<18x256xf32>
    %166 = tpu.matmul %65, %138, %cst_55 {dimension_numbers = #tpu.dot_dimension_numbers<[1], [0], [0], [1], [0, 0, 1, 1], [], []>} : vector<18x18xf32>, vector<18x256xf32>, vector<18x256xf32> -> vector<18x256xf32>
    %167 = arith.mulf %166, %155 : vector<18x256xf32>
    %cst_56 = arith.constant dense<0.000000e+00> : vector<256xf32>
    %168 = vector.multi_reduction <add>, %167, %cst_56 [0] : vector<18x256xf32> to vector<256xf32>
    %169 = vector.shape_cast %168 : vector<256xf32> to vector<1x256xf32>
    %c6 = arith.constant 6 : index
    %c0_57 = arith.constant 0 : index
    %170 = vector.load %arg8[%c6, %c0_57] : memref<36x256xf32, #tpu.memory_space<vmem>>, vector<1x256xf32>
    tpu.vector_store %arg8[%c6, %c0_57], %169 {strides = array<i32>} : memref<36x256xf32, #tpu.memory_space<vmem>>, vector<1x256xf32>,
    %cst_58 = arith.constant dense<0.000000e+00> : vector<18x256xf32>
    %171 = tpu.matmul %67, %138, %cst_58 {dimension_numbers = #tpu.dot_dimension_numbers<[1], [0], [0], [1], [0, 0, 1, 1], [], []>} : vector<18x18xf32>, vector<18x256xf32>, vector<18x256xf32> -> vector<18x256xf32>
    %172 = arith.mulf %171, %155 : vector<18x256xf32>
    %cst_59 = arith.constant dense<0.000000e+00> : vector<256xf32>
    %173 = vector.multi_reduction <add>, %172, %cst_59 [0] : vector<18x256xf32> to vector<256xf32>
    %174 = vector.shape_cast %173 : vector<256xf32> to vector<1x256xf32>
    %c7 = arith.constant 7 : index
    %c0_60 = arith.constant 0 : index
    %175 = vector.load %arg8[%c7, %c0_60] : memref<36x256xf32, #tpu.memory_space<vmem>>, vector<1x256xf32>
    tpu.vector_store %arg8[%c7, %c0_60], %174 {strides = array<i32>} : memref<36x256xf32, #tpu.memory_space<vmem>>, vector<1x256xf32>,
    %176 = vector.extract_strided_slice %54 {offsets = [2, 0], sizes = [1, 256], strides = [1, 1]} : vector<9x256xi32> to vector<1x256xi32>
    %177 = vector.broadcast %176 : vector<1x256xi32> to vector<18x256xi32>
    %178 = arith.cmpi eq, %57, %177 : vector<18x256xi32>
    %179 = vector.extract_strided_slice %48 {offsets = [2, 0], sizes = [1, 256], strides = [1, 1]} : vector<9x256xf32> to vector<1x256xf32>
    %cst_61 = arith.constant 0.000000e+00 : f32
    %180 = vector.shape_cast %179 : vector<1x256xf32> to vector<1x256xf32>
    %181 = vector.broadcast %180 : vector<1x256xf32> to vector<18x256xf32>
    %182 = vector.broadcast %cst_61 : f32 to vector<18x256xf32>
    %183 = arith.select %178, %181, %182 : vector<18x256xi1>, vector<18x256xf32>
    %184 = vector.extract_strided_slice %55 {offsets = [2, 0], sizes = [1, 256], strides = [1, 1]} : vector<9x256xi32> to vector<1x256xi32>
    %185 = vector.broadcast %184 : vector<1x256xi32> to vector<18x256xi32>
    %186 = arith.cmpi eq, %57, %185 : vector<18x256xi32>
    %187 = vector.extract_strided_slice %51 {offsets = [2, 0], sizes = [1, 256], strides = [1, 1]} : vector<9x256xf32> to vector<1x256xf32>
    %cst_62 = arith.constant 0.000000e+00 : f32
    %188 = vector.shape_cast %187 : vector<1x256xf32> to vector<1x256xf32>
    %189 = vector.broadcast %188 : vector<1x256xf32> to vector<18x256xf32>
    %190 = vector.broadcast %cst_62 : f32 to vector<18x256xf32>
    %191 = arith.select %186, %189, %190 : vector<18x256xi1>, vector<18x256xf32>
    %192 = arith.addf %183, %191 : vector<18x256xf32>
    %193 = vector.extract_strided_slice %52 {offsets = [2, 0], sizes = [1, 256], strides = [1, 1]} : vector<9x256xi32> to vector<1x256xi32>
    %194 = vector.broadcast %193 : vector<1x256xi32> to vector<18x256xi32>
    %195 = arith.cmpi eq, %56, %194 : vector<18x256xi32>
    %196 = vector.extract_strided_slice %42 {offsets = [2, 0], sizes = [1, 256], strides = [1, 1]} : vector<9x256xf32> to vector<1x256xf32>
    %cst_63 = arith.constant 0.000000e+00 : f32
    %197 = vector.shape_cast %196 : vector<1x256xf32> to vector<1x256xf32>
    %198 = vector.broadcast %197 : vector<1x256xf32> to vector<18x256xf32>
    %199 = vector.broadcast %cst_63 : f32 to vector<18x256xf32>
    %200 = arith.select %195, %198, %199 : vector<18x256xi1>, vector<18x256xf32>
    %201 = vector.extract_strided_slice %53 {offsets = [2, 0], sizes = [1, 256], strides = [1, 1]} : vector<9x256xi32> to vector<1x256xi32>
    %202 = vector.broadcast %201 : vector<1x256xi32> to vector<18x256xi32>
    %203 = arith.cmpi eq, %56, %202 : vector<18x256xi32>
    %204 = vector.extract_strided_slice %45 {offsets = [2, 0], sizes = [1, 256], strides = [1, 1]} : vector<9x256xf32> to vector<1x256xf32>
    %cst_64 = arith.constant 0.000000e+00 : f32
    %205 = vector.shape_cast %204 : vector<1x256xf32> to vector<1x256xf32>
    %206 = vector.broadcast %205 : vector<1x256xf32> to vector<18x256xf32>
    %207 = vector.broadcast %cst_64 : f32 to vector<18x256xf32>
    %208 = arith.select %203, %206, %207 : vector<18x256xi1>, vector<18x256xf32>
    %209 = arith.addf %200, %208 : vector<18x256xf32>
    %cst_65 = arith.constant dense<0.000000e+00> : vector<18x256xf32>
    %210 = tpu.matmul %61, %192, %cst_65 {dimension_numbers = #tpu.dot_dimension_numbers<[1], [0], [0], [1], [0, 0, 1, 1], [], []>} : vector<18x18xf32>, vector<18x256xf32>, vector<18x256xf32> -> vector<18x256xf32>
    %211 = arith.mulf %210, %209 : vector<18x256xf32>
    %cst_66 = arith.constant dense<0.000000e+00> : vector<256xf32>
    %212 = vector.multi_reduction <add>, %211, %cst_66 [0] : vector<18x256xf32> to vector<256xf32>
    %213 = vector.shape_cast %212 : vector<256xf32> to vector<1x256xf32>
    %c8 = arith.constant 8 : index
    %c0_67 = arith.constant 0 : index
    %214 = vector.load %arg8[%c8, %c0_67] : memref<36x256xf32, #tpu.memory_space<vmem>>, vector<1x256xf32>
    tpu.vector_store %arg8[%c8, %c0_67], %213 {strides = array<i32>} : memref<36x256xf32, #tpu.memory_space<vmem>>, vector<1x256xf32>,
    %cst_68 = arith.constant dense<0.000000e+00> : vector<18x256xf32>
    %215 = tpu.matmul %63, %192, %cst_68 {dimension_numbers = #tpu.dot_dimension_numbers<[1], [0], [0], [1], [0, 0, 1, 1], [], []>} : vector<18x18xf32>, vector<18x256xf32>, vector<18x256xf32> -> vector<18x256xf32>
    %216 = arith.mulf %215, %209 : vector<18x256xf32>
    %cst_69 = arith.constant dense<0.000000e+00> : vector<256xf32>
    %217 = vector.multi_reduction <add>, %216, %cst_69 [0] : vector<18x256xf32> to vector<256xf32>
    %218 = vector.shape_cast %217 : vector<256xf32> to vector<1x256xf32>
    %c9 = arith.constant 9 : index
    %c0_70 = arith.constant 0 : index
    %219 = vector.load %arg8[%c9, %c0_70] : memref<36x256xf32, #tpu.memory_space<vmem>>, vector<1x256xf32>
    tpu.vector_store %arg8[%c9, %c0_70], %218 {strides = array<i32>} : memref<36x256xf32, #tpu.memory_space<vmem>>, vector<1x256xf32>,
    %cst_71 = arith.constant dense<0.000000e+00> : vector<18x256xf32>
    %220 = tpu.matmul %65, %192, %cst_71 {dimension_numbers = #tpu.dot_dimension_numbers<[1], [0], [0], [1], [0, 0, 1, 1], [], []>} : vector<18x18xf32>, vector<18x256xf32>, vector<18x256xf32> -> vector<18x256xf32>
    %221 = arith.mulf %220, %209 : vector<18x256xf32>
    %cst_72 = arith.constant dense<0.000000e+00> : vector<256xf32>
    %222 = vector.multi_reduction <add>, %221, %cst_72 [0] : vector<18x256xf32> to vector<256xf32>
    %223 = vector.shape_cast %222 : vector<256xf32> to vector<1x256xf32>
    %c10 = arith.constant 10 : index
    %c0_73 = arith.constant 0 : index
    %224 = vector.load %arg8[%c10, %c0_73] : memref<36x256xf32, #tpu.memory_space<vmem>>, vector<1x256xf32>
    tpu.vector_store %arg8[%c10, %c0_73], %223 {strides = array<i32>} : memref<36x256xf32, #tpu.memory_space<vmem>>, vector<1x256xf32>,
    %cst_74 = arith.constant dense<0.000000e+00> : vector<18x256xf32>
    %225 = tpu.matmul %67, %192, %cst_74 {dimension_numbers = #tpu.dot_dimension_numbers<[1], [0], [0], [1], [0, 0, 1, 1], [], []>} : vector<18x18xf32>, vector<18x256xf32>, vector<18x256xf32> -> vector<18x256xf32>
    %226 = arith.mulf %225, %209 : vector<18x256xf32>
    %cst_75 = arith.constant dense<0.000000e+00> : vector<256xf32>
    %227 = vector.multi_reduction <add>, %226, %cst_75 [0] : vector<18x256xf32> to vector<256xf32>
    %228 = vector.shape_cast %227 : vector<256xf32> to vector<1x256xf32>
    %c11 = arith.constant 11 : index
    %c0_76 = arith.constant 0 : index
    %229 = vector.load %arg8[%c11, %c0_76] : memref<36x256xf32, #tpu.memory_space<vmem>>, vector<1x256xf32>
    tpu.vector_store %arg8[%c11, %c0_76], %228 {strides = array<i32>} : memref<36x256xf32, #tpu.memory_space<vmem>>, vector<1x256xf32>,
    %230 = vector.extract_strided_slice %54 {offsets = [3, 0], sizes = [1, 256], strides = [1, 1]} : vector<9x256xi32> to vector<1x256xi32>
    %231 = vector.broadcast %230 : vector<1x256xi32> to vector<18x256xi32>
    %232 = arith.cmpi eq, %57, %231 : vector<18x256xi32>
    %233 = vector.extract_strided_slice %48 {offsets = [3, 0], sizes = [1, 256], strides = [1, 1]} : vector<9x256xf32> to vector<1x256xf32>
    %cst_77 = arith.constant 0.000000e+00 : f32
    %234 = vector.shape_cast %233 : vector<1x256xf32> to vector<1x256xf32>
    %235 = vector.broadcast %234 : vector<1x256xf32> to vector<18x256xf32>
    %236 = vector.broadcast %cst_77 : f32 to vector<18x256xf32>
    %237 = arith.select %232, %235, %236 : vector<18x256xi1>, vector<18x256xf32>
    %238 = vector.extract_strided_slice %55 {offsets = [3, 0], sizes = [1, 256], strides = [1, 1]} : vector<9x256xi32> to vector<1x256xi32>
    %239 = vector.broadcast %238 : vector<1x256xi32> to vector<18x256xi32>
    %240 = arith.cmpi eq, %57, %239 : vector<18x256xi32>
    %241 = vector.extract_strided_slice %51 {offsets = [3, 0], sizes = [1, 256], strides = [1, 1]} : vector<9x256xf32> to vector<1x256xf32>
    %cst_78 = arith.constant 0.000000e+00 : f32
    %242 = vector.shape_cast %241 : vector<1x256xf32> to vector<1x256xf32>
    %243 = vector.broadcast %242 : vector<1x256xf32> to vector<18x256xf32>
    %244 = vector.broadcast %cst_78 : f32 to vector<18x256xf32>
    %245 = arith.select %240, %243, %244 : vector<18x256xi1>, vector<18x256xf32>
    %246 = arith.addf %237, %245 : vector<18x256xf32>
    %247 = vector.extract_strided_slice %52 {offsets = [3, 0], sizes = [1, 256], strides = [1, 1]} : vector<9x256xi32> to vector<1x256xi32>
    %248 = vector.broadcast %247 : vector<1x256xi32> to vector<18x256xi32>
    %249 = arith.cmpi eq, %56, %248 : vector<18x256xi32>
    %250 = vector.extract_strided_slice %42 {offsets = [3, 0], sizes = [1, 256], strides = [1, 1]} : vector<9x256xf32> to vector<1x256xf32>
    %cst_79 = arith.constant 0.000000e+00 : f32
    %251 = vector.shape_cast %250 : vector<1x256xf32> to vector<1x256xf32>
    %252 = vector.broadcast %251 : vector<1x256xf32> to vector<18x256xf32>
    %253 = vector.broadcast %cst_79 : f32 to vector<18x256xf32>
    %254 = arith.select %249, %252, %253 : vector<18x256xi1>, vector<18x256xf32>
    %255 = vector.extract_strided_slice %53 {offsets = [3, 0], sizes = [1, 256], strides = [1, 1]} : vector<9x256xi32> to vector<1x256xi32>
    %256 = vector.broadcast %255 : vector<1x256xi32> to vector<18x256xi32>
    %257 = arith.cmpi eq, %56, %256 : vector<18x256xi32>
    %258 = vector.extract_strided_slice %45 {offsets = [3, 0], sizes = [1, 256], strides = [1, 1]} : vector<9x256xf32> to vector<1x256xf32>
    %cst_80 = arith.constant 0.000000e+00 : f32
    %259 = vector.shape_cast %258 : vector<1x256xf32> to vector<1x256xf32>
    %260 = vector.broadcast %259 : vector<1x256xf32> to vector<18x256xf32>
    %261 = vector.broadcast %cst_80 : f32 to vector<18x256xf32>
    %262 = arith.select %257, %260, %261 : vector<18x256xi1>, vector<18x256xf32>
    %263 = arith.addf %254, %262 : vector<18x256xf32>
    %cst_81 = arith.constant dense<0.000000e+00> : vector<18x256xf32>
    %264 = tpu.matmul %61, %246, %cst_81 {dimension_numbers = #tpu.dot_dimension_numbers<[1], [0], [0], [1], [0, 0, 1, 1], [], []>} : vector<18x18xf32>, vector<18x256xf32>, vector<18x256xf32> -> vector<18x256xf32>
    %265 = arith.mulf %264, %263 : vector<18x256xf32>
    %cst_82 = arith.constant dense<0.000000e+00> : vector<256xf32>
    %266 = vector.multi_reduction <add>, %265, %cst_82 [0] : vector<18x256xf32> to vector<256xf32>
    %267 = vector.shape_cast %266 : vector<256xf32> to vector<1x256xf32>
    %c12 = arith.constant 12 : index
    %c0_83 = arith.constant 0 : index
    %268 = vector.load %arg8[%c12, %c0_83] : memref<36x256xf32, #tpu.memory_space<vmem>>, vector<1x256xf32>
    tpu.vector_store %arg8[%c12, %c0_83], %267 {strides = array<i32>} : memref<36x256xf32, #tpu.memory_space<vmem>>, vector<1x256xf32>,
    %cst_84 = arith.constant dense<0.000000e+00> : vector<18x256xf32>
    %269 = tpu.matmul %63, %246, %cst_84 {dimension_numbers = #tpu.dot_dimension_numbers<[1], [0], [0], [1], [0, 0, 1, 1], [], []>} : vector<18x18xf32>, vector<18x256xf32>, vector<18x256xf32> -> vector<18x256xf32>
    %270 = arith.mulf %269, %263 : vector<18x256xf32>
    %cst_85 = arith.constant dense<0.000000e+00> : vector<256xf32>
    %271 = vector.multi_reduction <add>, %270, %cst_85 [0] : vector<18x256xf32> to vector<256xf32>
    %272 = vector.shape_cast %271 : vector<256xf32> to vector<1x256xf32>
    %c13 = arith.constant 13 : index
    %c0_86 = arith.constant 0 : index
    %273 = vector.load %arg8[%c13, %c0_86] : memref<36x256xf32, #tpu.memory_space<vmem>>, vector<1x256xf32>
    tpu.vector_store %arg8[%c13, %c0_86], %272 {strides = array<i32>} : memref<36x256xf32, #tpu.memory_space<vmem>>, vector<1x256xf32>,
    %cst_87 = arith.constant dense<0.000000e+00> : vector<18x256xf32>
    %274 = tpu.matmul %65, %246, %cst_87 {dimension_numbers = #tpu.dot_dimension_numbers<[1], [0], [0], [1], [0, 0, 1, 1], [], []>} : vector<18x18xf32>, vector<18x256xf32>, vector<18x256xf32> -> vector<18x256xf32>
    %275 = arith.mulf %274, %263 : vector<18x256xf32>
    %cst_88 = arith.constant dense<0.000000e+00> : vector<256xf32>
    %276 = vector.multi_reduction <add>, %275, %cst_88 [0] : vector<18x256xf32> to vector<256xf32>
    %277 = vector.shape_cast %276 : vector<256xf32> to vector<1x256xf32>
    %c14 = arith.constant 14 : index
    %c0_89 = arith.constant 0 : index
    %278 = vector.load %arg8[%c14, %c0_89] : memref<36x256xf32, #tpu.memory_space<vmem>>, vector<1x256xf32>
    tpu.vector_store %arg8[%c14, %c0_89], %277 {strides = array<i32>} : memref<36x256xf32, #tpu.memory_space<vmem>>, vector<1x256xf32>,
    %cst_90 = arith.constant dense<0.000000e+00> : vector<18x256xf32>
    %279 = tpu.matmul %67, %246, %cst_90 {dimension_numbers = #tpu.dot_dimension_numbers<[1], [0], [0], [1], [0, 0, 1, 1], [], []>} : vector<18x18xf32>, vector<18x256xf32>, vector<18x256xf32> -> vector<18x256xf32>
    %280 = arith.mulf %279, %263 : vector<18x256xf32>
    %cst_91 = arith.constant dense<0.000000e+00> : vector<256xf32>
    %281 = vector.multi_reduction <add>, %280, %cst_91 [0] : vector<18x256xf32> to vector<256xf32>
    %282 = vector.shape_cast %281 : vector<256xf32> to vector<1x256xf32>
    %c15 = arith.constant 15 : index
    %c0_92 = arith.constant 0 : index
    %283 = vector.load %arg8[%c15, %c0_92] : memref<36x256xf32, #tpu.memory_space<vmem>>, vector<1x256xf32>
    tpu.vector_store %arg8[%c15, %c0_92], %282 {strides = array<i32>} : memref<36x256xf32, #tpu.memory_space<vmem>>, vector<1x256xf32>,
    %284 = vector.extract_strided_slice %54 {offsets = [4, 0], sizes = [1, 256], strides = [1, 1]} : vector<9x256xi32> to vector<1x256xi32>
    %285 = vector.broadcast %284 : vector<1x256xi32> to vector<18x256xi32>
    %286 = arith.cmpi eq, %57, %285 : vector<18x256xi32>
    %287 = vector.extract_strided_slice %48 {offsets = [4, 0], sizes = [1, 256], strides = [1, 1]} : vector<9x256xf32> to vector<1x256xf32>
    %cst_93 = arith.constant 0.000000e+00 : f32
    %288 = vector.shape_cast %287 : vector<1x256xf32> to vector<1x256xf32>
    %289 = vector.broadcast %288 : vector<1x256xf32> to vector<18x256xf32>
    %290 = vector.broadcast %cst_93 : f32 to vector<18x256xf32>
    %291 = arith.select %286, %289, %290 : vector<18x256xi1>, vector<18x256xf32>
    %292 = vector.extract_strided_slice %55 {offsets = [4, 0], sizes = [1, 256], strides = [1, 1]} : vector<9x256xi32> to vector<1x256xi32>
    %293 = vector.broadcast %292 : vector<1x256xi32> to vector<18x256xi32>
    %294 = arith.cmpi eq, %57, %293 : vector<18x256xi32>
    %295 = vector.extract_strided_slice %51 {offsets = [4, 0], sizes = [1, 256], strides = [1, 1]} : vector<9x256xf32> to vector<1x256xf32>
    %cst_94 = arith.constant 0.000000e+00 : f32
    %296 = vector.shape_cast %295 : vector<1x256xf32> to vector<1x256xf32>
    %297 = vector.broadcast %296 : vector<1x256xf32> to vector<18x256xf32>
    %298 = vector.broadcast %cst_94 : f32 to vector<18x256xf32>
    %299 = arith.select %294, %297, %298 : vector<18x256xi1>, vector<18x256xf32>
    %300 = arith.addf %291, %299 : vector<18x256xf32>
    %301 = vector.extract_strided_slice %52 {offsets = [4, 0], sizes = [1, 256], strides = [1, 1]} : vector<9x256xi32> to vector<1x256xi32>
    %302 = vector.broadcast %301 : vector<1x256xi32> to vector<18x256xi32>
    %303 = arith.cmpi eq, %56, %302 : vector<18x256xi32>
    %304 = vector.extract_strided_slice %42 {offsets = [4, 0], sizes = [1, 256], strides = [1, 1]} : vector<9x256xf32> to vector<1x256xf32>
    %cst_95 = arith.constant 0.000000e+00 : f32
    %305 = vector.shape_cast %304 : vector<1x256xf32> to vector<1x256xf32>
    %306 = vector.broadcast %305 : vector<1x256xf32> to vector<18x256xf32>
    %307 = vector.broadcast %cst_95 : f32 to vector<18x256xf32>
    %308 = arith.select %303, %306, %307 : vector<18x256xi1>, vector<18x256xf32>
    %309 = vector.extract_strided_slice %53 {offsets = [4, 0], sizes = [1, 256], strides = [1, 1]} : vector<9x256xi32> to vector<1x256xi32>
    %310 = vector.broadcast %309 : vector<1x256xi32> to vector<18x256xi32>
    %311 = arith.cmpi eq, %56, %310 : vector<18x256xi32>
    %312 = vector.extract_strided_slice %45 {offsets = [4, 0], sizes = [1, 256], strides = [1, 1]} : vector<9x256xf32> to vector<1x256xf32>
    %cst_96 = arith.constant 0.000000e+00 : f32
    %313 = vector.shape_cast %312 : vector<1x256xf32> to vector<1x256xf32>
    %314 = vector.broadcast %313 : vector<1x256xf32> to vector<18x256xf32>
    %315 = vector.broadcast %cst_96 : f32 to vector<18x256xf32>
    %316 = arith.select %311, %314, %315 : vector<18x256xi1>, vector<18x256xf32>
    %317 = arith.addf %308, %316 : vector<18x256xf32>
    %cst_97 = arith.constant dense<0.000000e+00> : vector<18x256xf32>
    %318 = tpu.matmul %61, %300, %cst_97 {dimension_numbers = #tpu.dot_dimension_numbers<[1], [0], [0], [1], [0, 0, 1, 1], [], []>} : vector<18x18xf32>, vector<18x256xf32>, vector<18x256xf32> -> vector<18x256xf32>
    %319 = arith.mulf %318, %317 : vector<18x256xf32>
    %cst_98 = arith.constant dense<0.000000e+00> : vector<256xf32>
    %320 = vector.multi_reduction <add>, %319, %cst_98 [0] : vector<18x256xf32> to vector<256xf32>
    %321 = vector.shape_cast %320 : vector<256xf32> to vector<1x256xf32>
    %c16 = arith.constant 16 : index
    %c0_99 = arith.constant 0 : index
    %322 = vector.load %arg8[%c16, %c0_99] : memref<36x256xf32, #tpu.memory_space<vmem>>, vector<1x256xf32>
    tpu.vector_store %arg8[%c16, %c0_99], %321 {strides = array<i32>} : memref<36x256xf32, #tpu.memory_space<vmem>>, vector<1x256xf32>,
    %cst_100 = arith.constant dense<0.000000e+00> : vector<18x256xf32>
    %323 = tpu.matmul %63, %300, %cst_100 {dimension_numbers = #tpu.dot_dimension_numbers<[1], [0], [0], [1], [0, 0, 1, 1], [], []>} : vector<18x18xf32>, vector<18x256xf32>, vector<18x256xf32> -> vector<18x256xf32>
    %324 = arith.mulf %323, %317 : vector<18x256xf32>
    %cst_101 = arith.constant dense<0.000000e+00> : vector<256xf32>
    %325 = vector.multi_reduction <add>, %324, %cst_101 [0] : vector<18x256xf32> to vector<256xf32>
    %326 = vector.shape_cast %325 : vector<256xf32> to vector<1x256xf32>
    %c17 = arith.constant 17 : index
    %c0_102 = arith.constant 0 : index
    %327 = vector.load %arg8[%c17, %c0_102] : memref<36x256xf32, #tpu.memory_space<vmem>>, vector<1x256xf32>
    tpu.vector_store %arg8[%c17, %c0_102], %326 {strides = array<i32>} : memref<36x256xf32, #tpu.memory_space<vmem>>, vector<1x256xf32>,
    %cst_103 = arith.constant dense<0.000000e+00> : vector<18x256xf32>
    %328 = tpu.matmul %65, %300, %cst_103 {dimension_numbers = #tpu.dot_dimension_numbers<[1], [0], [0], [1], [0, 0, 1, 1], [], []>} : vector<18x18xf32>, vector<18x256xf32>, vector<18x256xf32> -> vector<18x256xf32>
    %329 = arith.mulf %328, %317 : vector<18x256xf32>
    %cst_104 = arith.constant dense<0.000000e+00> : vector<256xf32>
    %330 = vector.multi_reduction <add>, %329, %cst_104 [0] : vector<18x256xf32> to vector<256xf32>
    %331 = vector.shape_cast %330 : vector<256xf32> to vector<1x256xf32>
    %c18 = arith.constant 18 : index
    %c0_105 = arith.constant 0 : index
    %332 = vector.load %arg8[%c18, %c0_105] : memref<36x256xf32, #tpu.memory_space<vmem>>, vector<1x256xf32>
    tpu.vector_store %arg8[%c18, %c0_105], %331 {strides = array<i32>} : memref<36x256xf32, #tpu.memory_space<vmem>>, vector<1x256xf32>,
    %cst_106 = arith.constant dense<0.000000e+00> : vector<18x256xf32>
    %333 = tpu.matmul %67, %300, %cst_106 {dimension_numbers = #tpu.dot_dimension_numbers<[1], [0], [0], [1], [0, 0, 1, 1], [], []>} : vector<18x18xf32>, vector<18x256xf32>, vector<18x256xf32> -> vector<18x256xf32>
    %334 = arith.mulf %333, %317 : vector<18x256xf32>
    %cst_107 = arith.constant dense<0.000000e+00> : vector<256xf32>
    %335 = vector.multi_reduction <add>, %334, %cst_107 [0] : vector<18x256xf32> to vector<256xf32>
    %336 = vector.shape_cast %335 : vector<256xf32> to vector<1x256xf32>
    %c19 = arith.constant 19 : index
    %c0_108 = arith.constant 0 : index
    %337 = vector.load %arg8[%c19, %c0_108] : memref<36x256xf32, #tpu.memory_space<vmem>>, vector<1x256xf32>
    tpu.vector_store %arg8[%c19, %c0_108], %336 {strides = array<i32>} : memref<36x256xf32, #tpu.memory_space<vmem>>, vector<1x256xf32>,
    %338 = vector.extract_strided_slice %54 {offsets = [5, 0], sizes = [1, 256], strides = [1, 1]} : vector<9x256xi32> to vector<1x256xi32>
    %339 = vector.broadcast %338 : vector<1x256xi32> to vector<18x256xi32>
    %340 = arith.cmpi eq, %57, %339 : vector<18x256xi32>
    %341 = vector.extract_strided_slice %48 {offsets = [5, 0], sizes = [1, 256], strides = [1, 1]} : vector<9x256xf32> to vector<1x256xf32>
    %cst_109 = arith.constant 0.000000e+00 : f32
    %342 = vector.shape_cast %341 : vector<1x256xf32> to vector<1x256xf32>
    %343 = vector.broadcast %342 : vector<1x256xf32> to vector<18x256xf32>
    %344 = vector.broadcast %cst_109 : f32 to vector<18x256xf32>
    %345 = arith.select %340, %343, %344 : vector<18x256xi1>, vector<18x256xf32>
    %346 = vector.extract_strided_slice %55 {offsets = [5, 0], sizes = [1, 256], strides = [1, 1]} : vector<9x256xi32> to vector<1x256xi32>
    %347 = vector.broadcast %346 : vector<1x256xi32> to vector<18x256xi32>
    %348 = arith.cmpi eq, %57, %347 : vector<18x256xi32>
    %349 = vector.extract_strided_slice %51 {offsets = [5, 0], sizes = [1, 256], strides = [1, 1]} : vector<9x256xf32> to vector<1x256xf32>
    %cst_110 = arith.constant 0.000000e+00 : f32
    %350 = vector.shape_cast %349 : vector<1x256xf32> to vector<1x256xf32>
    %351 = vector.broadcast %350 : vector<1x256xf32> to vector<18x256xf32>
    %352 = vector.broadcast %cst_110 : f32 to vector<18x256xf32>
    %353 = arith.select %348, %351, %352 : vector<18x256xi1>, vector<18x256xf32>
    %354 = arith.addf %345, %353 : vector<18x256xf32>
    %355 = vector.extract_strided_slice %52 {offsets = [5, 0], sizes = [1, 256], strides = [1, 1]} : vector<9x256xi32> to vector<1x256xi32>
    %356 = vector.broadcast %355 : vector<1x256xi32> to vector<18x256xi32>
    %357 = arith.cmpi eq, %56, %356 : vector<18x256xi32>
    %358 = vector.extract_strided_slice %42 {offsets = [5, 0], sizes = [1, 256], strides = [1, 1]} : vector<9x256xf32> to vector<1x256xf32>
    %cst_111 = arith.constant 0.000000e+00 : f32
    %359 = vector.shape_cast %358 : vector<1x256xf32> to vector<1x256xf32>
    %360 = vector.broadcast %359 : vector<1x256xf32> to vector<18x256xf32>
    %361 = vector.broadcast %cst_111 : f32 to vector<18x256xf32>
    %362 = arith.select %357, %360, %361 : vector<18x256xi1>, vector<18x256xf32>
    %363 = vector.extract_strided_slice %53 {offsets = [5, 0], sizes = [1, 256], strides = [1, 1]} : vector<9x256xi32> to vector<1x256xi32>
    %364 = vector.broadcast %363 : vector<1x256xi32> to vector<18x256xi32>
    %365 = arith.cmpi eq, %56, %364 : vector<18x256xi32>
    %366 = vector.extract_strided_slice %45 {offsets = [5, 0], sizes = [1, 256], strides = [1, 1]} : vector<9x256xf32> to vector<1x256xf32>
    %cst_112 = arith.constant 0.000000e+00 : f32
    %367 = vector.shape_cast %366 : vector<1x256xf32> to vector<1x256xf32>
    %368 = vector.broadcast %367 : vector<1x256xf32> to vector<18x256xf32>
    %369 = vector.broadcast %cst_112 : f32 to vector<18x256xf32>
    %370 = arith.select %365, %368, %369 : vector<18x256xi1>, vector<18x256xf32>
    %371 = arith.addf %362, %370 : vector<18x256xf32>
    %cst_113 = arith.constant dense<0.000000e+00> : vector<18x256xf32>
    %372 = tpu.matmul %61, %354, %cst_113 {dimension_numbers = #tpu.dot_dimension_numbers<[1], [0], [0], [1], [0, 0, 1, 1], [], []>} : vector<18x18xf32>, vector<18x256xf32>, vector<18x256xf32> -> vector<18x256xf32>
    %373 = arith.mulf %372, %371 : vector<18x256xf32>
    %cst_114 = arith.constant dense<0.000000e+00> : vector<256xf32>
    %374 = vector.multi_reduction <add>, %373, %cst_114 [0] : vector<18x256xf32> to vector<256xf32>
    %375 = vector.shape_cast %374 : vector<256xf32> to vector<1x256xf32>
    %c20 = arith.constant 20 : index
    %c0_115 = arith.constant 0 : index
    %376 = vector.load %arg8[%c20, %c0_115] : memref<36x256xf32, #tpu.memory_space<vmem>>, vector<1x256xf32>
    tpu.vector_store %arg8[%c20, %c0_115], %375 {strides = array<i32>} : memref<36x256xf32, #tpu.memory_space<vmem>>, vector<1x256xf32>,
    %cst_116 = arith.constant dense<0.000000e+00> : vector<18x256xf32>
    %377 = tpu.matmul %63, %354, %cst_116 {dimension_numbers = #tpu.dot_dimension_numbers<[1], [0], [0], [1], [0, 0, 1, 1], [], []>} : vector<18x18xf32>, vector<18x256xf32>, vector<18x256xf32> -> vector<18x256xf32>
    %378 = arith.mulf %377, %371 : vector<18x256xf32>
    %cst_117 = arith.constant dense<0.000000e+00> : vector<256xf32>
    %379 = vector.multi_reduction <add>, %378, %cst_117 [0] : vector<18x256xf32> to vector<256xf32>
    %380 = vector.shape_cast %379 : vector<256xf32> to vector<1x256xf32>
    %c21 = arith.constant 21 : index
    %c0_118 = arith.constant 0 : index
    %381 = vector.load %arg8[%c21, %c0_118] : memref<36x256xf32, #tpu.memory_space<vmem>>, vector<1x256xf32>
    tpu.vector_store %arg8[%c21, %c0_118], %380 {strides = array<i32>} : memref<36x256xf32, #tpu.memory_space<vmem>>, vector<1x256xf32>,
    %cst_119 = arith.constant dense<0.000000e+00> : vector<18x256xf32>
    %382 = tpu.matmul %65, %354, %cst_119 {dimension_numbers = #tpu.dot_dimension_numbers<[1], [0], [0], [1], [0, 0, 1, 1], [], []>} : vector<18x18xf32>, vector<18x256xf32>, vector<18x256xf32> -> vector<18x256xf32>
    %383 = arith.mulf %382, %371 : vector<18x256xf32>
    %cst_120 = arith.constant dense<0.000000e+00> : vector<256xf32>
    %384 = vector.multi_reduction <add>, %383, %cst_120 [0] : vector<18x256xf32> to vector<256xf32>
    %385 = vector.shape_cast %384 : vector<256xf32> to vector<1x256xf32>
    %c22 = arith.constant 22 : index
    %c0_121 = arith.constant 0 : index
    %386 = vector.load %arg8[%c22, %c0_121] : memref<36x256xf32, #tpu.memory_space<vmem>>, vector<1x256xf32>
    tpu.vector_store %arg8[%c22, %c0_121], %385 {strides = array<i32>} : memref<36x256xf32, #tpu.memory_space<vmem>>, vector<1x256xf32>,
    %cst_122 = arith.constant dense<0.000000e+00> : vector<18x256xf32>
    %387 = tpu.matmul %67, %354, %cst_122 {dimension_numbers = #tpu.dot_dimension_numbers<[1], [0], [0], [1], [0, 0, 1, 1], [], []>} : vector<18x18xf32>, vector<18x256xf32>, vector<18x256xf32> -> vector<18x256xf32>
    %388 = arith.mulf %387, %371 : vector<18x256xf32>
    %cst_123 = arith.constant dense<0.000000e+00> : vector<256xf32>
    %389 = vector.multi_reduction <add>, %388, %cst_123 [0] : vector<18x256xf32> to vector<256xf32>
    %390 = vector.shape_cast %389 : vector<256xf32> to vector<1x256xf32>
    %c23 = arith.constant 23 : index
    %c0_124 = arith.constant 0 : index
    %391 = vector.load %arg8[%c23, %c0_124] : memref<36x256xf32, #tpu.memory_space<vmem>>, vector<1x256xf32>
    tpu.vector_store %arg8[%c23, %c0_124], %390 {strides = array<i32>} : memref<36x256xf32, #tpu.memory_space<vmem>>, vector<1x256xf32>,
    %392 = vector.extract_strided_slice %54 {offsets = [6, 0], sizes = [1, 256], strides = [1, 1]} : vector<9x256xi32> to vector<1x256xi32>
    %393 = vector.broadcast %392 : vector<1x256xi32> to vector<18x256xi32>
    %394 = arith.cmpi eq, %57, %393 : vector<18x256xi32>
    %395 = vector.extract_strided_slice %48 {offsets = [6, 0], sizes = [1, 256], strides = [1, 1]} : vector<9x256xf32> to vector<1x256xf32>
    %cst_125 = arith.constant 0.000000e+00 : f32
    %396 = vector.shape_cast %395 : vector<1x256xf32> to vector<1x256xf32>
    %397 = vector.broadcast %396 : vector<1x256xf32> to vector<18x256xf32>
    %398 = vector.broadcast %cst_125 : f32 to vector<18x256xf32>
    %399 = arith.select %394, %397, %398 : vector<18x256xi1>, vector<18x256xf32>
    %400 = vector.extract_strided_slice %55 {offsets = [6, 0], sizes = [1, 256], strides = [1, 1]} : vector<9x256xi32> to vector<1x256xi32>
    %401 = vector.broadcast %400 : vector<1x256xi32> to vector<18x256xi32>
    %402 = arith.cmpi eq, %57, %401 : vector<18x256xi32>
    %403 = vector.extract_strided_slice %51 {offsets = [6, 0], sizes = [1, 256], strides = [1, 1]} : vector<9x256xf32> to vector<1x256xf32>
    %cst_126 = arith.constant 0.000000e+00 : f32
    %404 = vector.shape_cast %403 : vector<1x256xf32> to vector<1x256xf32>
    %405 = vector.broadcast %404 : vector<1x256xf32> to vector<18x256xf32>
    %406 = vector.broadcast %cst_126 : f32 to vector<18x256xf32>
    %407 = arith.select %402, %405, %406 : vector<18x256xi1>, vector<18x256xf32>
    %408 = arith.addf %399, %407 : vector<18x256xf32>
    %409 = vector.extract_strided_slice %52 {offsets = [6, 0], sizes = [1, 256], strides = [1, 1]} : vector<9x256xi32> to vector<1x256xi32>
    %410 = vector.broadcast %409 : vector<1x256xi32> to vector<18x256xi32>
    %411 = arith.cmpi eq, %56, %410 : vector<18x256xi32>
    %412 = vector.extract_strided_slice %42 {offsets = [6, 0], sizes = [1, 256], strides = [1, 1]} : vector<9x256xf32> to vector<1x256xf32>
    %cst_127 = arith.constant 0.000000e+00 : f32
    %413 = vector.shape_cast %412 : vector<1x256xf32> to vector<1x256xf32>
    %414 = vector.broadcast %413 : vector<1x256xf32> to vector<18x256xf32>
    %415 = vector.broadcast %cst_127 : f32 to vector<18x256xf32>
    %416 = arith.select %411, %414, %415 : vector<18x256xi1>, vector<18x256xf32>
    %417 = vector.extract_strided_slice %53 {offsets = [6, 0], sizes = [1, 256], strides = [1, 1]} : vector<9x256xi32> to vector<1x256xi32>
    %418 = vector.broadcast %417 : vector<1x256xi32> to vector<18x256xi32>
    %419 = arith.cmpi eq, %56, %418 : vector<18x256xi32>
    %420 = vector.extract_strided_slice %45 {offsets = [6, 0], sizes = [1, 256], strides = [1, 1]} : vector<9x256xf32> to vector<1x256xf32>
    %cst_128 = arith.constant 0.000000e+00 : f32
    %421 = vector.shape_cast %420 : vector<1x256xf32> to vector<1x256xf32>
    %422 = vector.broadcast %421 : vector<1x256xf32> to vector<18x256xf32>
    %423 = vector.broadcast %cst_128 : f32 to vector<18x256xf32>
    %424 = arith.select %419, %422, %423 : vector<18x256xi1>, vector<18x256xf32>
    %425 = arith.addf %416, %424 : vector<18x256xf32>
    %cst_129 = arith.constant dense<0.000000e+00> : vector<18x256xf32>
    %426 = tpu.matmul %61, %408, %cst_129 {dimension_numbers = #tpu.dot_dimension_numbers<[1], [0], [0], [1], [0, 0, 1, 1], [], []>} : vector<18x18xf32>, vector<18x256xf32>, vector<18x256xf32> -> vector<18x256xf32>
    %427 = arith.mulf %426, %425 : vector<18x256xf32>
    %cst_130 = arith.constant dense<0.000000e+00> : vector<256xf32>
    %428 = vector.multi_reduction <add>, %427, %cst_130 [0] : vector<18x256xf32> to vector<256xf32>
    %429 = vector.shape_cast %428 : vector<256xf32> to vector<1x256xf32>
    %c24 = arith.constant 24 : index
    %c0_131 = arith.constant 0 : index
    %430 = vector.load %arg8[%c24, %c0_131] : memref<36x256xf32, #tpu.memory_space<vmem>>, vector<1x256xf32>
    tpu.vector_store %arg8[%c24, %c0_131], %429 {strides = array<i32>} : memref<36x256xf32, #tpu.memory_space<vmem>>, vector<1x256xf32>,
    %cst_132 = arith.constant dense<0.000000e+00> : vector<18x256xf32>
    %431 = tpu.matmul %63, %408, %cst_132 {dimension_numbers = #tpu.dot_dimension_numbers<[1], [0], [0], [1], [0, 0, 1, 1], [], []>} : vector<18x18xf32>, vector<18x256xf32>, vector<18x256xf32> -> vector<18x256xf32>
    %432 = arith.mulf %431, %425 : vector<18x256xf32>
    %cst_133 = arith.constant dense<0.000000e+00> : vector<256xf32>
    %433 = vector.multi_reduction <add>, %432, %cst_133 [0] : vector<18x256xf32> to vector<256xf32>
    %434 = vector.shape_cast %433 : vector<256xf32> to vector<1x256xf32>
    %c25 = arith.constant 25 : index
    %c0_134 = arith.constant 0 : index
    %435 = vector.load %arg8[%c25, %c0_134] : memref<36x256xf32, #tpu.memory_space<vmem>>, vector<1x256xf32>
    tpu.vector_store %arg8[%c25, %c0_134], %434 {strides = array<i32>} : memref<36x256xf32, #tpu.memory_space<vmem>>, vector<1x256xf32>,
    %cst_135 = arith.constant dense<0.000000e+00> : vector<18x256xf32>
    %436 = tpu.matmul %65, %408, %cst_135 {dimension_numbers = #tpu.dot_dimension_numbers<[1], [0], [0], [1], [0, 0, 1, 1], [], []>} : vector<18x18xf32>, vector<18x256xf32>, vector<18x256xf32> -> vector<18x256xf32>
    %437 = arith.mulf %436, %425 : vector<18x256xf32>
    %cst_136 = arith.constant dense<0.000000e+00> : vector<256xf32>
    %438 = vector.multi_reduction <add>, %437, %cst_136 [0] : vector<18x256xf32> to vector<256xf32>
    %439 = vector.shape_cast %438 : vector<256xf32> to vector<1x256xf32>
    %c26 = arith.constant 26 : index
    %c0_137 = arith.constant 0 : index
    %440 = vector.load %arg8[%c26, %c0_137] : memref<36x256xf32, #tpu.memory_space<vmem>>, vector<1x256xf32>
    tpu.vector_store %arg8[%c26, %c0_137], %439 {strides = array<i32>} : memref<36x256xf32, #tpu.memory_space<vmem>>, vector<1x256xf32>,
    %cst_138 = arith.constant dense<0.000000e+00> : vector<18x256xf32>
    %441 = tpu.matmul %67, %408, %cst_138 {dimension_numbers = #tpu.dot_dimension_numbers<[1], [0], [0], [1], [0, 0, 1, 1], [], []>} : vector<18x18xf32>, vector<18x256xf32>, vector<18x256xf32> -> vector<18x256xf32>
    %442 = arith.mulf %441, %425 : vector<18x256xf32>
    %cst_139 = arith.constant dense<0.000000e+00> : vector<256xf32>
    %443 = vector.multi_reduction <add>, %442, %cst_139 [0] : vector<18x256xf32> to vector<256xf32>
    %444 = vector.shape_cast %443 : vector<256xf32> to vector<1x256xf32>
    %c27 = arith.constant 27 : index
    %c0_140 = arith.constant 0 : index
    %445 = vector.load %arg8[%c27, %c0_140] : memref<36x256xf32, #tpu.memory_space<vmem>>, vector<1x256xf32>
    tpu.vector_store %arg8[%c27, %c0_140], %444 {strides = array<i32>} : memref<36x256xf32, #tpu.memory_space<vmem>>, vector<1x256xf32>,
    %446 = vector.extract_strided_slice %54 {offsets = [7, 0], sizes = [1, 256], strides = [1, 1]} : vector<9x256xi32> to vector<1x256xi32>
    %447 = vector.broadcast %446 : vector<1x256xi32> to vector<18x256xi32>
    %448 = arith.cmpi eq, %57, %447 : vector<18x256xi32>
    %449 = vector.extract_strided_slice %48 {offsets = [7, 0], sizes = [1, 256], strides = [1, 1]} : vector<9x256xf32> to vector<1x256xf32>
    %cst_141 = arith.constant 0.000000e+00 : f32
    %450 = vector.shape_cast %449 : vector<1x256xf32> to vector<1x256xf32>
    %451 = vector.broadcast %450 : vector<1x256xf32> to vector<18x256xf32>
    %452 = vector.broadcast %cst_141 : f32 to vector<18x256xf32>
    %453 = arith.select %448, %451, %452 : vector<18x256xi1>, vector<18x256xf32>
    %454 = vector.extract_strided_slice %55 {offsets = [7, 0], sizes = [1, 256], strides = [1, 1]} : vector<9x256xi32> to vector<1x256xi32>
    %455 = vector.broadcast %454 : vector<1x256xi32> to vector<18x256xi32>
    %456 = arith.cmpi eq, %57, %455 : vector<18x256xi32>
    %457 = vector.extract_strided_slice %51 {offsets = [7, 0], sizes = [1, 256], strides = [1, 1]} : vector<9x256xf32> to vector<1x256xf32>
    %cst_142 = arith.constant 0.000000e+00 : f32
    %458 = vector.shape_cast %457 : vector<1x256xf32> to vector<1x256xf32>
    %459 = vector.broadcast %458 : vector<1x256xf32> to vector<18x256xf32>
    %460 = vector.broadcast %cst_142 : f32 to vector<18x256xf32>
    %461 = arith.select %456, %459, %460 : vector<18x256xi1>, vector<18x256xf32>
    %462 = arith.addf %453, %461 : vector<18x256xf32>
    %463 = vector.extract_strided_slice %52 {offsets = [7, 0], sizes = [1, 256], strides = [1, 1]} : vector<9x256xi32> to vector<1x256xi32>
    %464 = vector.broadcast %463 : vector<1x256xi32> to vector<18x256xi32>
    %465 = arith.cmpi eq, %56, %464 : vector<18x256xi32>
    %466 = vector.extract_strided_slice %42 {offsets = [7, 0], sizes = [1, 256], strides = [1, 1]} : vector<9x256xf32> to vector<1x256xf32>
    %cst_143 = arith.constant 0.000000e+00 : f32
    %467 = vector.shape_cast %466 : vector<1x256xf32> to vector<1x256xf32>
    %468 = vector.broadcast %467 : vector<1x256xf32> to vector<18x256xf32>
    %469 = vector.broadcast %cst_143 : f32 to vector<18x256xf32>
    %470 = arith.select %465, %468, %469 : vector<18x256xi1>, vector<18x256xf32>
    %471 = vector.extract_strided_slice %53 {offsets = [7, 0], sizes = [1, 256], strides = [1, 1]} : vector<9x256xi32> to vector<1x256xi32>
    %472 = vector.broadcast %471 : vector<1x256xi32> to vector<18x256xi32>
    %473 = arith.cmpi eq, %56, %472 : vector<18x256xi32>
    %474 = vector.extract_strided_slice %45 {offsets = [7, 0], sizes = [1, 256], strides = [1, 1]} : vector<9x256xf32> to vector<1x256xf32>
    %cst_144 = arith.constant 0.000000e+00 : f32
    %475 = vector.shape_cast %474 : vector<1x256xf32> to vector<1x256xf32>
    %476 = vector.broadcast %475 : vector<1x256xf32> to vector<18x256xf32>
    %477 = vector.broadcast %cst_144 : f32 to vector<18x256xf32>
    %478 = arith.select %473, %476, %477 : vector<18x256xi1>, vector<18x256xf32>
    %479 = arith.addf %470, %478 : vector<18x256xf32>
    %cst_145 = arith.constant dense<0.000000e+00> : vector<18x256xf32>
    %480 = tpu.matmul %61, %462, %cst_145 {dimension_numbers = #tpu.dot_dimension_numbers<[1], [0], [0], [1], [0, 0, 1, 1], [], []>} : vector<18x18xf32>, vector<18x256xf32>, vector<18x256xf32> -> vector<18x256xf32>
    %481 = arith.mulf %480, %479 : vector<18x256xf32>
    %cst_146 = arith.constant dense<0.000000e+00> : vector<256xf32>
    %482 = vector.multi_reduction <add>, %481, %cst_146 [0] : vector<18x256xf32> to vector<256xf32>
    %483 = vector.shape_cast %482 : vector<256xf32> to vector<1x256xf32>
    %c28 = arith.constant 28 : index
    %c0_147 = arith.constant 0 : index
    %484 = vector.load %arg8[%c28, %c0_147] : memref<36x256xf32, #tpu.memory_space<vmem>>, vector<1x256xf32>
    tpu.vector_store %arg8[%c28, %c0_147], %483 {strides = array<i32>} : memref<36x256xf32, #tpu.memory_space<vmem>>, vector<1x256xf32>,
    %cst_148 = arith.constant dense<0.000000e+00> : vector<18x256xf32>
    %485 = tpu.matmul %63, %462, %cst_148 {dimension_numbers = #tpu.dot_dimension_numbers<[1], [0], [0], [1], [0, 0, 1, 1], [], []>} : vector<18x18xf32>, vector<18x256xf32>, vector<18x256xf32> -> vector<18x256xf32>
    %486 = arith.mulf %485, %479 : vector<18x256xf32>
    %cst_149 = arith.constant dense<0.000000e+00> : vector<256xf32>
    %487 = vector.multi_reduction <add>, %486, %cst_149 [0] : vector<18x256xf32> to vector<256xf32>
    %488 = vector.shape_cast %487 : vector<256xf32> to vector<1x256xf32>
    %c29 = arith.constant 29 : index
    %c0_150 = arith.constant 0 : index
    %489 = vector.load %arg8[%c29, %c0_150] : memref<36x256xf32, #tpu.memory_space<vmem>>, vector<1x256xf32>
    tpu.vector_store %arg8[%c29, %c0_150], %488 {strides = array<i32>} : memref<36x256xf32, #tpu.memory_space<vmem>>, vector<1x256xf32>,
    %cst_151 = arith.constant dense<0.000000e+00> : vector<18x256xf32>
    %490 = tpu.matmul %65, %462, %cst_151 {dimension_numbers = #tpu.dot_dimension_numbers<[1], [0], [0], [1], [0, 0, 1, 1], [], []>} : vector<18x18xf32>, vector<18x256xf32>, vector<18x256xf32> -> vector<18x256xf32>
    %491 = arith.mulf %490, %479 : vector<18x256xf32>
    %cst_152 = arith.constant dense<0.000000e+00> : vector<256xf32>
    %492 = vector.multi_reduction <add>, %491, %cst_152 [0] : vector<18x256xf32> to vector<256xf32>
    %493 = vector.shape_cast %492 : vector<256xf32> to vector<1x256xf32>
    %c30 = arith.constant 30 : index
    %c0_153 = arith.constant 0 : index
    %494 = vector.load %arg8[%c30, %c0_153] : memref<36x256xf32, #tpu.memory_space<vmem>>, vector<1x256xf32>
    tpu.vector_store %arg8[%c30, %c0_153], %493 {strides = array<i32>} : memref<36x256xf32, #tpu.memory_space<vmem>>, vector<1x256xf32>,
    %cst_154 = arith.constant dense<0.000000e+00> : vector<18x256xf32>
    %495 = tpu.matmul %67, %462, %cst_154 {dimension_numbers = #tpu.dot_dimension_numbers<[1], [0], [0], [1], [0, 0, 1, 1], [], []>} : vector<18x18xf32>, vector<18x256xf32>, vector<18x256xf32> -> vector<18x256xf32>
    %496 = arith.mulf %495, %479 : vector<18x256xf32>
    %cst_155 = arith.constant dense<0.000000e+00> : vector<256xf32>
    %497 = vector.multi_reduction <add>, %496, %cst_155 [0] : vector<18x256xf32> to vector<256xf32>
    %498 = vector.shape_cast %497 : vector<256xf32> to vector<1x256xf32>
    %c31 = arith.constant 31 : index
    %c0_156 = arith.constant 0 : index
    %499 = vector.load %arg8[%c31, %c0_156] : memref<36x256xf32, #tpu.memory_space<vmem>>, vector<1x256xf32>
    tpu.vector_store %arg8[%c31, %c0_156], %498 {strides = array<i32>} : memref<36x256xf32, #tpu.memory_space<vmem>>, vector<1x256xf32>,
    %500 = vector.extract_strided_slice %54 {offsets = [8, 0], sizes = [1, 256], strides = [1, 1]} : vector<9x256xi32> to vector<1x256xi32>
    %501 = vector.broadcast %500 : vector<1x256xi32> to vector<18x256xi32>
    %502 = arith.cmpi eq, %57, %501 : vector<18x256xi32>
    %503 = vector.extract_strided_slice %48 {offsets = [8, 0], sizes = [1, 256], strides = [1, 1]} : vector<9x256xf32> to vector<1x256xf32>
    %cst_157 = arith.constant 0.000000e+00 : f32
    %504 = vector.shape_cast %503 : vector<1x256xf32> to vector<1x256xf32>
    %505 = vector.broadcast %504 : vector<1x256xf32> to vector<18x256xf32>
    %506 = vector.broadcast %cst_157 : f32 to vector<18x256xf32>
    %507 = arith.select %502, %505, %506 : vector<18x256xi1>, vector<18x256xf32>
    %508 = vector.extract_strided_slice %55 {offsets = [8, 0], sizes = [1, 256], strides = [1, 1]} : vector<9x256xi32> to vector<1x256xi32>
    %509 = vector.broadcast %508 : vector<1x256xi32> to vector<18x256xi32>
    %510 = arith.cmpi eq, %57, %509 : vector<18x256xi32>
    %511 = vector.extract_strided_slice %51 {offsets = [8, 0], sizes = [1, 256], strides = [1, 1]} : vector<9x256xf32> to vector<1x256xf32>
    %cst_158 = arith.constant 0.000000e+00 : f32
    %512 = vector.shape_cast %511 : vector<1x256xf32> to vector<1x256xf32>
    %513 = vector.broadcast %512 : vector<1x256xf32> to vector<18x256xf32>
    %514 = vector.broadcast %cst_158 : f32 to vector<18x256xf32>
    %515 = arith.select %510, %513, %514 : vector<18x256xi1>, vector<18x256xf32>
    %516 = arith.addf %507, %515 : vector<18x256xf32>
    %517 = vector.extract_strided_slice %52 {offsets = [8, 0], sizes = [1, 256], strides = [1, 1]} : vector<9x256xi32> to vector<1x256xi32>
    %518 = vector.broadcast %517 : vector<1x256xi32> to vector<18x256xi32>
    %519 = arith.cmpi eq, %56, %518 : vector<18x256xi32>
    %520 = vector.extract_strided_slice %42 {offsets = [8, 0], sizes = [1, 256], strides = [1, 1]} : vector<9x256xf32> to vector<1x256xf32>
    %cst_159 = arith.constant 0.000000e+00 : f32
    %521 = vector.shape_cast %520 : vector<1x256xf32> to vector<1x256xf32>
    %522 = vector.broadcast %521 : vector<1x256xf32> to vector<18x256xf32>
    %523 = vector.broadcast %cst_159 : f32 to vector<18x256xf32>
    %524 = arith.select %519, %522, %523 : vector<18x256xi1>, vector<18x256xf32>
    %525 = vector.extract_strided_slice %53 {offsets = [8, 0], sizes = [1, 256], strides = [1, 1]} : vector<9x256xi32> to vector<1x256xi32>
    %526 = vector.broadcast %525 : vector<1x256xi32> to vector<18x256xi32>
    %527 = arith.cmpi eq, %56, %526 : vector<18x256xi32>
    %528 = vector.extract_strided_slice %45 {offsets = [8, 0], sizes = [1, 256], strides = [1, 1]} : vector<9x256xf32> to vector<1x256xf32>
    %cst_160 = arith.constant 0.000000e+00 : f32
    %529 = vector.shape_cast %528 : vector<1x256xf32> to vector<1x256xf32>
    %530 = vector.broadcast %529 : vector<1x256xf32> to vector<18x256xf32>
    %531 = vector.broadcast %cst_160 : f32 to vector<18x256xf32>
    %532 = arith.select %527, %530, %531 : vector<18x256xi1>, vector<18x256xf32>
    %533 = arith.addf %524, %532 : vector<18x256xf32>
    %cst_161 = arith.constant dense<0.000000e+00> : vector<18x256xf32>
    %534 = tpu.matmul %61, %516, %cst_161 {dimension_numbers = #tpu.dot_dimension_numbers<[1], [0], [0], [1], [0, 0, 1, 1], [], []>} : vector<18x18xf32>, vector<18x256xf32>, vector<18x256xf32> -> vector<18x256xf32>
    %535 = arith.mulf %534, %533 : vector<18x256xf32>
    %cst_162 = arith.constant dense<0.000000e+00> : vector<256xf32>
    %536 = vector.multi_reduction <add>, %535, %cst_162 [0] : vector<18x256xf32> to vector<256xf32>
    %537 = vector.shape_cast %536 : vector<256xf32> to vector<1x256xf32>
    %c32 = arith.constant 32 : index
    %c0_163 = arith.constant 0 : index
    %538 = vector.load %arg8[%c32, %c0_163] : memref<36x256xf32, #tpu.memory_space<vmem>>, vector<1x256xf32>
    tpu.vector_store %arg8[%c32, %c0_163], %537 {strides = array<i32>} : memref<36x256xf32, #tpu.memory_space<vmem>>, vector<1x256xf32>,
    %cst_164 = arith.constant dense<0.000000e+00> : vector<18x256xf32>
    %539 = tpu.matmul %63, %516, %cst_164 {dimension_numbers = #tpu.dot_dimension_numbers<[1], [0], [0], [1], [0, 0, 1, 1], [], []>} : vector<18x18xf32>, vector<18x256xf32>, vector<18x256xf32> -> vector<18x256xf32>
    %540 = arith.mulf %539, %533 : vector<18x256xf32>
    %cst_165 = arith.constant dense<0.000000e+00> : vector<256xf32>
    %541 = vector.multi_reduction <add>, %540, %cst_165 [0] : vector<18x256xf32> to vector<256xf32>
    %542 = vector.shape_cast %541 : vector<256xf32> to vector<1x256xf32>
    %c33 = arith.constant 33 : index
    %c0_166 = arith.constant 0 : index
    %543 = vector.load %arg8[%c33, %c0_166] : memref<36x256xf32, #tpu.memory_space<vmem>>, vector<1x256xf32>
    tpu.vector_store %arg8[%c33, %c0_166], %542 {strides = array<i32>} : memref<36x256xf32, #tpu.memory_space<vmem>>, vector<1x256xf32>,
    %cst_167 = arith.constant dense<0.000000e+00> : vector<18x256xf32>
    %544 = tpu.matmul %65, %516, %cst_167 {dimension_numbers = #tpu.dot_dimension_numbers<[1], [0], [0], [1], [0, 0, 1, 1], [], []>} : vector<18x18xf32>, vector<18x256xf32>, vector<18x256xf32> -> vector<18x256xf32>
    %545 = arith.mulf %544, %533 : vector<18x256xf32>
    %cst_168 = arith.constant dense<0.000000e+00> : vector<256xf32>
    %546 = vector.multi_reduction <add>, %545, %cst_168 [0] : vector<18x256xf32> to vector<256xf32>
    %547 = vector.shape_cast %546 : vector<256xf32> to vector<1x256xf32>
    %c34 = arith.constant 34 : index
    %c0_169 = arith.constant 0 : index
    %548 = vector.load %arg8[%c34, %c0_169] : memref<36x256xf32, #tpu.memory_space<vmem>>, vector<1x256xf32>
    tpu.vector_store %arg8[%c34, %c0_169], %547 {strides = array<i32>} : memref<36x256xf32, #tpu.memory_space<vmem>>, vector<1x256xf32>,
    %cst_170 = arith.constant dense<0.000000e+00> : vector<18x256xf32>
    %549 = tpu.matmul %67, %516, %cst_170 {dimension_numbers = #tpu.dot_dimension_numbers<[1], [0], [0], [1], [0, 0, 1, 1], [], []>} : vector<18x18xf32>, vector<18x256xf32>, vector<18x256xf32> -> vector<18x256xf32>
    %550 = arith.mulf %549, %533 : vector<18x256xf32>
    %cst_171 = arith.constant dense<0.000000e+00> : vector<256xf32>
    %551 = vector.multi_reduction <add>, %550, %cst_171 [0] : vector<18x256xf32> to vector<256xf32>
    %552 = vector.shape_cast %551 : vector<256xf32> to vector<1x256xf32>
    %c35 = arith.constant 35 : index
    %c0_172 = arith.constant 0 : index
    %553 = vector.load %arg8[%c35, %c0_172] : memref<36x256xf32, #tpu.memory_space<vmem>>, vector<1x256xf32>
    tpu.vector_store %arg8[%c35, %c0_172], %552 {strides = array<i32>} : memref<36x256xf32, #tpu.memory_space<vmem>>, vector<1x256xf32>,
    %c0_173 = arith.constant 0 : index
    %c0_174 = arith.constant 0 : index
    %554 = vector.load %arg6[%c0_173, %c0_174] : memref<8x36xf32, #tpu.memory_space<vmem>>, vector<8x36xf32>
    %c0_175 = arith.constant 0 : index
    %c0_176 = arith.constant 0 : index
    %555 = vector.load %arg8[%c0_175, %c0_176] : memref<36x256xf32, #tpu.memory_space<vmem>>, vector<36x256xf32>
    %cst_177 = arith.constant dense<0.000000e+00> : vector<8x256xf32>
    %556 = tpu.matmul %554, %555, %cst_177 {dimension_numbers = #tpu.dot_dimension_numbers<[1], [0], [0], [1], [0, 0, 1, 1], [], []>} : vector<8x36xf32>, vector<36x256xf32>, vector<8x256xf32> -> vector<8x256xf32>
    %c0_178 = arith.constant 0 : index
    %c0_179 = arith.constant 0 : index
    %c0_180 = arith.constant 0 : index
    %557 = vector.load %arg7[%c0_178, %c0_179, %c0_180] : memref<1x8x256xf32, #tpu.memory_space<vmem>>, vector<1x8x256xf32>
    %558 = vector.shape_cast %557 : vector<1x8x256xf32> to vector<8x256xf32>
    %559 = vector.shape_cast %556 : vector<8x256xf32> to vector<1x8x256xf32>
    tpu.vector_store %arg7[%c0_178, %c0_179, %c0_180], %559 {strides = array<i32>} : memref<1x8x256xf32, #tpu.memory_space<vmem>>, vector<1x8x256xf32>,
    return
  }
  func.func @transform_0(%arg0: i32, %arg1: i32) -> (i32, i32, i32) {
    %c0_i32 = arith.constant 0 : i32
    %c0_i32_0 = arith.constant 0 : i32
    return %arg0, %c0_i32, %arg1 : i32, i32, i32
  }
  func.func @transform_1(%arg0: i32, %arg1: i32) -> (i32, i32, i32, i32) {
    %c0_i32 = arith.constant 0 : i32
    %c0_i32_0 = arith.constant 0 : i32
    %c0_i32_1 = arith.constant 0 : i32
    %c0_i32_2 = arith.constant 0 : i32
    return %arg0, %c0_i32, %c0_i32_0, %c0_i32_1 : i32, i32, i32, i32
  }
  func.func @transform_2(%arg0: i32, %arg1: i32) -> (i32, i32) {
    %c0_i32 = arith.constant 0 : i32
    %c0_i32_0 = arith.constant 0 : i32
    %c0_i32_1 = arith.constant 0 : i32
    return %c0_i32, %c0_i32_0 : i32, i32
  }
  func.func @transform_3(%arg0: i32, %arg1: i32) -> (i32, i32) {
    %c0_i32 = arith.constant 0 : i32
    %c0_i32_0 = arith.constant 0 : i32
    return %c0_i32, %arg1 : i32, i32
  }
  func.func @transform_4(%arg0: i32, %arg1: i32) -> (i32, i32) {
    %c0_i32 = arith.constant 0 : i32
    %c0_i32_0 = arith.constant 0 : i32
    %c0_i32_1 = arith.constant 0 : i32
    return %c0_i32, %c0_i32_0 : i32, i32
  }
  func.func @transform_5(%arg0: i32, %arg1: i32) -> (i32, i32, i32) {
    %c0_i32 = arith.constant 0 : i32
    %c0_i32_0 = arith.constant 0 : i32
    return %arg0, %c0_i32, %arg1 : i32, i32, i32
  }
}

</mosaic_0001>

<bundles_post_ra>
// kernel: tpu_custom_call.1
= control target key start
LH: loop header
LB: loop body
LE: loop exit
PB: predicated region body
PF: predicated region fallthrough
CT: control target
= control target key end

     0   :  { %10 = vsyncpa [#allocation4], 0  ;;  %s10208_s0 = inlined_call_operand.vmem [shape: f32[2,36,256], index: 0, kind: input, shape index: {}]   ;;  %s10209_s1 = inlined_call_operand.vmem [shape: f32[2,4,18,18], index: 1, kind: input, shape index: {}]   ;;  %s10210_s2 = inlined_call_operand.vmem [shape: f32[18,36], index: 2, kind: input, shape index: {}]   ;;  %s10211_s3 = inlined_call_operand.vmem [shape: f32[18,256], index: 3, kind: input, shape index: {}]   ;;  %s10212_s4 = inlined_call_operand.vmem [shape: f32[8,36], index: 4, kind: input, shape index: {}]   ;;  %s10213_s5 = inlined_call_operand.hbm [shape: f32[2,8,256], index: 5, kind: output, shape index: {}]  }
   0x1   :  { %12 = vsyncpa [#allocation4 + $0x1], 0  ;;  %s7118_s18 = smov 0   ;;  %s7120_s19 = smov 0  }
   0x2   :  { %s7122_s20 = smov 0   ;;  %s7124_s21 = smov 0  }
   0x3   :  { %s7126_s22 = smov 0   ;;  %s7128_s23 = smov 0  }
   0x4 LB: > { %s6547_s24 = sadd.s32 4294967295, %s7083_s23   ;;  %s6548_s25 = sadd.s32 4294967294, %s7083_s23   ;;  %s7083_s23 = sphi %s7128_s23, %s18_s23   ;;  %s7079_s22 = sphi %s7126_s22, %s10365_s22   ;;  %s7075_s21 = sphi %s7124_s21, %s10364_s21   ;;  %s7071_s20 = sphi %s7122_s20, %s10363_s20   ;;  %s7067_s19 = sphi %s7120_s19, %s10362_s19   ;;  %s7063_s18 = sphi %s7118_s18, %s10361_s18  }
   0x5   : > { %s30_s26 = sadd.s32 1, %s7079_s22  ;;  %s161_s27 = sadd.s32 1, %s7071_s20 }
   0x6   : > { %p32_p0 = scmp.ge.s32.totalorder %s30_s26, 2  ;;  %p171_p1 = scmp.ne.s32.totalorder %s7071_s20, %s7067_s19 }
   0x7   : > { %p172_p2 = scmp.eq.s32.totalorder %s6547_s24, 1  ;;  %p177_p3 = scmp.ne.s32.totalorder %s7067_s19, %s7063_s18 }
   0x8   : > { %s10367_s26 = smov (%p32_p0, %s30_s26), 0  ;;  %p178_p5 = scmp.eq.s32.totalorder %s6548_s25, 1 }
   0x9   : > { %p7158_p4 = por %p172_p2, %p171_p1  ;;  %s156_s29 = ssub.s32 %s7079_s22, %s10367_s26 }
   0xa   : > { %p6552_p6 = scmp.ge.s32.totalorder %s7083_s23, 1  ;;  %p159_p7 = scmp.eq.s32.totalorder %s156_s29, 0 }
   0xb   : > { %p7165_p8 = por %p178_p5, %p177_p3  ;;  %p232_p9 = scmp.lt.s32.totalorder %s7083_s23, 3 }
   0xc   : > { %s7171_s6 = scalar_select %p159_p7, %s7071_s20, %s161_s27  }
   0xd   : > { %p233_p10 = pnand %p6552_p6, %p232_p9 }
   0xf   : > { %236 = sbr.rel (%p233_p10) target bundleno = 1003 (0x3eb), region = 40 }
  0x16   : > { %p275_p11 = scmp.lt.s32.totalorder %s7075_s21, 1  ;;  %v10215_v0 = vmov 0.0   ;;  %vm10231_vm0 = vcmask 1043456   ;;  %v296_v15 = vld [vmem:[%s10210_s2] sm:$0xff]  ;;  %vm10230_vm1 = vcmask 293888   ;;  %v297_v16 = vld [vmem:[%s10210_s2 + $0x8] sm:$0xff]  ;;  %v10214_v27 = vlaneseq }
  0x17   : > { %396 = vmatprep.mubr.f32.mxu0 %v10215_v0  ;;  %720 = vmatprep.mubr.f32.mxu1 %v10215_v0  ;;  %v298_v17 = vld [vmem:[%s10210_s2 + $0x10] sm:$0x3]  ;;  %v312_v21 = vld [vmem:[%s10211_s3 + $0x18] sm:$0xff]  ;;  %vm649_vm6 = vcmask 1041408   ;;  %vm639_vm13 = vcmask 146432   ;;  %s271_s29 = sand.u32 1, %s7067_s19  }
  0x18   : > { %s7177_s7 = scalar_select %p275_p11, %s7075_s21, 1  ;;  %v311_v20 = vld [vmem:[%s10211_s3 + $0x10] sm:$0xff]  ;;  %v7211_v33 = vshrl.u32 %v10214_v27, 7 }
  0x19   : > { %s6428_s14 = scalar_lea.sflag [#allocation4], %s271_s29 }
  0x1a   : > { %s6910_s8 = smul.u32 80, %s7177_s7  ;;  %v7214_v44 = vsub.s32 1, %v7211_v33  ;;  %v7221_v52 = vadd.s32 8, %v7211_v33  ;;  %v7236_v60 = vsub.s32 2, %v7211_v33 }
  0x1c   : > { %s282_s11 = scalar_lea.vmem %s10208_s0, %s6910_s8  ;;  %s6911_s8 = smul.u32 96, %s7177_s7 }
  0x1d   : > { %v300_v1 = vld [vmem:[%s282_s11 + $0x8] sm:$0xff]  ;;  %v302_v2 = vld [vmem:[%s282_s11 + $0x18] sm:$0xff]  ;;  %v299_v3 = vld [vmem:[%s282_s11] sm:$0xff] }
  0x1e   : > { %v6750_v4 = vpack.c.bf16 %v302_v2, %v300_v1  ;;  %v301_v5 = vld [vmem:[%s282_s11 + $0x10] sm:$0xff]  ;;  %v304_v6 = vld [vmem:[%s282_s11 + $0x28] sm:$0xff]  ;;  %v306_v7 = vld [vmem:[%s282_s11 + $0x38] sm:$0xff]  ;;  %v7245_v2 = vadd.s32 16, %v7211_v33  ;;  %s7295_s10 = scalar_lea.vmem %s10209_s1, %s6911_s8  ;;  %s6553_s8 = sshll.u32 %s271_s29, 4 }
  0x1f   : > { %v6752_v8 = vpack.c.bf16 %v301_v5, %v299_v3  ;;  %v6754_v9 = vpack.c.bf16 %v306_v7, %v304_v6  ;;  %v303_v10 = vld [vmem:[%s282_s11 + $0x20] sm:$0xff]  ;;  %v305_v11 = vld [vmem:[%s282_s11 + $0x30] sm:$0xff]  ;;  %v308_v13 = vld [vmem:[%s282_s11 + $0x48] sm:$0xf]  ;;  %s273_s7 = scalar_lea.vmem [#allocation3], %s6553_s8 }
  0x20   : > { %6751 = vmatprep.subr.bf16.mxu0 %v6750_v4  ;;  %v6756_v12 = vpack.c.bf16 %v305_v11, %v303_v10  ;;  %v307_v14 = vld [vmem:[%s282_s11 + $0x40] sm:$0xf]  ;;  %s6444_s9 = sshll.u32 %s273_s7, 4  ;;  %s10158_s9 = int_to_ptr.vmem [resolvable:$true] %s6444_s9 }
  0x21   : > { %6753 = vmatpush1.bf16.msra.mxu0 %v6752_v8  ;;  %s7005_s15 = scalar_lea.vmem %s10158_s9, 256 }
  0x22   : > { %6755 = vmatprep.subr.bf16.mxu0 %v6754_v9  ;;  %p7006_p12 = scmp.ne.s32.totalorder %s10158_s9, %s7005_s15 }
  0x24   : > { %p7007_p13 = pnand %p7006_p12, %p7158_p4 }
  0x25   : > { %6757 = vmatpush1.bf16.msra.mxu0 %v6756_v12 }
  0x26   : > { %6556 = vmatprep.subr.msk.mxu0 %vm10231_vm0, %v308_v13  ;;  %p7008_p0 = pneg %p7007_p13 }
  0x29   : > { %6557 = vmatpush1.msk.msra.mxu0 %vm10231_vm0, %v307_v14 }
  0x2a   : > { %6558 = vmatmul.mubr.msk.f32.vlgmr.msra.gmra.mrb[0].mxu0 %vm10230_vm1, %v296_v15 }
  0x2b   : > { %402 = vmatprep.mubr.f32.mxu0 %v10215_v0 }
  0x2e   : > { %6559 = vmatmul.mubr.msk.f32.gmra.mrb[2].mxu0 %vm10230_vm1, %v297_v16 }
  0x2f   : > { %408 = vmatprep.mubr.f32.mxu0 %v10215_v0 }
  0x32   : > { %6560 = vmatmul.mubr.msk.f32.gmra.mrb[4].mxu0 %vm10230_vm1, %v298_v17 }
  0x33   : > { %997 = vmatprep.mubr.f32.mxu0 %v10215_v0 }
  0xfd   : > { %v7200_v18 = vpop.f32.mrb[0].mxu0 }
  0xfe   : > { %v7202_v19 = vpop.f32.mrb[1].mxu0 }
 0x101   : > { %v404_v22 = vpop.f32.mrb[2].mxu0 }
 0x102   : > { %v405_v23 = vadd.f32 %v404_v22, %v311_v20  ;;  %v406_v24 = vpop.f32.mrb[3].mxu0 }
 0x103   : > { %v407_v25 = vadd.f32 %v406_v24, %v312_v21 }
 0x104   : > { %v417_v26 = vfloor.f32 %v405_v23  ;;  %v453_v30 = vmax.f32 %v405_v23, 0.0 }
 0x105   : > { %v418_v31 = vfloor.f32 %v407_v25  ;;  %v454_v32 = vmax.f32 %v407_v25, 0.0 }
 0x106   : > { %v421_v28 = vmax.f32 %v417_v26, 0.0  ;;  %v435_v29 = vadd.f32 1.0, %v417_v26  ;;  %v457_v36 = vmin.f32 %v453_v30, 17.0 }
 0x107   : > { %v422_v37 = vmax.f32 %v418_v31, 0.0  ;;  %v436_v40 = vadd.f32 1.0, %v418_v31  ;;  %v458_v43 = vmin.f32 %v454_v32, 17.0 }
 0x108   : > { %v425_v34 = vmin.f32 %v421_v28, 17.0  ;;  %v439_v35 = vmax.f32 %v435_v29, 0.0 }
 0x109   : > { %v426_v42 = vmin.f32 %v422_v37, 17.0  ;;  %v440_v48 = vmax.f32 %v436_v40, 0.0 }
 0x10a   : > { %v443_v38 = vmin.f32 %v439_v35, 17.0  ;;  %v6916_v39 = vtrunc.f32 %v425_v34  ;;  %v465_v41 = vsub.f32 %v425_v34, %v457_v36 }
 0x10b   : > { %v466_v50 = vsub.f32 %v426_v42, %v458_v43  ;;  %v6918_v51 = vtrunc.f32 %v426_v42  ;;  %v444_v55 = vmin.f32 %v440_v48, 17.0 }
 0x10c   : > { %v473_v45 = vsub.f32 %v443_v38, %v457_v36  ;;  %v7216_v46 = vcvt.f32.s32 %v6916_v39  ;;  %v6924_v47 = vtrunc.f32 %v443_v38  ;;  %v7218_v49 = vadd.f32 1.0, %v465_v41 }
 0x10d   : > { %v7229_v57 = vadd.f32 1.0, %v466_v50  ;;  %v7231_v58 = vcvt.f32.s32 %v6918_v51  ;;  %v474_v61 = vsub.f32 %v444_v55, %v458_v43  ;;  %v6926_v62 = vtrunc.f32 %v444_v55  ;;  %v7328_v55 = vld [vmem:[%s7295_s10 + $0x30] sm:$0xff] }
 0x10e   : > { %10268 = vst [vmem:[#allocation6_spill] sm:$0xff] %v7216_v46  ;;  %10269 = vst [vmem:[#allocation7_spill] sm:$0xff] %v7218_v49  ;;  %v7223_v53 = vsub.f32 1.0, %v473_v45  ;;  %v7225_v54 = vcvt.f32.s32 %v6924_v47  ;;  %v518_v56 = vrot.slane %v7216_v46, %v7214_v44  ;;  %v532_v59 = vrot.slane %v7218_v49, %v7214_v44  ;;  %v7322_v47 = vld [vmem:[%s7295_s10] sm:$0xff] }
 0x10f   : > { %10272 = vst [vmem:[#allocation10_spill] sm:$0xff] %v7229_v57  ;;  %10273 = vst [vmem:[#allocation11_spill] sm:$0xff] %v7231_v58  ;;  %v522_v63 = vrot.slane %v7231_v58, %v7214_v44  ;;  %v536_v1 = vrot.slane %v7229_v57, %v7214_v44  ;;  %v7249_v3 = vrot.slane %v7216_v46, %v7236_v60  ;;  %v7251_v4 = vsub.f32 1.0, %v474_v61 }
 0x110   : > { %10270 = vst [vmem:[#allocation8_spill] sm:$0xff] %v7223_v53  ;;  %10271 = vst [vmem:[#allocation9_spill] sm:$0xff] %v7225_v54  ;;  %vm523_vm2 = vcmp.eq.s32.totalorder %v7211_v33, %v518_v56  ;;  %vm525_vm3 = vcmp.eq.s32.totalorder %v7221_v52, %v518_v56  ;;  %v7253_v5 = vcvt.f32.s32 %v6926_v62  ;;  %v546_v6 = vrot.slane %v7225_v54, %v7214_v44 }
 0x111   : > { %10274 = vst [vmem:[#allocation12_spill] sm:$0xff] %v7251_v4  ;;  %v560_v7 = vrot.slane %v7223_v53, %v7214_v44  ;;  %vm524_vm4 = vcmp.eq.s32.totalorder %v7211_v33, %v522_v63  ;;  %vm526_vm5 = vcmp.eq.s32.totalorder %v7221_v52, %v522_v63  ;;  %v537_v8 = vsel %vm523_vm2, %v532_v59, 0.0 }
 0x112   : > { %10275 = vst [vmem:[#allocation13_spill] sm:$0xff] %v7253_v5  ;;  %v539_v9 = vsel %vm525_vm3, %v532_v59, 0.0  ;;  %v550_v10 = vrot.slane %v7253_v5, %v7214_v44  ;;  %v564_v11 = vrot.slane %v7251_v4, %v7214_v44  ;;  %vm528_vm7 = vcmp.eq.s32.totalorder %v7245_v2, %v522_v63  ;;  %v7343_v63 = vpop.f32.mrb[4].mxu0 }
 0x113   : > { %vm527_vm8 = vcmp.eq.s32.totalorder %v7245_v2, %v518_v56  ;;  %v538_v12 = vsel %vm524_vm4, %v536_v1, 0.0  ;;  %v540_v13 = vsel %vm526_vm5, %v536_v1, 0.0  ;;  %vm551_vm9 = vcmp.eq.s32.totalorder %v7211_v33, %v546_v6 }
 0x114   : > { %vm553_vm10 = vcmp.eq.s32.totalorder %v7221_v52, %v546_v6  ;;  %vm552_vm11 = vcmp.eq.s32.totalorder %v7211_v33, %v550_v10  ;;  %vm554_vm12 = vcmp.eq.s32.totalorder %v7221_v52, %v550_v10  ;;  %v565_v14 = vsel %vm551_vm9, %v560_v7, 0.0 }
 0x115   : > { %v567_v15 = vsel %vm553_vm10, %v560_v7, 0.0  ;;  %v566_v16 = vsel %vm552_vm11, %v564_v11, 0.0  ;;  %v568_v17 = vsel %vm554_vm12, %v564_v11, 0.0  ;;  %v571_v20 = vadd.f32 %v565_v14, %v537_v8  ;;  %v7348_v8 = vpop.f32.mrb[5].mxu0 }
 0x116   : > { %v573_v21 = vadd.f32 %v567_v15, %v539_v9  ;;  %v572_v22 = vadd.f32 %v566_v16, %v538_v12  ;;  %v574_v23 = vadd.f32 %v568_v17, %v540_v13  ;;  %vm556_vm14 = vcmp.eq.s32.totalorder %v7245_v2, %v550_v10  ;;  %v7354_v9 = vld [vmem:[%s7295_s10 + $0x8] sm:$0xff]  ;;  %v7365_v13 = vld [vmem:[%s7295_s10 + $0x38] sm:$0xff]  ;;  %v7386_v17 = vld [vmem:[%s7295_s10 + $0x10] sm:$0x3] }
 0x117   : > { %vm555_vm15 = vcmp.eq.s32.totalorder %v7245_v2, %v546_v6  ;;  %v542_v24 = vsel %vm528_vm7, %v536_v1, 0.0  ;;  %v570_v25 = vsel %vm556_vm14, %v564_v11, 0.0  ;;  %v541_v26 = vsel %vm527_vm8, %v532_v59, 0.0 }
 0x118   : > { %v1205_v28 = vrot.slane %v7231_v58, %v7236_v60  ;;  %v7280_v29 = vpack.c.bf16 %v574_v23, %v572_v22  ;;  %v7282_v30 = vpack.c.bf16 %v573_v21, %v571_v20  ;;  %v569_v31 = vsel %vm555_vm15, %v560_v7, 0.0  ;;  %v7398_v22 = vld [vmem:[%s7295_s10 + $0x40] sm:$0x3] }
 0x119   : > { %v1219_v32 = vrot.slane %v7229_v57, %v7236_v60  ;;  %v1233_v34 = vrot.slane %v7253_v5, %v7236_v60  ;;  %v1247_v35 = vrot.slane %v7251_v4, %v7236_v60  ;;  %v7299_v36 = vadd.f32 %v570_v25, %v542_v24  ;;  %v7418_v25 = vld [vmem:[%s7295_s10 + $0x18] sm:$0xff] }
 0x11a   : > { %vm1207_vm2 = vcmp.eq.s32.totalorder %v7211_v33, %v1205_v28  ;;  %vm1209_vm3 = vcmp.eq.s32.totalorder %v7221_v52, %v1205_v28  ;;  %6759 = vmatprep.subr.bf16.mxu1 %v7280_v29  ;;  %6767 = vmatprep.subr.bf16.mxu0 %v7280_v29  ;;  %vm1206_vm4 = vcmp.eq.s32.totalorder %v7211_v33, %v7249_v3  ;;  %v7358_v10 = vsub.s32 3, %v7211_v33 }
 0x11b   : > { %v1221_v37 = vsel %vm1207_vm2, %v1219_v32, 0.0  ;;  %vm1208_vm5 = vcmp.eq.s32.totalorder %v7221_v52, %v7249_v3  ;;  %6761 = vmatpush1.bf16.msra.mxu1 %v7282_v30  ;;  %6769 = vmatpush1.bf16.msra.mxu0 %v7282_v30  ;;  %v1223_v38 = vsel %vm1209_vm3, %v1219_v32, 0.0  ;;  %vm1235_vm7 = vcmp.eq.s32.totalorder %v7211_v33, %v1233_v34 }
 0x11c   : > { %vm1237_vm8 = vcmp.eq.s32.totalorder %v7221_v52, %v1233_v34  ;;  %v1215_v39 = vrot.slane %v7218_v49, %v7236_v60  ;;  %6561 = vmatprep.subr.msk.mxu1 %vm649_vm6, %v7299_v36  ;;  %6571 = vmatprep.subr.msk.mxu0 %vm649_vm6, %v7299_v36  ;;  %v1249_v40 = vsel %vm1235_vm7, %v1247_v35, 0.0  ;;  %v1229_v42 = vrot.slane %v7225_v54, %v7236_v60 }
 0x11d   : > { %v1251_v41 = vsel %vm1237_vm8, %v1247_v35, 0.0  ;;  %v1243_v43 = vrot.slane %v7223_v53, %v7236_v60  ;;  %v7319_v45 = vadd.f32 %v569_v31, %v541_v26  ;;  %v1255_v48 = vadd.f32 %v1249_v40, %v1221_v37  ;;  %v7462_v40 = vld [vmem:[%s7295_s10 + $0x28] sm:$0x3] }
 0x11e   : > { %v1257_v50 = vadd.f32 %v1251_v41, %v1223_v38  ;;  %v1220_v51 = vsel %vm1206_vm4, %v1215_v39, 0.0  ;;  %v1222_v56 = vsel %vm1208_vm5, %v1215_v39, 0.0  ;;  %vm1234_vm9 = vcmp.eq.s32.totalorder %v7211_v33, %v1229_v42 }
 0x11f   : > { %vm1236_vm10 = vcmp.eq.s32.totalorder %v7221_v52, %v1229_v42  ;;  %vm1239_vm11 = vcmp.eq.s32.totalorder %v7245_v2, %v1233_v34  ;;  %6562 = vmatpush1.msk.msra.mxu1 %vm649_vm6, %v7319_v45  ;;  %6572 = vmatpush1.msk.msra.mxu0 %vm649_vm6, %v7319_v45  ;;  %v1248_v61 = vsel %vm1234_vm9, %v1243_v43, 0.0  ;;  %vm1211_vm12 = vcmp.eq.s32.totalorder %v7245_v2, %v1205_v28 }
 0x120   : > { %v7340_v59 = vpack.c.bf16 %v1257_v50, %v1255_v48  ;;  %v1250_v62 = vsel %vm1236_vm10, %v1243_v43, 0.0  ;;  %6563 = vmatmul.mubr.msk.f32.vlgmr.msra.gmra.mrb[0].mxu1 %vm639_vm13, %v7322_v47  ;;  %6763 = vmatprep.subr.bf16.mxu1 %v7280_v29  ;;  %v1254_v1 = vadd.f32 %v1248_v61, %v1220_v51  ;;  %v1253_v7 = vsel %vm1239_vm11, %v1247_v35, 0.0  ;;  %v7436_v35 = vld [vmem:[%s7295_s10 + $0x20] sm:$0xff]  ;;  %v7478_v51 = vld [vmem:[%s7295_s10 + $0x48] sm:$0xff] }
 0x121   : > { %v1256_v6 = vadd.f32 %v1250_v62, %v1222_v56  ;;  %6573 = vmatmul.mubr.msk.f32.vlgmr.msra.gmra.mrb[6].mxu0 %vm639_vm13, %v7328_v55  ;;  %vm1238_vm14 = vcmp.eq.s32.totalorder %v7245_v2, %v1229_v42  ;;  %6765 = vmatpush1.bf16.msra.mxu1 %v7282_v30  ;;  %v1225_v12 = vsel %vm1211_vm12, %v1219_v32, 0.0  ;;  %vm1210_vm15 = vcmp.eq.s32.totalorder %v7245_v2, %v7249_v3 }
 0x122   : > { %6775 = vmatprep.subr.bf16.mxu0 %v7340_v59  ;;  %726 = vmatprep.mubr.f32.mxu1 %v10215_v0  ;;  %v7371_v14 = vadd.f32 %v1253_v7, %v1225_v12  ;;  %v1252_v15 = vsel %vm1238_vm14, %v1243_v43, 0.0  ;;  %v7376_v16 = vrot.slane %v7253_v5, %v7358_v10  ;;  %v1224_v3 = vsel %vm1210_vm15, %v1215_v39, 0.0 }
 0x123   : > { %v7361_v11 = vpack.c.bf16 %v1256_v6, %v1254_v1  ;;  %6566 = vmatprep.subr.msk.mxu1 %vm649_vm6, %v7299_v36  ;;  %1003 = vmatprep.mubr.f32.mxu0 %v10215_v0  ;;  %v7390_v20 = vrot.slane %v7231_v58, %v7358_v10  ;;  %v7394_v21 = vadd.f32 %v1252_v15, %v1224_v3  ;;  %v7495_v6 = vld [vmem:[%s7295_s10 + $0x50] sm:$0xff]  ;;  %v7498_v12 = vsub.s32 4, %v7211_v33 }
 0x124   : > { %6564 = vmatmul.mubr.msk.f32.gmra.mrb[2].mxu1 %vm639_vm13, %v7354_v9  ;;  %v1889_v23 = vrot.slane %v7251_v4, %v7358_v10  ;;  %vm1877_vm2 = vcmp.eq.s32.totalorder %v7211_v33, %v7376_v16  ;;  %vm1879_vm3 = vcmp.eq.s32.totalorder %v7221_v52, %v7376_v16  ;;  %v1861_v24 = vrot.slane %v7229_v57, %v7358_v10 }
 0x125   : > { %6777 = vmatpush1.bf16.msra.mxu0 %v7361_v11  ;;  %6567 = vmatpush1.msk.msra.mxu1 %vm649_vm6, %v7319_v45  ;;  %vm1849_vm4 = vcmp.eq.s32.totalorder %v7211_v33, %v7390_v20  ;;  %vm1851_vm5 = vcmp.eq.s32.totalorder %v7221_v52, %v7390_v20  ;;  %v1843_v34 = vrot.slane %v7216_v46, %v7358_v10 }
 0x126   : > { %6581 = vmatprep.subr.msk.mxu0 %vm649_vm6, %v7371_v14  ;;  %6574 = vmatmul.mubr.msk.f32.gmra.mrb[8].mxu0 %vm639_vm13, %v7365_v13  ;;  %v1891_v26 = vsel %vm1877_vm2, %v1889_v23, 0.0  ;;  %v1893_v28 = vsel %vm1879_vm3, %v1889_v23, 0.0  ;;  %v1863_v31 = vsel %vm1849_vm4, %v1861_v24, 0.0  ;;  %v1865_v32 = vsel %vm1851_vm5, %v1861_v24, 0.0  ;;  %10276 = vst [vmem:[#allocation14_spill] sm:$0xff] %v7498_v12 }
 0x127   : > { %732 = vmatprep.mubr.f32.mxu1 %v10215_v0  ;;  %6771 = vmatprep.subr.bf16.mxu1 %v7280_v29  ;;  %v1871_v29 = vrot.slane %v7225_v54, %v7358_v10  ;;  %v1897_v37 = vadd.f32 %v1891_v26, %v1863_v31  ;;  %v1899_v38 = vadd.f32 %v1893_v28, %v1865_v32 }
 0x128   : > { %1009 = vmatprep.mubr.f32.mxu0 %v10215_v0  ;;  %6565 = vmatmul.mubr.msk.f32.gmra.mrb[4].mxu1 %vm639_vm13, %v7386_v17  ;;  %v1885_v39 = vrot.slane %v7223_v53, %v7358_v10  ;;  %vm1848_vm9 = vcmp.eq.s32.totalorder %v7211_v33, %v1843_v34  ;;  %vm1850_vm10 = vcmp.eq.s32.totalorder %v7221_v52, %v1843_v34 }
 0x129   : > { %6582 = vmatpush1.msk.msra.mxu0 %vm649_vm6, %v7394_v21  ;;  %860 = vmatprep.mubr.f32.mxu1 %v10215_v0  ;;  %vm1876_vm7 = vcmp.eq.s32.totalorder %v7211_v33, %v1871_v29  ;;  %vm1878_vm8 = vcmp.eq.s32.totalorder %v7221_v52, %v1871_v29  ;;  %vm1881_vm11 = vcmp.eq.s32.totalorder %v7245_v2, %v7376_v16 }
 0x12a   : > { %6783 = vmatprep.subr.bf16.mxu0 %v7340_v59  ;;  %6575 = vmatmul.mubr.msk.f32.gmra.mrb[10].mxu0 %vm639_vm13, %v7398_v22  ;;  %v1890_v41 = vsel %vm1876_vm7, %v1885_v39, 0.0  ;;  %v1892_v42 = vsel %vm1878_vm8, %v1885_v39, 0.0  ;;  %vm1853_vm12 = vcmp.eq.s32.totalorder %v7245_v2, %v7390_v20  ;;  %v1895_v56 = vsel %vm1881_vm11, %v1889_v23, 0.0  ;;  %v7520_v20 = vld [vmem:[%s7295_s10 + $0x58] sm:$0x3] }
 0x12b   : > { %1392 = vmatprep.mubr.f32.mxu0 %v10215_v0  ;;  %vm1880_vm14 = vcmp.eq.s32.totalorder %v7245_v2, %v1871_v29  ;;  %v1867_v62 = vsel %vm1853_vm12, %v1861_v24, 0.0  ;;  %vm1852_vm15 = vcmp.eq.s32.totalorder %v7245_v2, %v1843_v34  ;;  %v7508_v16 = vrot.slane %v7253_v5, %v7498_v12 }
 0x12c   : > { %6568 = vmatmul.mubr.msk.f32.vlgmr.msra.gmra.mrb[6].mxu1 %vm639_vm13, %v7418_v25  ;;  %v7492_v1 = vadd.f32 %v1895_v56, %v1867_v62  ;;  %v1894_v7 = vsel %vm1880_vm14, %v1885_v39, 0.0  ;;  %v7524_v23 = vrot.slane %v7231_v58, %v7498_v12  ;;  %v2531_v24 = vrot.slane %v7251_v4, %v7498_v12 }
 0x12d   : > { %6773 = vmatpush1.bf16.msra.mxu1 %v7282_v30  ;;  %866 = vmatprep.mubr.f32.mxu1 %v10215_v0  ;;  %v1857_v30 = vrot.slane %v7218_v49, %v7358_v10  ;;  %vm2519_vm2 = vcmp.eq.s32.totalorder %v7211_v33, %v7508_v16  ;;  %vm2521_vm3 = vcmp.eq.s32.totalorder %v7221_v52, %v7508_v16 }
 0x12e   : > { %6583 = vmatmul.mubr.msk.f32.vlgmr.msra.gmra.mrb[12].mxu0 %vm639_vm13, %v7322_v47  ;;  %6576 = vmatprep.subr.msk.mxu1 %vm649_vm6, %v7299_v36  ;;  %v7459_v36 = vpack.c.bf16 %v1899_v38, %v1897_v37  ;;  %vm2491_vm4 = vcmp.eq.s32.totalorder %v7211_v33, %v7524_v23  ;;  %vm2493_vm5 = vcmp.eq.s32.totalorder %v7221_v52, %v7524_v23  ;;  %v2533_v26 = vsel %vm2519_vm2, %v2531_v24, 0.0 }
 0x12f   : > { %6785 = vmatpush1.bf16.msra.mxu0 %v7361_v11  ;;  %1398 = vmatprep.mubr.f32.mxu0 %v10215_v0  ;;  %v1862_v43 = vsel %vm1848_vm9, %v1857_v30, 0.0  ;;  %v1866_v15 = vsel %vm1852_vm15, %v1857_v30, 0.0  ;;  %v2535_v28 = vsel %vm2521_vm3, %v2531_v24, 0.0  ;;  %v2513_v29 = vrot.slane %v7225_v54, %v7498_v12 }
 0x130   : > { %6591 = vmatprep.subr.msk.mxu0 %vm649_vm6, %v7371_v14  ;;  %6569 = vmatmul.mubr.msk.f32.gmra.mrb[8].mxu1 %vm639_vm13, %v7436_v35  ;;  %v1896_v48 = vadd.f32 %v1890_v41, %v1862_v43  ;;  %v7513_v3 = vadd.f32 %v1894_v7, %v1866_v15  ;;  %v2485_v34 = vrot.slane %v7216_v46, %v7498_v12  ;;  %v7610_v15 = vsub.s32 5, %v7211_v33 }
 0x131   : > { %6577 = vmatpush1.msk.msra.mxu1 %vm649_vm6, %v7319_v45  ;;  %872 = vmatprep.mubr.f32.mxu1 %v10215_v0  ;;  %v1864_v45 = vsel %vm1850_vm10, %v1857_v30, 0.0  ;;  %v2527_v39 = vrot.slane %v7223_v53, %v7498_v12  ;;  %vm2518_vm7 = vcmp.eq.s32.totalorder %v7211_v33, %v2513_v29  ;;  %vm2520_vm8 = vcmp.eq.s32.totalorder %v7221_v52, %v2513_v29 }
 0x132   : > { %6584 = vmatmul.mubr.msk.f32.gmra.mrb[14].mxu0 %vm639_vm13, %v7354_v9  ;;  %6779 = vmatprep.subr.bf16.mxu1 %v7340_v59  ;;  %v1898_v50 = vadd.f32 %v1892_v42, %v1864_v45  ;;  %vm2490_vm9 = vcmp.eq.s32.totalorder %v7211_v33, %v2485_v34  ;;  %vm2492_vm10 = vcmp.eq.s32.totalorder %v7221_v52, %v2485_v34 }
 0x133   : > { %6592 = vmatpush1.msk.msra.mxu0 %vm649_vm6, %v7394_v21  ;;  %1404 = vmatprep.mubr.f32.mxu0 %v10215_v0  ;;  %v2532_v30 = vsel %vm2518_vm7, %v2527_v39, 0.0  ;;  %v2534_v41 = vsel %vm2520_vm8, %v2527_v39, 0.0  ;;  %vm2523_vm11 = vcmp.eq.s32.totalorder %v7245_v2, %v7508_v16  ;;  %vm2495_vm12 = vcmp.eq.s32.totalorder %v7245_v2, %v7524_v23  ;;  %10277 = vst [vmem:[#allocation15_spill] sm:$0xff] %v7610_v15 }
 0x134   : > { %6791 = vmatprep.subr.bf16.mxu0 %v7459_v36  ;;  %6570 = vmatmul.mubr.msk.f32.gmra.mrb[10].mxu1 %vm639_vm13, %v7462_v40  ;;  %v7486_v61 = vpack.c.bf16 %v1898_v50, %v1896_v48  ;;  %v2537_v48 = vsel %vm2523_vm11, %v2531_v24, 0.0  ;;  %vm2522_vm14 = vcmp.eq.s32.totalorder %v7245_v2, %v2513_v29  ;;  %vm2494_vm15 = vcmp.eq.s32.totalorder %v7245_v2, %v2485_v34 }
 0x135   : > { %1134 = vmatprep.mubr.f32.mxu1 %v10215_v0  ;;  %v2536_v7 = vsel %vm2522_vm14, %v2527_v39, 0.0  ;;  %v7620_v23 = vrot.slane %v7253_v5, %v7610_v15 }
 0x136   : > { %6585 = vmatmul.mubr.msk.f32.gmra.mrb[16].mxu0 %vm639_vm13, %v7386_v17 }
 0x137   : > { %1648 = vmatprep.mubr.f32.mxu0 %v10215_v0  ;;  %vm3161_vm2 = vcmp.eq.s32.totalorder %v7211_v33, %v7620_v23  ;;  %vm3163_vm3 = vcmp.eq.s32.totalorder %v7221_v52, %v7620_v23  ;;  %vm3165_vm11 = vcmp.eq.s32.totalorder %v7245_v2, %v7620_v23  ;;  %v7724_v23 = vsub.s32 6, %v7211_v33 }
 0x138   : > { %6578 = vmatmul.mubr.msk.f32.vlgmr.msra.gmra.mrb[12].mxu1 %vm639_vm13, %v7478_v51 }
 0x139   : > { %6781 = vmatpush1.bf16.msra.mxu1 %v7361_v11  ;;  %1140 = vmatprep.mubr.f32.mxu1 %v10215_v0  ;;  %10278 = vst [vmem:[#allocation16_spill] sm:$0xff] %v7724_v23 }
 0x13a   : > { %6593 = vmatmul.mubr.msk.f32.vlgmr.msra.gmra.mrb[18].mxu0 %vm639_vm13, %v7328_v55  ;;  %6586 = vmatprep.subr.msk.mxu1 %vm649_vm6, %v7371_v14 }
 0x13b   : > { %6793 = vmatpush1.bf16.msra.mxu0 %v7486_v61  ;;  %1654 = vmatprep.mubr.f32.mxu0 %v10215_v0 }
 0x13c   : > { %6601 = vmatprep.subr.msk.mxu0 %vm649_vm6, %v7492_v1  ;;  %6579 = vmatmul.mubr.msk.f32.gmra.mrb[14].mxu1 %vm639_vm13, %v7495_v6 }
 0x13d   : > { %6587 = vmatpush1.msk.msra.mxu1 %vm649_vm6, %v7394_v21  ;;  %1146 = vmatprep.mubr.f32.mxu1 %v10215_v0 }
 0x13e   : > { %6594 = vmatmul.mubr.msk.f32.gmra.mrb[20].mxu0 %vm639_vm13, %v7365_v13  ;;  %6787 = vmatprep.subr.bf16.mxu1 %v7340_v59  ;;  %v2503_v59 = vrot.slane %v7229_v57, %v7498_v12 }
 0x13f   : > { %6602 = vmatpush1.msk.msra.mxu0 %vm649_vm6, %v7513_v3  ;;  %1660 = vmatprep.mubr.f32.mxu0 %v10215_v0 }
 0x140   : > { %6799 = vmatprep.subr.bf16.mxu0 %v7459_v36  ;;  %6580 = vmatmul.mubr.msk.f32.gmra.mrb[16].mxu1 %vm639_vm13, %v7520_v20  ;;  %v2505_v31 = vsel %vm2491_vm4, %v2503_v59, 0.0  ;;  %v2507_v32 = vsel %vm2493_vm5, %v2503_v59, 0.0  ;;  %v2509_v56 = vsel %vm2495_vm12, %v2503_v59, 0.0  ;;  %v7633_v59 = vrot.slane %v7231_v58, %v7610_v15 }
 0x141   : > { %1520 = vmatprep.mubr.f32.mxu1 %v10215_v0  ;;  %v2539_v37 = vadd.f32 %v2533_v26, %v2505_v31  ;;  %v2541_v38 = vadd.f32 %v2535_v28, %v2507_v32  ;;  %v7607_v62 = vadd.f32 %v2537_v48, %v2509_v56  ;;  %v3173_v26 = vrot.slane %v7251_v4, %v7610_v15 }
 0x142   : > { %6595 = vmatmul.mubr.msk.f32.gmra.mrb[22].mxu0 %vm639_vm13, %v7398_v22  ;;  %vm3133_vm4 = vcmp.eq.s32.totalorder %v7211_v33, %v7633_v59  ;;  %vm3135_vm5 = vcmp.eq.s32.totalorder %v7221_v52, %v7633_v59  ;;  %v3155_v31 = vrot.slane %v7225_v54, %v7610_v15  ;;  %vm3137_vm12 = vcmp.eq.s32.totalorder %v7245_v2, %v7633_v59 }
 0x143   : > { %2034 = vmatprep.mubr.f32.mxu0 %v10215_v0  ;;  %v3175_v28 = vsel %vm3161_vm2, %v3173_v26, 0.0  ;;  %v3177_v29 = vsel %vm3163_vm3, %v3173_v26, 0.0 }
 0x144   : > { %6588 = vmatmul.mubr.msk.f32.vlgmr.msra.gmra.mrb[18].mxu1 %vm639_vm13, %v7418_v25  ;;  %vm3160_vm7 = vcmp.eq.s32.totalorder %v7211_v33, %v3155_v31  ;;  %vm3162_vm8 = vcmp.eq.s32.totalorder %v7221_v52, %v3155_v31  ;;  %vm3164_vm14 = vcmp.eq.s32.totalorder %v7245_v2, %v3155_v31 }
 0x145   : > { %6789 = vmatpush1.bf16.msra.mxu1 %v7361_v11  ;;  %1526 = vmatprep.mubr.f32.mxu1 %v10215_v0  ;;  %v2499_v11 = vrot.slane %v7218_v49, %v7498_v12 }
 0x146   : > { %6603 = vmatmul.mubr.msk.f32.vlgmr.msra.gmra.mrb[24].mxu0 %vm639_vm13, %v7322_v47  ;;  %6596 = vmatprep.subr.msk.mxu1 %vm649_vm6, %v7371_v14  ;;  %v7580_v14 = vpack.c.bf16 %v2541_v38, %v2539_v37  ;;  %v7665_v37 = vrot.slane %v7216_v46, %v7610_v15  ;;  %v309_v38 = vld [vmem:[%s10211_s3] sm:$0xff] }
 0x147   : > { %6801 = vmatpush1.bf16.msra.mxu0 %v7486_v61  ;;  %2040 = vmatprep.mubr.f32.mxu0 %v10215_v0  ;;  %v2504_v42 = vsel %vm2490_vm9, %v2499_v11, 0.0  ;;  %v2506_v43 = vsel %vm2492_vm10, %v2499_v11, 0.0  ;;  %v2508_v16 = vsel %vm2494_vm15, %v2499_v11, 0.0 }
 0x148   : > { %6611 = vmatprep.subr.msk.mxu0 %vm649_vm6, %v7492_v1  ;;  %6589 = vmatmul.mubr.msk.f32.gmra.mrb[20].mxu1 %vm639_vm13, %v7436_v35  ;;  %v2540_v45 = vadd.f32 %v2534_v41, %v2506_v43  ;;  %v7625_v24 = vadd.f32 %v2536_v7, %v2508_v16  ;;  %v3141_v41 = vrot.slane %v7218_v49, %v7610_v15  ;;  %v3179_v16 = vsel %vm3165_vm11, %v3173_v26, 0.0 }
 0x149   : > { %6597 = vmatpush1.msk.msra.mxu1 %vm649_vm6, %v7394_v21  ;;  %1532 = vmatprep.mubr.f32.mxu1 %v10215_v0  ;;  %v2538_v21 = vadd.f32 %v2532_v30, %v2504_v42  ;;  %v3169_v30 = vrot.slane %v7223_v53, %v7610_v15  ;;  %v7689_v42 = vadd.f32 %v7200_v18, %v309_v38 }
 0x14a   : > { %6604 = vmatmul.mubr.msk.f32.gmra.mrb[26].mxu0 %vm639_vm13, %v7354_v9  ;;  %6795 = vmatprep.subr.bf16.mxu1 %v7459_v36  ;;  %vm3132_vm9 = vcmp.eq.s32.totalorder %v7211_v33, %v7665_v37  ;;  %vm3134_vm10 = vcmp.eq.s32.totalorder %v7221_v52, %v7665_v37  ;;  %vm3136_vm15 = vcmp.eq.s32.totalorder %v7245_v2, %v7665_v37 }
 0x14b   : > { %6612 = vmatpush1.msk.msra.mxu0 %vm649_vm6, %v7513_v3  ;;  %2046 = vmatprep.mubr.f32.mxu0 %v10215_v0  ;;  %v7601_v50 = vpack.c.bf16 %v2540_v45, %v2538_v21  ;;  %v3174_v18 = vsel %vm3160_vm7, %v3169_v30, 0.0  ;;  %v3176_v43 = vsel %vm3162_vm8, %v3169_v30, 0.0  ;;  %v3146_v45 = vsel %vm3132_vm9, %v3141_v41, 0.0 }
 0x14c   : > { %6807 = vmatprep.subr.bf16.mxu0 %v7580_v14  ;;  %6590 = vmatmul.mubr.msk.f32.gmra.mrb[22].mxu1 %vm639_vm13, %v7462_v40  ;;  %v415_v48 = vfloor.f32 %v7689_v42  ;;  %v3178_v31 = vsel %vm3164_vm14, %v3169_v30, 0.0  ;;  %v451_v37 = vmax.f32 %v7689_v42, 0.0 }
 0x14d   : > { %1776 = vmatprep.mubr.f32.mxu1 %v10215_v0 }
 0x14e   : > { %6605 = vmatmul.mubr.msk.f32.gmra.mrb[28].mxu0 %vm639_vm13, %v7386_v17  ;;  %v419_v59 = vmax.f32 %v415_v48, 0.0 }
 0x14f   : > { %2290 = vmatprep.mubr.f32.mxu0 %v10215_v0 }
 0x150   : > { %6598 = vmatmul.mubr.msk.f32.vlgmr.msra.gmra.mrb[24].mxu1 %vm639_vm13, %v7478_v51  ;;  %v423_v42 = vmin.f32 %v419_v59, 17.0 }
 0x151   : > { %6797 = vmatpush1.bf16.msra.mxu1 %v7486_v61  ;;  %1782 = vmatprep.mubr.f32.mxu1 %v10215_v0 }
 0x152   : > { %6613 = vmatmul.mubr.msk.f32.vlgmr.msra.gmra.mrb[30].mxu0 %vm639_vm13, %v7328_v55  ;;  %6606 = vmatprep.subr.msk.mxu1 %vm649_vm6, %v7492_v1 }
 0x153   : > { %6809 = vmatpush1.bf16.msra.mxu0 %v7601_v50  ;;  %2296 = vmatprep.mubr.f32.mxu0 %v10215_v0 }
 0x154   : > { %6621 = vmatprep.subr.msk.mxu0 %vm649_vm6, %v7607_v62  ;;  %6599 = vmatmul.mubr.msk.f32.gmra.mrb[26].mxu1 %vm639_vm13, %v7495_v6 }
 0x155   : > { %6607 = vmatpush1.msk.msra.mxu1 %vm649_vm6, %v7513_v3  ;;  %1788 = vmatprep.mubr.f32.mxu1 %v10215_v0 }
 0x156   : > { %6614 = vmatmul.mubr.msk.f32.gmra.mrb[32].mxu0 %vm639_vm13, %v7365_v13  ;;  %6803 = vmatprep.subr.bf16.mxu1 %v7459_v36  ;;  %v3145_v36 = vrot.slane %v7229_v57, %v7610_v15 }
 0x157   : > { %6622 = vmatpush1.msk.msra.mxu0 %vm649_vm6, %v7625_v24  ;;  %2302 = vmatprep.mubr.f32.mxu0 %v10215_v0 }
 0x158   : > { %6815 = vmatprep.subr.bf16.mxu0 %v7580_v14  ;;  %6600 = vmatmul.mubr.msk.f32.gmra.mrb[28].mxu1 %vm639_vm13, %v7520_v20  ;;  %v3147_v32 = vsel %vm3133_vm4, %v3145_v36, 0.0  ;;  %v3149_v34 = vsel %vm3135_vm5, %v3145_v36, 0.0 }
 0x159   : > { %2162 = vmatprep.mubr.f32.mxu1 %v10215_v0  ;;  %v3181_v39 = vadd.f32 %v3175_v28, %v3147_v32  ;;  %v3183_v11 = vadd.f32 %v3177_v29, %v3149_v34  ;;  %v433_v28 = vadd.f32 1.0, %v415_v48  ;;  %v3151_v32 = vsel %vm3137_vm12, %v3145_v36, 0.0 }
 0x15a   : > { %6615 = vmatmul.mubr.msk.f32.gmra.mrb[34].mxu0 %vm639_vm13, %v7398_v22  ;;  %v7735_v26 = vadd.f32 %v3179_v16, %v3151_v32  ;;  %v7742_v36 = vrot.slane %v7253_v5, %v7724_v23  ;;  %v7801_v16 = vrot.slane %v7225_v54, %v7724_v23 }
 0x15b   : > { %2676 = vmatprep.mubr.f32.mxu0 %v10215_v0 }
 0x15c   : > { %6608 = vmatmul.mubr.msk.f32.vlgmr.msra.gmra.mrb[30].mxu1 %vm639_vm13, %v7418_v25  ;;  %vm3803_vm2 = vcmp.eq.s32.totalorder %v7211_v33, %v7742_v36  ;;  %vm3805_vm3 = vcmp.eq.s32.totalorder %v7221_v52, %v7742_v36  ;;  %vm3802_vm7 = vcmp.eq.s32.totalorder %v7211_v33, %v7801_v16  ;;  %vm3804_vm8 = vcmp.eq.s32.totalorder %v7221_v52, %v7801_v16 }
 0x15d   : > { %6805 = vmatpush1.bf16.msra.mxu1 %v7486_v61  ;;  %v310_v61 = vld [vmem:[%s10211_s3 + $0x8] sm:$0xff]  ;;  %2168 = vmatprep.mubr.f32.mxu1 %v10215_v0  ;;  %vm3807_vm12 = vcmp.eq.s32.totalorder %v7245_v2, %v7742_v36  ;;  %vm3806_vm14 = vcmp.eq.s32.totalorder %v7245_v2, %v7801_v16 }
 0x15e   : > { %6623 = vmatmul.mubr.msk.f32.vlgmr.msra.gmra.mrb[36].mxu0 %vm639_vm13, %v7322_v47  ;;  %6616 = vmatprep.subr.msk.mxu1 %vm649_vm6, %v7492_v1  ;;  %v7702_v1 = vpack.c.bf16 %v3183_v11, %v3181_v39  ;;  %v401_v21 = vadd.f32 %v7202_v19, %v310_v61  ;;  %v3180_v19 = vadd.f32 %v3174_v18, %v3146_v45  ;;  %v3150_v39 = vsel %vm3136_vm15, %v3141_v41, 0.0 }
 0x15f   : > { %6817 = vmatpush1.bf16.msra.mxu0 %v7601_v50  ;;  %2682 = vmatprep.mubr.f32.mxu0 %v10215_v0  ;;  %v437_v11 = vmax.f32 %v433_v28, 0.0  ;;  %v7751_v61 = vadd.f32 %v3178_v31, %v3150_v39  ;;  %v7755_v18 = vrot.slane %v7231_v58, %v7724_v23  ;;  %v7774_v45 = vrot.slane %v7229_v57, %v7724_v23 }
 0x160   : > { %6631 = vmatprep.subr.msk.mxu0 %vm649_vm6, %v7607_v62  ;;  %6609 = vmatmul.mubr.msk.f32.gmra.mrb[32].mxu1 %vm639_vm13, %v7436_v35  ;;  %v416_v7 = vfloor.f32 %v401_v21  ;;  %v452_v30 = vmax.f32 %v401_v21, 0.0  ;;  %v7811_v31 = vsub.s32 0, %v7211_v33  ;;  %v7817_v39 = vrot.slane %v7216_v46, %v7724_v23 }
 0x161   : > { %6617 = vmatpush1.msk.msra.mxu1 %vm649_vm6, %v7513_v3  ;;  %2174 = vmatprep.mubr.f32.mxu1 %v10215_v0  ;;  %v3148_v3 = vsel %vm3134_vm10, %v3141_v41, 0.0  ;;  %v7763_v41 = vrot.slane %v7251_v4, %v7724_v23  ;;  %v7781_v48 = vmin.f32 %v437_v11, 17.0  ;;  %vm3775_vm4 = vcmp.eq.s32.totalorder %v7211_v33, %v7755_v18  ;;  %v314_v11 = vld [vmem:[%s10211_s3 + $0x28] sm:$0x3] }
 0x162   : > { %6624 = vmatmul.mubr.msk.f32.gmra.mrb[38].mxu0 %vm639_vm13, %v7354_v9  ;;  %6811 = vmatprep.subr.bf16.mxu1 %v7580_v14  ;;  %v3182_v56 = vadd.f32 %v3176_v43, %v3148_v3  ;;  %v434_v34 = vadd.f32 1.0, %v416_v7  ;;  %v420_v38 = vmax.f32 %v416_v7, 0.0  ;;  %v7779_v3 = vsub.s32 7, %v7211_v33  ;;  %10279 = vst [vmem:[#allocation17_spill] sm:$0xff] %v7811_v31 }
 0x163   : > { %6632 = vmatpush1.msk.msra.mxu0 %vm649_vm6, %v7625_v24  ;;  %2688 = vmatprep.mubr.f32.mxu0 %v10215_v0  ;;  %vm3777_vm5 = vcmp.eq.s32.totalorder %v7221_v52, %v7755_v18  ;;  %v3817_v7 = vsel %vm3803_vm2, %v7763_v41, 0.0  ;;  %v3819_v59 = vsel %vm3805_vm3, %v7763_v41, 0.0  ;;  %vm3774_vm9 = vcmp.eq.s32.totalorder %v7211_v33, %v7817_v39 }
 0x164   : > { %6823 = vmatprep.subr.bf16.mxu0 %v7702_v1  ;;  %6610 = vmatmul.mubr.msk.f32.gmra.mrb[34].mxu1 %vm639_vm13, %v7462_v40  ;;  %v7728_v29 = vpack.c.bf16 %v3182_v56, %v3180_v19  ;;  %v438_v43 = vmax.f32 %v434_v34, 0.0  ;;  %v424_v21 = vmin.f32 %v420_v38, 17.0  ;;  %v7783_v19 = vmin.f32 %v452_v30, 17.0 }
 0x165   : > { %2418 = vmatprep.mubr.f32.mxu1 %v10215_v0  ;;  %v6912_v56 = vtrunc.f32 %v423_v42  ;;  %v3789_v38 = vsel %vm3775_vm4, %v7774_v45, 0.0  ;;  %vm3776_vm10 = vcmp.eq.s32.totalorder %v7221_v52, %v7817_v39  ;;  %vm3779_vm11 = vcmp.eq.s32.totalorder %v7245_v2, %v7755_v18 }
 0x166   : > { %6625 = vmatmul.mubr.msk.f32.gmra.mrb[40].mxu0 %vm639_vm13, %v7386_v17  ;;  %v7803_v32 = vmin.f32 %v438_v43, 17.0  ;;  %v464_v34 = vsub.f32 %v424_v21, %v7783_v19  ;;  %v3823_v43 = vadd.f32 %v3817_v7, %v3789_v38  ;;  %v6920_v7 = vtrunc.f32 %v7781_v48 }
 0x167   : > { %2932 = vmatprep.mubr.f32.mxu0 %v10215_v0  ;;  %v7828_v27 = vcvt.f32.s32 %v6912_v56  ;;  %v7846_v56 = vadd.f32 %v7348_v8, %v314_v11  ;;  %v313_v8 = vld [vmem:[%s10211_s3 + $0x20] sm:$0x3]  ;;  %v3793_v36 = vsel %vm3779_vm11, %v7774_v45, 0.0  ;;  %vm3778_vm2 = vcmp.eq.s32.totalorder %v7245_v2, %v7817_v39 }
 0x168   : > { %6618 = vmatmul.mubr.msk.f32.vlgmr.msra.gmra.mrb[36].mxu1 %vm639_vm13, %v7478_v51  ;;  %v472_v38 = vsub.f32 %v7803_v32, %v7783_v19  ;;  %v7973_v39 = vrot.slane %v7216_v46, %v7779_v3 }
 0x169   : > { %6813 = vmatpush1.bf16.msra.mxu1 %v7601_v50  ;;  %2424 = vmatprep.mubr.f32.mxu1 %v10215_v0 }
 0x16a   : > { %6633 = vmatmul.mubr.msk.f32.vlgmr.msra.gmra.mrb[42].mxu0 %vm639_vm13, %v7328_v55  ;;  %6626 = vmatprep.subr.msk.mxu1 %vm649_vm6, %v7607_v62  ;;  %v7907_v12 = vsub.f32 1.0, %v472_v38  ;;  %v3821_v38 = vsel %vm3807_vm12, %v7763_v41, 0.0  ;;  %vm4418_vm11 = vcmp.eq.s32.totalorder %v7221_v52, %v7973_v39 }
 0x16b   : > { %6825 = vmatpush1.bf16.msra.mxu0 %v7728_v29  ;;  %2938 = vmatprep.mubr.f32.mxu0 %v10215_v0 }
 0x16c   : > { %6641 = vmatprep.subr.msk.mxu0 %vm649_vm6, %v7735_v26  ;;  %6619 = vmatmul.mubr.msk.f32.gmra.mrb[38].mxu1 %vm639_vm13, %v7495_v6 }
 0x16d   : > { %6627 = vmatpush1.msk.msra.mxu1 %vm649_vm6, %v7625_v24  ;;  %2430 = vmatprep.mubr.f32.mxu1 %v10215_v0 }
 0x16e   : > { %6634 = vmatmul.mubr.msk.f32.gmra.mrb[44].mxu0 %vm639_vm13, %v7365_v13  ;;  %6819 = vmatprep.subr.bf16.mxu1 %v7580_v14  ;;  %v455_v14 = vmin.f32 %v451_v37, 17.0  ;;  %v6914_v37 = vtrunc.f32 %v424_v21  ;;  %v3811_v21 = vrot.slane %v7223_v53, %v7724_v23 }
 0x16f   : > { %6642 = vmatpush1.msk.msra.mxu0 %vm649_vm6, %v7751_v61  ;;  %2944 = vmatprep.mubr.f32.mxu0 %v10215_v0 }
 0x170   : > { %6831 = vmatprep.subr.bf16.mxu0 %v7702_v1  ;;  %6620 = vmatmul.mubr.msk.f32.gmra.mrb[40].mxu1 %vm639_vm13, %v7520_v20  ;;  %v463_v28 = vsub.f32 %v423_v42, %v455_v14  ;;  %v471_v30 = vsub.f32 %v7781_v48, %v455_v14  ;;  %v3791_v42 = vsel %vm3777_vm5, %v7774_v45, 0.0  ;;  %v10280_v48 = vmov 0.0  }
 0x171   : > { %2804 = vmatprep.mubr.f32.mxu1 %v10215_v0  ;;  %v3816_v19 = vsel %vm3802_vm7, %v3811_v21, 0.0  ;;  %v3820_v18 = vsel %vm3806_vm14, %v3811_v21, 0.0  ;;  %v7946_v45 = vrot.slane %v7229_v57, %v7779_v3 }
 0x172   : > { %6635 = vmatmul.mubr.msk.f32.gmra.mrb[46].mxu0 %vm639_vm13, %v7398_v22  ;;  %v7837_v14 = vadd.f32 1.0, %v463_v28  ;;  %v6922_v28 = vtrunc.f32 %v7803_v32  ;;  %v7874_v11 = vsub.f32 1.0, %v471_v30  ;;  %v7898_v30 = vadd.f32 %v7343_v63, %v313_v8 }
 0x173   : > { %3318 = vmatprep.mubr.f32.mxu0 %v10215_v0  ;;  %v3825_v0 = vadd.f32 %v3819_v59, %v3791_v42  ;;  %v7848_v59 = vadd.f32 1.0, %v464_v34  ;;  %v3818_v34 = vsel %vm3804_vm8, %v3811_v21, 0.0  ;;  %v428_v42 = vfloor.f32 %v7846_v56 }
 0x174   : > { %6628 = vmatmul.mubr.msk.f32.vlgmr.msra.gmra.mrb[42].mxu1 %vm639_vm13, %v7418_v25  ;;  %v7916_v63 = vrot.slane %v7231_v58, %v7779_v3  ;;  %v7922_v8 = vcvt.f32.s32 %v6922_v28  ;;  %v7935_v16 = vrot.slane %v7837_v14, %v7811_v31  ;;  %v427_v28 = vfloor.f32 %v7898_v30 }
 0x175   : > { %6821 = vmatpush1.bf16.msra.mxu1 %v7601_v50  ;;  %v3783_v50 = vrot.slane %v7218_v49, %v7724_v23  ;;  %2810 = vmatprep.mubr.f32.mxu1 %v10280_v48  ;;  %v7880_v32 = vpack.c.bf16 %v3825_v0, %v3823_v43  ;;  %v7901_v43 = vcvt.f32.s32 %v6920_v7  ;;  %v7920_v7 = vrot.slane %v7253_v5, %v7779_v3 }
 0x176   : > { %6643 = vmatmul.mubr.msk.f32.vlgmr.msra.gmra.mrb[48].mxu0 %vm639_vm13, %v7322_v47  ;;  %6636 = vmatprep.subr.msk.mxu1 %vm649_vm6, %v7607_v62  ;;  %v7862_v62 = vcvt.f32.s32 %v6914_v37  ;;  %v7886_v37 = vrot.slane %v7828_v27, %v7811_v31  ;;  %vm4417_vm3 = vcmp.eq.s32.totalorder %v7211_v33, %v7916_v63  ;;  %vm4419_vm4 = vcmp.eq.s32.totalorder %v7221_v52, %v7916_v63 }
 0x177   : > { %6833 = vmatpush1.bf16.msra.mxu0 %v7728_v29  ;;  %3324 = vmatprep.mubr.f32.mxu0 %v10280_v48  ;;  %v3790_v0 = vsel %vm3776_vm10, %v3783_v50, 0.0  ;;  %vm4445_vm5 = vcmp.eq.s32.totalorder %v7211_v33, %v7920_v7  ;;  %v3792_v41 = vsel %vm3778_vm2, %v3783_v50, 0.0  ;;  %vm4447_vm7 = vcmp.eq.s32.totalorder %v7221_v52, %v7920_v7 }
 0x178   : > { %6651 = vmatprep.subr.msk.mxu0 %vm649_vm6, %v7735_v26  ;;  %6629 = vmatmul.mubr.msk.f32.gmra.mrb[44].mxu1 %vm639_vm13, %v7436_v35  ;;  %v3824_v15 = vadd.f32 %v3818_v34, %v3790_v0  ;;  %vm585_vm15 = vcmp.eq.s32.totalorder %v7211_v33, %v7886_v37  ;;  %v7978_v21 = vadd.f32 %v3820_v18, %v3792_v41  ;;  %v445_v0 = vadd.f32 1.0, %v427_v28 }
 0x179   : > { %6637 = vmatpush1.msk.msra.mxu1 %vm649_vm6, %v7625_v24  ;;  %v3788_v24 = vsel %vm3774_vm9, %v3783_v50, 0.0  ;;  %2816 = vmatprep.mubr.f32.mxu1 %v10280_v48  ;;  %v430_v57 = vmax.f32 %v428_v42, 0.0  ;;  %v4431_v50 = vsel %vm4417_vm3, %v7946_v45, 0.0  ;;  %v429_v18 = vmax.f32 %v427_v28, 0.0 }
 0x17a   : > { %6644 = vmatmul.mubr.msk.f32.gmra.mrb[50].mxu0 %vm639_vm13, %v7354_v9  ;;  %6827 = vmatprep.subr.bf16.mxu1 %v7702_v1  ;;  %v3822_v23 = vadd.f32 %v3816_v19, %v3788_v24  ;;  %v446_v19 = vadd.f32 1.0, %v428_v42  ;;  %v7950_v24 = vrot.slane %v7251_v4, %v7779_v3  ;;  %v459_v41 = vmax.f32 %v7898_v30, 0.0 }
 0x17b   : > { %6652 = vmatpush1.msk.msra.mxu0 %vm649_vm6, %v7751_v61  ;;  %3330 = vmatprep.mubr.f32.mxu0 %v10280_v48  ;;  %vm4416_vm9 = vcmp.eq.s32.totalorder %v7211_v33, %v7973_v39  ;;  %v4425_v4 = vrot.slane %v7218_v49, %v7779_v3  ;;  %v460_v58 = vmax.f32 %v7846_v56, 0.0  ;;  %v432_v30 = vmin.f32 %v430_v57, 17.0 }
 0x17c   : > { %6839 = vmatprep.subr.bf16.mxu0 %v7880_v32  ;;  %6630 = vmatmul.mubr.msk.f32.gmra.mrb[46].mxu1 %vm639_vm13, %v7462_v40  ;;  %v7942_v34 = vpack.c.bf16 %v3824_v15, %v3822_v23  ;;  %v7962_v15 = vrot.slane %v7225_v54, %v7779_v3  ;;  %v7967_v23 = vadd.f32 %v3821_v38, %v3793_v36  ;;  %v4433_v36 = vsel %vm4419_vm4, %v7946_v45, 0.0  ;;  %v8301_v54 = vld [vmem:[%s7295_s10 + $0x40] sm:$0x3] }
 0x17d   : > { %3060 = vmatprep.mubr.f32.mxu1 %v10280_v48  ;;  %v4459_v42 = vsel %vm4445_vm5, %v7950_v24, 0.0  ;;  %v4453_v38 = vrot.slane %v7223_v53, %v7779_v3  ;;  %vm4449_vm12 = vcmp.eq.s32.totalorder %v7245_v2, %v7920_v7  ;;  %vm4421_vm14 = vcmp.eq.s32.totalorder %v7245_v2, %v7916_v63 }
 0x17e   : > { %6645 = vmatmul.mubr.msk.f32.gmra.mrb[52].mxu0 %vm639_vm13, %v7386_v17  ;;  %vm4444_vm8 = vcmp.eq.s32.totalorder %v7211_v33, %v7962_v15  ;;  %vm4446_vm10 = vcmp.eq.s32.totalorder %v7221_v52, %v7962_v15  ;;  %v4465_v49 = vadd.f32 %v4459_v42, %v4431_v50  ;;  %v4430_v50 = vsel %vm4416_vm9, %v4425_v4, 0.0 }
 0x17f   : > { %3574 = vmatprep.mubr.f32.mxu0 %v10280_v48  ;;  %v4458_v56 = vsel %vm4444_vm8, %v4453_v38, 0.0  ;;  %v4460_v57 = vsel %vm4446_vm10, %v4453_v38, 0.0  ;;  %v462_v42 = vmin.f32 %v460_v58, 17.0  ;;  %v4463_v58 = vsel %vm4449_vm12, %v7950_v24, 0.0 }
 0x180   : > { %6638 = vmatmul.mubr.msk.f32.vlgmr.msra.gmra.mrb[48].mxu1 %vm639_vm13, %v7478_v51  ;;  %v4464_v5 = vadd.f32 %v4458_v56, %v4430_v50  ;;  %vm4420_vm2 = vcmp.eq.s32.totalorder %v7245_v2, %v7973_v39  ;;  %v8072_v56 = vrot.slane %v7874_v11, %v7811_v31  ;;  %v4435_v7 = vsel %vm4421_vm14, %v7946_v45, 0.0 }
 0x181   : > { %6829 = vmatpush1.bf16.msra.mxu1 %v7728_v29  ;;  %3066 = vmatprep.mubr.f32.mxu1 %v10280_v48  ;;  %v8089_v45 = vadd.f32 %v4463_v58, %v4435_v7 }
 0x182   : > { %6653 = vmatmul.mubr.msk.f32.vlgmr.msra.gmra.mrb[54].mxu0 %vm639_vm13, %v7328_v55  ;;  %6646 = vmatprep.subr.msk.mxu1 %vm649_vm6, %v7735_v26  ;;  %v448_v55 = vmax.f32 %v446_v19, 0.0  ;;  %v4461_v19 = vsel %vm4447_vm7, %v7950_v24, 0.0  ;;  %v480_v24 = vsub.f32 %v432_v30, %v462_v42 }
 0x183   : > { %6841 = vmatpush1.bf16.msra.mxu0 %v7942_v34  ;;  %3580 = vmatprep.mubr.f32.mxu0 %v10280_v48  ;;  %v4467_v53 = vadd.f32 %v4461_v19, %v4433_v36  ;;  %v4432_v36 = vsel %vm4418_vm11, %v4425_v4, 0.0  ;;  %v8053_v19 = vrot.slane %v7901_v43, %v7811_v31 }
 0x184   : > { %6661 = vmatprep.subr.msk.mxu0 %vm649_vm6, %v7967_v23  ;;  %6639 = vmatmul.mubr.msk.f32.gmra.mrb[50].mxu1 %vm639_vm13, %v7495_v6  ;;  %v450_v28 = vmin.f32 %v448_v55, 17.0  ;;  %v461_v55 = vmin.f32 %v459_v41, 17.0  ;;  %v4466_v46 = vadd.f32 %v4460_v57, %v4432_v36 }
 0x185   : > { %6647 = vmatpush1.msk.msra.mxu1 %vm649_vm6, %v7751_v61  ;;  %3072 = vmatprep.mubr.f32.mxu1 %v10280_v48  ;;  %vm613_vm3 = vcmp.eq.s32.totalorder %v7211_v33, %v8053_v19 }
 0x186   : > { %6654 = vmatmul.mubr.msk.f32.gmra.mrb[56].mxu0 %vm639_vm13, %v7365_v13  ;;  %6835 = vmatprep.subr.bf16.mxu1 %v7702_v1  ;;  %v447_v13 = vmax.f32 %v445_v0, 0.0  ;;  %v8032_v1 = vsel %vm585_vm15, %v7935_v16, 0.0  ;;  %v431_v0 = vmin.f32 %v429_v18, 17.0  ;;  %v8058_v18 = vtrunc.f32 %v432_v30 }
 0x187   : > { %6662 = vmatpush1.msk.msra.mxu0 %vm649_vm6, %v7978_v21  ;;  %3586 = vmatprep.mubr.f32.mxu0 %v10280_v48  ;;  %v6934_v41 = vtrunc.f32 %v450_v28  ;;  %vm4448_vm15 = vcmp.eq.s32.totalorder %v7245_v2, %v7962_v15  ;;  %v484_v15 = vsub.f32 %v450_v28, %v462_v42  ;;  %v4434_v30 = vsel %vm4420_vm2, %v4425_v4, 0.0 }
 0x188   : > { %6847 = vmatprep.subr.bf16.mxu0 %v7880_v32  ;;  %6640 = vmatmul.mubr.msk.f32.gmra.mrb[52].mxu1 %vm639_vm13, %v7520_v20  ;;  %v479_v63 = vsub.f32 %v431_v0, %v461_v55  ;;  %v482_v4 = vadd.f32 1.0, %v480_v24  ;;  %v8133_v42 = vrot.slane %v7922_v8, %v7811_v31 }
 0x189   : > { %3446 = vmatprep.mubr.f32.mxu1 %v10280_v48  ;;  %v486_v39 = vsub.f32 1.0, %v484_v15 }
 0x18a   : > { %6655 = vmatmul.mubr.msk.f32.gmra.mrb[58].mxu0 %vm639_vm13, %v7398_v22  ;;  %v449_v22 = vmin.f32 %v447_v13, 17.0  ;;  %v6928_v13 = vtrunc.f32 %v431_v0  ;;  %v6931_v0 = vcvt.f32.s32 %v8058_v18 }
 0x18b   : > { %3960 = vmatprep.mubr.f32.mxu0 %v10280_v48 }
 0x18c   : > { %6648 = vmatmul.mubr.msk.f32.vlgmr.msra.gmra.mrb[54].mxu1 %vm639_vm13, %v7418_v25  ;;  %v4462_v25 = vsel %vm4448_vm15, %v4453_v38, 0.0  ;;  %v6932_v57 = vtrunc.f32 %v449_v22  ;;  %v483_v28 = vsub.f32 %v449_v22, %v461_v55  ;;  %v481_v38 = vadd.f32 1.0, %v479_v63 }
 0x18d   : > { %6837 = vmatpush1.bf16.msra.mxu1 %v7728_v29  ;;  %v6935_v29 = vcvt.f32.s32 %v6934_v41  ;;  %3452 = vmatprep.mubr.f32.mxu1 %v10280_v48  ;;  %v6929_v50 = vcvt.f32.s32 %v6928_v13  ;;  %v8137_v22 = vrot.slane %v7907_v12, %v7811_v31  ;;  %v8154_v63 = vrot.slane %v482_v4, %v7811_v31 }
 0x18e   : > { %6663 = vmatmul.mubr.msk.f32.vlgmr.msra.gmra.mrb[60].mxu0 %vm639_vm13, %v7322_v47  ;;  %6656 = vmatprep.subr.msk.mxu1 %vm649_vm6, %v7735_v26  ;;  %v8087_v47 = vpack.c.bf16 %v4467_v53, %v4465_v49  ;;  %v8097_v26 = vpack.c.bf16 %v4466_v46, %v4464_v5  ;;  %v627_v49 = vsel %vm613_vm3, %v8072_v56, 0.0  ;;  %v8107_v53 = vadd.f32 %v4462_v25, %v4434_v30  ;;  %v8189_v30 = vld [vmem:[%s7295_s10 + $0x30] sm:$0xff] }
 0x18f   : > { %6849 = vmatpush1.bf16.msra.mxu0 %v7942_v34  ;;  %3966 = vmatprep.mubr.f32.mxu0 %v10280_v48  ;;  %v8111_v46 = vrot.slane %v7862_v62, %v7811_v31  ;;  %v6933_v5 = vcvt.f32.s32 %v6932_v57  ;;  %v485_v55 = vsub.f32 1.0, %v483_v28  ;;  %v8129_v36 = vadd.f32 %v627_v49, %v8032_v1 }
 0x190   : > { %6671 = vmatprep.subr.msk.mxu0 %vm649_vm6, %v7967_v23  ;;  %6649 = vmatmul.mubr.msk.f32.gmra.mrb[56].mxu1 %vm639_vm13, %v7436_v35  ;;  %v8117_v35 = vrot.slane %v6931_v0, %v7811_v31  ;;  %v5053_v18 = vrot.slane %v6929_v50, %v7811_v31  ;;  %v5067_v41 = vrot.slane %v481_v38, %v7811_v31 }
 0x191   : > { %6657 = vmatpush1.msk.msra.mxu1 %vm649_vm6, %v7751_v61  ;;  %v8120_v61 = vrot.slane %v6935_v29, %v7811_v31  ;;  %3458 = vmatprep.mubr.f32.mxu1 %v10280_v48  ;;  %10281 = vst [vmem:[#allocation18_spill] sm:$0xff] %v8129_v36  ;;  %v8145_v1 = vrot.slane %v6929_v50, %v7214_v44 }
 0x192   : > { %6664 = vmatmul.mubr.msk.f32.gmra.mrb[62].mxu0 %vm639_vm13, %v7354_v9  ;;  %6843 = vmatprep.subr.bf16.mxu1 %v7880_v32  ;;  %v8124_v9 = vrot.slane %v7848_v59, %v7811_v31  ;;  %v8151_v58 = vrot.slane %v6933_v5, %v7214_v44  ;;  %v5081_v13 = vrot.slane %v6933_v5, %v7811_v31 }
 0x193   : > { %6672 = vmatpush1.msk.msra.mxu0 %vm649_vm6, %v7978_v21  ;;  %3972 = vmatprep.mubr.f32.mxu0 %v10280_v48  ;;  %v8162_v7 = vrot.slane %v481_v38, %v7214_v44  ;;  %vm5059_vm4 = vcmp.eq.s32.totalorder %v7211_v33, %v8117_v35  ;;  %vm5087_vm5 = vcmp.eq.s32.totalorder %v7211_v33, %v8120_v61 }
 0x194   : > { %6855 = vmatprep.subr.bf16.mxu0 %v8087_v47  ;;  %6650 = vmatmul.mubr.msk.f32.gmra.mrb[58].mxu1 %vm639_vm13, %v7462_v40  ;;  %v8157_v40 = vrot.slane %v486_v39, %v7811_v31  ;;  %vm5062_vm7 = vcmp.eq.s32.totalorder %v7245_v2, %v5053_v18  ;;  %v8171_v24 = vrot.slane %v485_v55, %v7214_v44 }
 0x195   : > { %3702 = vmatprep.mubr.f32.mxu1 %v10280_v48  ;;  %v8174_v15 = vrot.slane %v6931_v0, %v7214_v44  ;;  %vm5090_vm8 = vcmp.eq.s32.totalorder %v7245_v2, %v5081_v13  ;;  %v8180_v25 = vrot.slane %v482_v4, %v7214_v44  ;;  %v8183_v57 = vrot.slane %v6935_v29, %v7214_v44  ;;  %v8250_v4 = vld [vmem:[%s7295_s10 + $0x38] sm:$0xff] }
 0x196   : > { %6665 = vmatmul.mubr.msk.f32.gmra.mrb[64].mxu0 %vm639_vm13, %v7386_v17  ;;  %v5095_v17 = vrot.slane %v485_v55, %v7811_v31  ;;  %vm5061_vm9 = vcmp.eq.s32.totalorder %v7221_v52, %v8117_v35  ;;  %vm5704_vm10 = vcmp.eq.s32.totalorder %v7245_v2, %v8145_v1  ;;  %vm5732_vm11 = vcmp.eq.s32.totalorder %v7245_v2, %v8151_v58 }
 0x197   : > { %4216 = vmatprep.mubr.f32.mxu0 %v10280_v48  ;;  %v5073_v0 = vsel %vm5059_vm4, %v8154_v63, 0.0  ;;  %vm5089_vm12 = vcmp.eq.s32.totalorder %v7221_v52, %v8120_v61  ;;  %v5101_v29 = vsel %vm5087_vm5, %v8157_v40, 0.0  ;;  %v8215_v28 = vsel %vm5062_vm7, %v5067_v41, 0.0 }
 0x198   : > { %6658 = vmatmul.mubr.msk.f32.vlgmr.msra.gmra.mrb[60].mxu1 %vm639_vm13, %v7478_v51  ;;  %v8198_v51 = vrot.slane %v486_v39, %v7214_v44  ;;  %vm5058_vm14 = vcmp.eq.s32.totalorder %v7211_v33, %v5053_v18  ;;  %vm5060_vm15 = vcmp.eq.s32.totalorder %v7221_v52, %v5053_v18  ;;  %vm5086_vm2 = vcmp.eq.s32.totalorder %v7211_v33, %v5081_v13 }
 0x199   : > { %6845 = vmatpush1.bf16.msra.mxu1 %v7942_v34  ;;  %vm614_vm3 = vcmp.eq.s32.totalorder %v7211_v33, %v8133_v42  ;;  %3708 = vmatprep.mubr.f32.mxu1 %v10280_v48  ;;  %v5075_v38 = vsel %vm5061_vm9, %v8154_v63, 0.0  ;;  %vm5088_vm4 = vcmp.eq.s32.totalorder %v7221_v52, %v5081_v13  ;;  %vm5701_vm5 = vcmp.eq.s32.totalorder %v7211_v33, %v8174_v15 }
 0x19a   : > { %6673 = vmatmul.mubr.msk.f32.vlgmr.msra.gmra.mrb[66].mxu0 %vm639_vm13, %v8189_v30  ;;  %6666 = vmatprep.subr.msk.mxu1 %vm649_vm6, %v7967_v23  ;;  %vm5703_vm7 = vcmp.eq.s32.totalorder %v7221_v52, %v8174_v15  ;;  %v5103_v50 = vsel %vm5089_vm12, %v8157_v40, 0.0  ;;  %v5107_v49 = vadd.f32 %v5101_v29, %v5073_v0  ;;  %vm5729_vm9 = vcmp.eq.s32.totalorder %v7211_v33, %v8183_v57 }
 0x19b   : > { %6857 = vmatpush1.bf16.msra.mxu0 %v8097_v26  ;;  %4222 = vmatprep.mubr.f32.mxu0 %v10280_v48  ;;  %vm5731_vm1 = vcmp.eq.s32.totalorder %v7221_v52, %v8183_v57  ;;  %vm586_vm0 = vcmp.eq.s32.totalorder %v7211_v33, %v8111_v46  ;;  %v5074_v39 = vsel %vm5060_vm15, %v5067_v41, 0.0  ;;  %v5100_v5 = vsel %vm5086_vm2, %v5095_v17, 0.0 }
 0x19c   : > { %6681 = vmatprep.subr.msk.mxu0 %vm649_vm6, %v8089_v45  ;;  %6659 = vmatmul.mubr.msk.f32.gmra.mrb[62].mxu1 %vm639_vm13, %v7495_v6  ;;  %v5072_v6 = vsel %vm5058_vm14, %v5067_v41, 0.0  ;;  %vm5063_vm12 = vcmp.eq.s32.totalorder %v7245_v2, %v8117_v35  ;;  %v5102_v55 = vsel %vm5088_vm4, %v5095_v17, 0.0  ;;  %vm5091_vm14 = vcmp.eq.s32.totalorder %v7245_v2, %v8120_v61 }
 0x19d   : > { %6667 = vmatpush1.msk.msra.mxu1 %vm649_vm6, %v7978_v21  ;;  %v5715_v18 = vsel %vm5701_vm5, %v8180_v25, 0.0  ;;  %v5717_v41 = vsel %vm5703_vm7, %v8180_v25, 0.0  ;;  %3714 = vmatprep.mubr.f32.mxu1 %v10280_v48  ;;  %v5745_v0 = vsel %vm5731_vm1, %v8198_v51, 0.0  ;;  %vm5700_vm15 = vcmp.eq.s32.totalorder %v7211_v33, %v8145_v1 }
 0x19e   : > { %6674 = vmatmul.mubr.msk.f32.gmra.mrb[68].mxu0 %vm639_vm13, %v8250_v4  ;;  %6851 = vmatprep.subr.bf16.mxu1 %v7880_v32  ;;  %v5743_v32 = vsel %vm5729_vm9, %v8198_v51, 0.0  ;;  %vm5702_vm2 = vcmp.eq.s32.totalorder %v7221_v52, %v8145_v1  ;;  %v5104_v29 = vsel %vm5090_vm8, %v5095_v17, 0.0  ;;  %v5109_v36 = vadd.f32 %v5103_v50, %v5075_v38 }
 0x19f   : > { %6682 = vmatpush1.msk.msra.mxu0 %vm649_vm6, %v8107_v53  ;;  %4228 = vmatprep.mubr.f32.mxu0 %v10280_v48  ;;  %vm5728_vm4 = vcmp.eq.s32.totalorder %v7211_v33, %v8151_v58  ;;  %vm5730_vm1 = vcmp.eq.s32.totalorder %v7221_v52, %v8151_v58  ;;  %v5106_v13 = vadd.f32 %v5100_v5, %v5072_v6  ;;  %v5105_v38 = vsel %vm5091_vm14, %v8157_v40, 0.0  ;;  %v8338_v5 = vld [vmem:[%s7295_s10 + $0x18] sm:$0xff] }
 0x1a0   : > { %6863 = vmatprep.subr.bf16.mxu0 %v8087_v47  ;;  %6660 = vmatmul.mubr.msk.f32.gmra.mrb[64].mxu1 %vm639_vm13, %v7520_v20  ;;  %v5108_v17 = vadd.f32 %v5102_v55, %v5074_v39  ;;  %v5077_v20 = vsel %vm5063_vm12, %v8154_v63, 0.0  ;;  %v5749_v50 = vadd.f32 %v5743_v32, %v5715_v18  ;;  %v5751_v31 = vadd.f32 %v5745_v0, %v5717_v41  ;;  %v8348_v18 = vld [vmem:[%s7295_s10] sm:$0xff] }
 0x1a1   : > { %4088 = vmatprep.mubr.f32.mxu1 %v10280_v48  ;;  %v5714_v6 = vsel %vm5700_vm15, %v8162_v7, 0.0  ;;  %v5716_v35 = vsel %vm5702_vm2, %v8162_v7, 0.0  ;;  %v5742_v63 = vsel %vm5728_vm4, %v8171_v24, 0.0  ;;  %v5744_v61 = vsel %vm5730_vm1, %v8171_v24, 0.0 }
 0x1a2   : > { %6675 = vmatmul.mubr.msk.f32.gmra.mrb[70].mxu0 %vm639_vm13, %v8301_v54  ;;  %vm5705_vm8 = vcmp.eq.s32.totalorder %v7245_v2, %v8174_v15  ;;  %vm5733_vm5 = vcmp.eq.s32.totalorder %v7245_v2, %v8183_v57  ;;  %v5718_v40 = vsel %vm5704_vm10, %v8162_v7, 0.0  ;;  %v5746_v39 = vsel %vm5732_vm11, %v8171_v24, 0.0 }
 0x1a3   : > { %4602 = vmatprep.mubr.f32.mxu0 %v10280_v48  ;;  %v8342_v55 = vpack.c.bf16 %v5109_v36, %v5107_v49  ;;  %vm587_vm7 = vcmp.eq.s32.totalorder %v7221_v52, %v7886_v37  ;;  %v8352_v1 = vpack.c.bf16 %v5108_v17, %v5106_v13  ;;  %v8354_v58 = vadd.f32 %v5105_v38, %v5077_v20 }
 0x1a4   : > { %6668 = vmatmul.mubr.msk.f32.vlgmr.msra.gmra.mrb[66].mxu1 %vm639_vm13, %v8338_v5  ;;  %v8357_v7 = vadd.f32 %v5104_v29, %v8215_v28  ;;  %v628_v36 = vsel %vm614_vm3, %v8137_v22, 0.0  ;;  %v5750_v24 = vadd.f32 %v5744_v61, %v5716_v35  ;;  %v5719_v49 = vsel %vm5705_vm8, %v8180_v25, 0.0  ;;  %v8389_v25 = vld [vmem:[%s7295_s10 + $0x20] sm:$0xff]  ;;  %v8470_v61 = vld [vmem:[%s7295_s10 + $0x10] sm:$0x3] }
 0x1a5   : > { %6853 = vmatpush1.bf16.msra.mxu1 %v7942_v34  ;;  %v5748_v34 = vadd.f32 %v5742_v63, %v5714_v6  ;;  %v5747_v28 = vsel %vm5733_vm5, %v8198_v51, 0.0  ;;  %4094 = vmatprep.mubr.f32.mxu1 %v10280_v48  ;;  %v8377_v41 = vpack.c.bf16 %v5751_v31, %v5749_v50  ;;  %v600_v15 = vsel %vm586_vm0, %v8124_v9, 0.0  ;;  %v8404_v51 = vld [vmem:[%s7295_s10 + $0x8] sm:$0xff] }
 0x1a6   : > { %6683 = vmatmul.mubr.msk.f32.vlgmr.msra.gmra.mrb[72].mxu0 %vm639_vm13, %v8348_v18  ;;  %6676 = vmatprep.subr.msk.mxu1 %vm649_vm6, %v7967_v23  ;;  %v8379_v23 = vadd.f32 %v5746_v39, %v5718_v40  ;;  %vm615_vm10 = vcmp.eq.s32.totalorder %v7221_v52, %v8053_v19  ;;  %v8393_v57 = vadd.f32 %v628_v36, %v600_v15  ;;  %v601_v0 = vsel %vm587_vm7, %v7935_v16, 0.0  ;;  %v8452_v6 = vld [vmem:[%s7295_s10 + $0x28] sm:$0x3] }
 0x1a7   : > { %6865 = vmatpush1.bf16.msra.mxu0 %v8097_v26  ;;  %4608 = vmatprep.mubr.f32.mxu0 %v10280_v48  ;;  %vm588_vm11 = vcmp.eq.s32.totalorder %v7221_v52, %v8111_v46  ;;  %v8399_v31 = vrot.slane %v7901_v43, %v7214_v44  ;;  %v8408_v32 = vadd.f32 %v5747_v28, %v5719_v49  ;;  %v629_v13 = vsel %vm615_vm10, %v8072_v56, 0.0 }
 0x1a8   : > { %6691 = vmatprep.subr.msk.mxu0 %vm649_vm6, %v8089_v45  ;;  %6669 = vmatmul.mubr.msk.f32.gmra.mrb[68].mxu1 %vm639_vm13, %v8389_v25  ;;  %vm616_vm0 = vcmp.eq.s32.totalorder %v7221_v52, %v8133_v42  ;;  %v8418_v29 = vrot.slane %v7922_v8, %v7214_v44  ;;  %vm617_vm3 = vcmp.eq.s32.totalorder %v7245_v2, %v8053_v19  ;;  %v602_v20 = vsel %vm588_vm11, %v8124_v9, 0.0 }
 0x1a9   : > { %6677 = vmatpush1.msk.msra.mxu1 %vm649_vm6, %v7978_v21  ;;  %v8423_v21 = vpack.c.bf16 %v5750_v24, %v5748_v34  ;;  %v8433_v17 = vrot.slane %v7828_v27, %v7214_v44  ;;  %4100 = vmatprep.mubr.f32.mxu1 %v10280_v48  ;;  %vm618_vm9 = vcmp.eq.s32.totalorder %v7245_v2, %v8133_v42  ;;  %v630_v35 = vsel %vm616_vm0, %v8137_v22, 0.0 }
 0x1aa   : > { %6684 = vmatmul.mubr.msk.f32.gmra.mrb[74].mxu0 %vm639_vm13, %v8404_v51  ;;  %6859 = vmatprep.subr.bf16.mxu1 %v8087_v47  ;;  %v8445_v38 = vrot.slane %v7874_v11, %v7214_v44  ;;  %v8449_v50 = vrot.slane %v7862_v62, %v7214_v44  ;;  %vm589_vm12 = vcmp.eq.s32.totalorder %v7245_v2, %v7886_v37  ;;  %v631_v40 = vsel %vm617_vm3, %v8072_v56, 0.0 }
 0x1ab   : > { %6692 = vmatpush1.msk.msra.mxu0 %vm649_vm6, %v8107_v53  ;;  %4614 = vmatprep.mubr.f32.mxu0 %v10280_v48  ;;  %vm1296_vm14 = vcmp.eq.s32.totalorder %v7211_v33, %v8399_v31  ;;  %v8467_v63 = vrot.slane %v7907_v12, %v7214_v44  ;;  %vm590_vm15 = vcmp.eq.s32.totalorder %v7245_v2, %v8111_v46  ;;  %v632_v36 = vsel %vm618_vm9, %v8137_v22, 0.0  ;;  %v8511_v22 = vld [vmem:[%s7295_s10 + $0x48] sm:$0xff] }
 0x1ac   : > { %6670 = vmatmul.mubr.msk.f32.gmra.mrb[70].mxu1 %vm639_vm13, %v8452_v6  ;;  %6871 = vmatprep.subr.bf16.mxu0 %v8342_v55  ;;  %v8483_v39 = vrot.slane %v7837_v14, %v7214_v44  ;;  %vm1297_vm2 = vcmp.eq.s32.totalorder %v7211_v33, %v8418_v29  ;;  %vm1268_vm4 = vcmp.eq.s32.totalorder %v7211_v33, %v8433_v17  ;;  %v1310_v42 = vsel %vm1296_vm14, %v8445_v38, 0.0 }
 0x1ad   : > { %4344 = vmatprep.mubr.f32.mxu1 %v10280_v48  ;;  %v8496_v19 = vrot.slane %v7848_v59, %v7214_v44  ;;  %vm1298_vm1 = vcmp.eq.s32.totalorder %v7221_v52, %v8399_v31  ;;  %v8500_v56 = vadd.f32 %v629_v13, %v601_v0  ;;  %v8502_v46 = vadd.f32 %v630_v35, %v602_v20 }
 0x1ae   : > { %6685 = vmatmul.mubr.msk.f32.gmra.mrb[76].mxu0 %vm639_vm13, %v8470_v61  ;;  %vm1269_vm8 = vcmp.eq.s32.totalorder %v7211_v33, %v8449_v50  ;;  %v603_v44 = vsel %vm589_vm12, %v7935_v16, 0.0  ;;  %v604_v34 = vsel %vm590_vm15, %v8124_v9, 0.0  ;;  %v1311_v24 = vsel %vm1297_vm2, %v8467_v63, 0.0 }
 0x1af   : > { %4858 = vmatprep.mubr.f32.mxu0 %v10280_v48  ;;  %vm1270_vm5 = vcmp.eq.s32.totalorder %v7221_v52, %v8433_v17  ;;  %v8526_v49 = vadd.f32 %v631_v40, %v603_v44  ;;  %v8528_v28 = vadd.f32 %v632_v36, %v604_v34  ;;  %v1282_v37 = vsel %vm1268_vm4, %v8483_v39, 0.0  ;;  %v8568_v40 = vld [vmem:[%s7295_s10 + $0x50] sm:$0xff] }
 0x1b0   : > { %6678 = vmatmul.mubr.msk.f32.vlgmr.msra.gmra.mrb[72].mxu1 %vm639_vm13, %v8511_v22  ;;  %v1312_v16 = vsel %vm1298_vm1, %v8445_v38, 0.0  ;;  %v8541_v9 = vadd.f32 %v1310_v42, %v1282_v37  ;;  %v1283_v15 = vsel %vm1269_vm8, %v8496_v19, 0.0  ;;  %vm1271_vm7 = vcmp.eq.s32.totalorder %v7221_v52, %v8449_v50 }
 0x1b1   : > { %6861 = vmatpush1.bf16.msra.mxu1 %v8097_v26  ;;  %4350 = vmatprep.mubr.f32.mxu1 %v10280_v48  ;;  %v8551_v0 = vrot.slane %v7901_v43, %v7236_v60  ;;  %v8555_v13 = vadd.f32 %v1311_v24, %v1283_v15  ;;  %v1284_v20 = vsel %vm1270_vm5, %v8483_v39, 0.0  ;;  %vm1299_vm10 = vcmp.eq.s32.totalorder %v7221_v52, %v8418_v29 }
 0x1b2   : > { %6693 = vmatmul.mubr.msk.f32.vlgmr.msra.gmra.mrb[78].mxu0 %vm639_vm13, %v8189_v30  ;;  %6686 = vmatprep.subr.msk.mxu1 %vm649_vm6, %v8089_v45  ;;  %10282 = vst [vmem:[#allocation19_spill] sm:$0xff] %v8541_v9  ;;  %v8565_v35 = vrot.slane %v7828_v27, %v7236_v60  ;;  %v8574_v36 = vadd.f32 %v1312_v16, %v1284_v20  ;;  %v1313_v34 = vsel %vm1299_vm10, %v8467_v63, 0.0  ;;  %v8620_v16 = vld [vmem:[%s7295_s10 + $0x58] sm:$0x3]  ;;  %s6749_s10 = sshll.u32 %s7075_s21, 8  ;;  %s7087_s21 = smov [#allocation3]  }
 0x1b3   : > { %4864 = vmatprep.mubr.f32.mxu0 %v10280_v48  ;;  %6873 = vmatpush1.bf16.msra.mxu0 %v8352_v1  ;;  %10283 = vst [vmem:[#allocation20_spill] sm:$0xff] %v8555_v13  ;;  %vm1300_vm11 = vcmp.eq.s32.totalorder %v7245_v2, %v8399_v31  ;;  %v8580_v42 = vrot.slane %v7922_v8, %v7236_v60  ;;  %s10163_s13 = scalar_lea.hbm %s10213_s5, %s6749_s10  ;;  %s7009_s16 = sshll.u32 %s7087_s21, 4  ;;  %s7010_s16 = int_to_ptr.vmem [resolvable:$false] %s7009_s16 }
 0x1b4   : > { %6679 = vmatmul.mubr.msk.f32.gmra.mrb[74].mxu1 %vm639_vm13, %v8568_v40  ;;  %6701 = vmatprep.subr.msk.mxu0 %vm649_vm6, %v8354_v58  ;;  %10284 = vst [vmem:[#allocation21_spill] sm:$0xff] %v8574_v36  ;;  %vm1272_vm0 = vcmp.eq.s32.totalorder %v7245_v2, %v8433_v17  ;;  %v8590_v44 = vrot.slane %v7874_v11, %v7236_v60  ;;  %s7011_s17 = scalar_lea.vmem %s7010_s16, 512  ;;  %p7012_p1 = scmp.lt.s32.totalorder %s10158_s9, %s7010_s16 }
 0x1b5   : > { %6687 = vmatpush1.msk.msra.mxu1 %vm649_vm6, %v8107_v53  ;;  %v8594_v31 = vrot.slane %v7862_v62, %v7236_v60  ;;  %4356 = vmatprep.mubr.f32.mxu1 %v10280_v48  ;;  %vm1273_vm3 = vcmp.eq.s32.totalorder %v7245_v2, %v8449_v50  ;;  %vm1301_vm9 = vcmp.eq.s32.totalorder %v7245_v2, %v8418_v29  ;;  %v1286_v20 = vsel %vm1272_vm0, %v8483_v39, 0.0  ;;  %p7013_p2 = scmp.lt.s32.totalorder %s7011_s17, %s7005_s15 }
 0x1b6   : > { %6694 = vmatmul.mubr.msk.f32.gmra.mrb[80].mxu0 %vm639_vm13, %v8250_v4  ;;  %6867 = vmatprep.subr.bf16.mxu1 %v8087_v47  ;;  %vm1938_vm12 = vcmp.eq.s32.totalorder %v7211_v33, %v8551_v0  ;;  %v1314_v47 = vsel %vm1300_vm11, %v8445_v38, 0.0  ;;  %vm1910_vm14 = vcmp.eq.s32.totalorder %v7211_v33, %v8565_v35  ;;  %v8613_v24 = vrot.slane %v7837_v14, %v7236_v60 }
 0x1b7   : > { %4870 = vmatprep.mubr.f32.mxu0 %v10280_v48  ;;  %6702 = vmatpush1.msk.msra.mxu0 %vm649_vm6, %v8357_v7  ;;  %v8617_v37 = vrot.slane %v7907_v12, %v7236_v60  ;;  %v1285_v38 = vsel %vm1271_vm7, %v8496_v19, 0.0  ;;  %v8631_v15 = vrot.slane %v7848_v59, %v7236_v60  ;;  %vm1939_vm15 = vcmp.eq.s32.totalorder %v7211_v33, %v8580_v42  ;;  %p7014_p3 = por %p7013_p2, %p7012_p1 }
 0x1b8   : > { %6680 = vmatmul.mubr.msk.f32.gmra.mrb[76].mxu1 %vm639_vm13, %v8620_v16  ;;  %6879 = vmatprep.subr.bf16.mxu0 %v8342_v55  ;;  %vm1940_vm2 = vcmp.eq.s32.totalorder %v7221_v52, %v8551_v0  ;;  %v1315_v60 = vsel %vm1301_vm9, %v8467_v63, 0.0  ;;  %v1952_v36 = vsel %vm1938_vm12, %v8590_v44, 0.0  ;;  %vm1911_vm4 = vcmp.eq.s32.totalorder %v7211_v33, %v8594_v31 }
 0x1b9   : > { %4730 = vmatprep.mubr.f32.mxu1 %v10280_v48  ;;  %v8655_v13 = vadd.f32 %v1313_v34, %v1285_v38  ;;  %v8657_v9 = vadd.f32 %v1314_v47, %v1286_v20  ;;  %vm1912_vm1 = vcmp.eq.s32.totalorder %v7221_v52, %v8565_v35  ;;  %v1287_v29 = vsel %vm1273_vm3, %v8496_v19, 0.0  ;;  %p7015_p5 = pnand %p7014_p3, %p7008_p0 }
 0x1ba   : > { %6695 = vmatmul.mubr.msk.f32.gmra.mrb[82].mxu0 %vm639_vm13, %v8301_v54  ;;  %v1924_v17 = vsel %vm1910_vm14, %v8613_v24, 0.0  ;;  %v1953_v63 = vsel %vm1939_vm15, %v8617_v37, 0.0  ;;  %v1954_v39 = vsel %vm1940_vm2, %v8590_v44, 0.0  ;;  %v8673_v34 = vadd.f32 %v1315_v60, %v1287_v29 }
 0x1bb   : > { %5244 = vmatprep.mubr.f32.mxu0 %v10280_v48  ;;  %v8675_v47 = vadd.f32 %v1952_v36, %v1924_v17  ;;  %v1925_v38 = vsel %vm1911_vm4, %v8631_v15, 0.0  ;;  %vm1913_vm8 = vcmp.eq.s32.totalorder %v7221_v52, %v8594_v31  ;;  %v7086_v50 = vmov 1966171168  }
 0x1bc   : > { %6688 = vmatmul.mubr.msk.f32.vlgmr.msra.gmra.mrb[78].mxu1 %vm639_vm13, %v8338_v5  ;;  %v767_v19 = vunpack.c.l.s4 %v7086_v50  ;;  %v1926_v20 = vsel %vm1912_vm1, %v8613_v24, 0.0  ;;  %vm1941_vm5 = vcmp.eq.s32.totalorder %v7221_v52, %v8580_v42  ;;  %v8688_v36 = vrot.slane %v7901_v43, %v7358_v10 }
 0x1bd   : > { %6869 = vmatpush1.bf16.msra.mxu1 %v8097_v26  ;;  %v8693_v26 = vadd.f32 %v1953_v63, %v1925_v38  ;;  %v8695_v60 = vadd.f32 %v1954_v39, %v1926_v20  ;;  %v8699_v29 = vrot.slane %v7922_v8, %v7358_v10  ;;  %4736 = vmatprep.mubr.f32.mxu1 %v10280_v48  ;;  %v1927_v17 = vsel %vm1913_vm8, %v8631_v15, 0.0 }
 0x1be   : > { %6703 = vmatmul.mubr.msk.f32.vlgmr.msra.gmra.mrb[84].mxu0 %vm639_vm13, %v8348_v18  ;;  %6696 = vmatprep.subr.msk.mxu1 %vm649_vm6, %v8089_v45  ;;  %vm1914_vm7 = vcmp.eq.s32.totalorder %v7245_v2, %v8565_v35  ;;  %vm1942_vm10 = vcmp.eq.s32.totalorder %v7245_v2, %v8551_v0  ;;  %v8710_v45 = vrot.slane %v7828_v27, %v7358_v10  ;;  %v1955_v63 = vsel %vm1941_vm5, %v8617_v37, 0.0 }
 0x1bf   : > { %6881 = vmatpush1.bf16.msra.mxu0 %v8352_v1  ;;  %10285 = vst [vmem:[#allocation22_spill] sm:$0xff] %v8693_v26  ;;  %10286 = vst [vmem:[#allocation23_spill] sm:$0xff] %v8695_v60  ;;  %5250 = vmatprep.mubr.f32.mxu0 %v10280_v48  ;;  %vm1943_vm11 = vcmp.eq.s32.totalorder %v7245_v2, %v8580_v42  ;;  %v8721_v39 = vrot.slane %v7874_v11, %v7358_v10  ;;  %v768_v50 = vunpack.c.0.s8 %v767_v19 }
 0x1c0   : > { %6689 = vmatmul.mubr.msk.f32.gmra.mrb[80].mxu1 %vm639_vm13, %v8389_v25  ;;  %6711 = vmatprep.subr.msk.mxu0 %vm649_vm6, %v8354_v58  ;;  %v8725_v38 = vrot.slane %v7862_v62, %v7358_v10  ;;  %vm1915_vm0 = vcmp.eq.s32.totalorder %v7245_v2, %v8594_v31  ;;  %vm2580_vm3 = vcmp.eq.s32.totalorder %v7211_v33, %v8688_v36  ;;  %v1957_v0 = vsel %vm1943_vm11, %v8617_v37, 0.0 }
 0x1c1   : > { %6697 = vmatpush1.msk.msra.mxu1 %vm649_vm6, %v8107_v53  ;;  %v8737_v20 = vrot.slane %v7907_v12, %v7358_v10  ;;  %4742 = vmatprep.mubr.f32.mxu1 %v10280_v48  ;;  %v1956_v53 = vsel %vm1942_vm10, %v8590_v44, 0.0  ;;  %v2561_v19 = vrot.slane %v7837_v14, %v7358_v10  ;;  %vm2581_vm9 = vcmp.eq.s32.totalorder %v7211_v33, %v8699_v29 }
 0x1c2   : > { %6704 = vmatmul.mubr.msk.f32.gmra.mrb[86].mxu0 %vm639_vm13, %v8404_v51  ;;  %vm2582_vm12 = vcmp.eq.s32.totalorder %v7221_v52, %v8688_v36  ;;  %6875 = vmatprep.subr.bf16.mxu1 %v8342_v55  ;;  %v8754_v60 = vadd.f32 %v1955_v63, %v1927_v17  ;;  %vm2552_vm14 = vcmp.eq.s32.totalorder %v7211_v33, %v8710_v45  ;;  %v1928_v17 = vsel %vm1914_vm7, %v8613_v24, 0.0 }
 0x1c3   : > { %6712 = vmatpush1.msk.msra.mxu0 %vm649_vm6, %v8357_v7  ;;  %5256 = vmatprep.mubr.f32.mxu0 %v10280_v48  ;;  %v8764_v44 = vrot.slane %v7848_v59, %v7358_v10  ;;  %v2594_v42 = vsel %vm2580_vm3, %v8721_v39, 0.0  ;;  %vm2553_vm15 = vcmp.eq.s32.totalorder %v7211_v33, %v8725_v38  ;;  %vm2554_vm2 = vcmp.eq.s32.totalorder %v7221_v52, %v8710_v45 }
 0x1c4   : > { %10287 = vst [vmem:[#allocation24_spill] sm:$0xff] %v8754_v60  ;;  %6690 = vmatmul.mubr.msk.f32.gmra.mrb[82].mxu1 %vm639_vm13, %v8452_v6  ;;  %6887 = vmatprep.subr.bf16.mxu0 %v8377_v41  ;;  %v8784_v10 = vadd.f32 %v1956_v53, %v1928_v17  ;;  %v1929_v35 = vsel %vm1915_vm0, %v8631_v15, 0.0  ;;  %v2595_v24 = vsel %vm2581_vm9, %v8737_v20, 0.0  ;;  %v2596_v37 = vsel %vm2582_vm12, %v8721_v39, 0.0  ;;  %v10291_v60 = vld [vmem:[#allocation14_spill] sm:$0xff] }
 0x1c5   : > { %4986 = vmatprep.mubr.f32.mxu1 %v10280_v48  ;;  %v8800_v63 = vsub.s32 %v768_v50, %v7211_v33  ;;  %v8802_v53 = vadd.f32 %v1957_v0, %v1929_v35  ;;  %v2566_v31 = vsel %vm2552_vm14, %v2561_v19, 0.0  ;;  %vm2583_vm4 = vcmp.eq.s32.totalorder %v7221_v52, %v8699_v29 }
 0x1c6   : > { %6705 = vmatmul.mubr.msk.f32.gmra.mrb[88].mxu0 %vm639_vm13, %v8470_v61  ;;  %10288 = vst [vmem:[#allocation25_spill] sm:$0xff] %v8784_v10  ;;  %v8809_v15 = vadd.f32 %v2594_v42, %v2566_v31  ;;  %v2567_v17 = vsel %vm2553_vm15, %v8764_v44, 0.0  ;;  %v2568_v10 = vsel %vm2554_vm2, %v2561_v19, 0.0  ;;  %v8814_v26 = vrot.slane %v7901_v43, %v10291_v60 }
 0x1c7   : > { %5500 = vmatprep.mubr.f32.mxu0 %v10280_v48  ;;  %10289 = vst [vmem:[#allocation26_spill] sm:$0xff] %v8802_v53  ;;  %v8818_v50 = vadd.f32 %v2595_v24, %v2567_v17  ;;  %v8820_v0 = vadd.f32 %v2596_v37, %v2568_v10  ;;  %vm2555_vm1 = vcmp.eq.s32.totalorder %v7221_v52, %v8725_v38  ;;  %v2597_v35 = vsel %vm2583_vm4, %v8737_v20, 0.0 }
 0x1c8   : > { %10290 = vst [vmem:[#allocation27_spill] sm:$0xff] %v8809_v15  ;;  %6698 = vmatmul.mubr.msk.f32.vlgmr.msra.gmra.mrb[84].mxu1 %vm639_vm13, %v8511_v22  ;;  %v8826_v42 = vrot.slane %v7922_v8, %v10291_v60  ;;  %vm2556_vm8 = vcmp.eq.s32.totalorder %v7245_v2, %v8710_v45  ;;  %vm2584_vm5 = vcmp.eq.s32.totalorder %v7245_v2, %v8688_v36  ;;  %v2569_v31 = vsel %vm2555_vm1, %v8764_v44, 0.0 }
 0x1c9   : > { %10292 = vst [vmem:[#allocation14_spill] sm:$0xff] %v8818_v50  ;;  %10293 = vst [vmem:[#allocation28_spill] sm:$0xff] %v8820_v0  ;;  %6877 = vmatpush1.bf16.msra.mxu1 %v8352_v1  ;;  %v8838_v10 = vrot.slane %v7828_v27, %v10291_v60  ;;  %vm2557_vm7 = vcmp.eq.s32.totalorder %v7245_v2, %v8725_v38  ;;  %v8847_v24 = vrot.slane %v7874_v11, %v10291_v60 }
 0x1ca   : > { %6713 = vmatmul.mubr.msk.f32.vlgmr.msra.gmra.mrb[90].mxu0 %vm639_vm13, %v8189_v30  ;;  %6706 = vmatprep.subr.msk.mxu1 %vm649_vm6, %v8354_v58  ;;  %v8851_v37 = vrot.slane %v7862_v62, %v10291_v60  ;;  %vm2585_vm10 = vcmp.eq.s32.totalorder %v7245_v2, %v8699_v29  ;;  %vm3222_vm11 = vcmp.eq.s32.totalorder %v7211_v33, %v8814_v26  ;;  %v2598_v50 = vsel %vm2584_vm5, %v8721_v39, 0.0 }
 0x1cb   : > { %6889 = vmatpush1.bf16.msra.mxu0 %v8423_v21  ;;  %4992 = vmatprep.mubr.f32.mxu1 %v10280_v48  ;;  %v3235_v17 = vrot.slane %v7907_v12, %v10291_v60  ;;  %v8866_v0 = vadd.f32 %v2597_v35, %v2569_v31  ;;  %v3203_v15 = vrot.slane %v7837_v14, %v10291_v60  ;;  %v2570_v35 = vsel %vm2556_vm8, %v2561_v19, 0.0 }
 0x1cc   : > { %6721 = vmatprep.subr.msk.mxu0 %vm649_vm6, %v8408_v32  ;;  %5506 = vmatprep.mubr.f32.mxu0 %v10280_v48  ;;  %vm3223_vm0 = vcmp.eq.s32.totalorder %v7211_v33, %v8826_v42  ;;  %vm3194_vm3 = vcmp.eq.s32.totalorder %v7211_v33, %v8838_v10  ;;  %v3207_v36 = vrot.slane %v7848_v59, %v10291_v60  ;;  %v2599_v45 = vsel %vm2585_vm10, %v8737_v20, 0.0 }
 0x1cd   : > { %6699 = vmatmul.mubr.msk.f32.gmra.mrb[86].mxu1 %vm639_vm13, %v8568_v40  ;;  %10294 = vst [vmem:[#allocation29_spill] sm:$0xff] %v8866_v0  ;;  %vm3224_vm9 = vcmp.eq.s32.totalorder %v7221_v52, %v8814_v26  ;;  %v3236_v39 = vsel %vm3222_vm11, %v8847_v24, 0.0  ;;  %vm3195_vm12 = vcmp.eq.s32.totalorder %v7211_v33, %v8851_v37  ;;  %vm3196_vm14 = vcmp.eq.s32.totalorder %v7221_v52, %v8838_v10 }
 0x1ce   : > { %6707 = vmatpush1.msk.msra.mxu1 %vm649_vm6, %v8357_v7  ;;  %6714 = vmatmul.mubr.msk.f32.gmra.mrb[92].mxu0 %vm639_vm13, %v8250_v4  ;;  %v3237_v60 = vsel %vm3223_vm0, %v3235_v17, 0.0  ;;  %vm3197_vm15 = vcmp.eq.s32.totalorder %v7221_v52, %v8851_v37  ;;  %vm3225_vm2 = vcmp.eq.s32.totalorder %v7221_v52, %v8826_v42  ;;  %v2571_v29 = vsel %vm2557_vm7, %v8764_v44, 0.0 }
 0x1cf   : > { %6722 = vmatpush1.msk.msra.mxu0 %vm649_vm6, %v8379_v23  ;;  %6883 = vmatprep.subr.bf16.mxu1 %v8342_v55  ;;  %v8906_v55 = vadd.f32 %v2598_v50, %v2570_v35  ;;  %v3208_v20 = vsel %vm3194_vm3, %v3203_v15, 0.0  ;;  %v3238_v19 = vsel %vm3224_vm9, %v8847_v24, 0.0  ;;  %v10296_v50 = vld [vmem:[#allocation15_spill] sm:$0xff]  ;;  %v8936_v38 = vadd.f32 %v2599_v45, %v2571_v29 }
 0x1d0   : > { %6895 = vmatprep.subr.bf16.mxu0 %v8377_v41  ;;  %4998 = vmatprep.mubr.f32.mxu1 %v10280_v48  ;;  %v8931_v31 = vrot.slane %v7901_v43, %v10296_v50  ;;  %v8938_v44 = vadd.f32 %v3236_v39, %v3208_v20  ;;  %v3209_v35 = vsel %vm3195_vm12, %v3207_v36, 0.0  ;;  %v3211_v53 = vsel %vm3197_vm15, %v3207_v36, 0.0 }
 0x1d1   : > { %10295 = vst [vmem:[#allocation30_spill] sm:$0xff] %v8906_v55  ;;  %5512 = vmatprep.mubr.f32.mxu0 %v10280_v48  ;;  %6700 = vmatmul.mubr.msk.f32.gmra.mrb[88].mxu1 %vm639_vm13, %v8620_v16  ;;  %v3210_v55 = vsel %vm3196_vm14, %v3203_v15, 0.0  ;;  %v8947_v0 = vadd.f32 %v3237_v60, %v3209_v35  ;;  %v3239_v45 = vsel %vm3225_vm2, %v3235_v17, 0.0  ;;  %v8957_v39 = vrot.slane %v7828_v27, %v10296_v50 }
 0x1d2   : > { %6715 = vmatmul.mubr.msk.f32.gmra.mrb[94].mxu0 %vm639_vm13, %v8301_v54  ;;  %5372 = vmatprep.mubr.f32.mxu1 %v10280_v48  ;;  %v8959_v29 = vadd.f32 %v3238_v19, %v3210_v55  ;;  %vm3226_vm4 = vcmp.eq.s32.totalorder %v7245_v2, %v8814_v26  ;;  %vm3227_vm1 = vcmp.eq.s32.totalorder %v7245_v2, %v8826_v42 }
 0x1d3   : > { %5886 = vmatprep.mubr.f32.mxu0 %v10280_v48  ;;  %v3873_v60 = vrot.slane %v7874_v11, %v10296_v50  ;;  %vm3198_vm8 = vcmp.eq.s32.totalorder %v7245_v2, %v8838_v10  ;;  %vm3864_vm5 = vcmp.eq.s32.totalorder %v7211_v33, %v8931_v31  ;;  %v8975_v55 = vrot.slane %v7862_v62, %v10296_v50 }
 0x1d4   : > { %v8979_v26 = vrot.slane %v7922_v8, %v10296_v50  ;;  %v8984_v42 = vadd.f32 %v3239_v45, %v3211_v53  ;;  %vm3199_vm7 = vcmp.eq.s32.totalorder %v7245_v2, %v8851_v37  ;;  %v3845_v20 = vrot.slane %v7837_v14, %v10296_v50 }
 0x1d5   : > { %6708 = vmatmul.mubr.msk.f32.vlgmr.msra.gmra.mrb[90].mxu1 %vm639_vm13, %v8338_v5  ;;  %v3240_v19 = vsel %vm3226_vm4, %v8847_v24, 0.0  ;;  %v3241_v35 = vsel %vm3227_vm1, %v3235_v17, 0.0  ;;  %vm3836_vm10 = vcmp.eq.s32.totalorder %v7211_v33, %v8957_v39  ;;  %vm3866_vm11 = vcmp.eq.s32.totalorder %v7221_v52, %v8931_v31 }
 0x1d6   : > { %6885 = vmatpush1.bf16.msra.mxu1 %v8352_v1  ;;  %6723 = vmatmul.mubr.msk.f32.vlgmr.msra.gmra.mrb[96].mxu0 %vm639_vm13, %v8348_v18  ;;  %v3212_v18 = vsel %vm3198_vm8, %v3203_v15, 0.0  ;;  %v3878_v1 = vsel %vm3864_vm5, %v3873_v60, 0.0  ;;  %v3877_v53 = vrot.slane %v7907_v12, %v10296_v50  ;;  %v3213_v10 = vsel %vm3199_vm7, %v3207_v36, 0.0 }
 0x1d7   : > { %6897 = vmatpush1.bf16.msra.mxu0 %v8423_v21  ;;  %6716 = vmatprep.subr.msk.mxu1 %vm649_vm6, %v8354_v58  ;;  %v3849_v58 = vrot.slane %v7848_v59, %v10296_v50  ;;  %vm3837_vm0 = vcmp.eq.s32.totalorder %v7211_v33, %v8975_v55  ;;  %vm3865_vm3 = vcmp.eq.s32.totalorder %v7211_v33, %v8979_v26  ;;  %v3850_v37 = vsel %vm3836_vm10, %v3845_v20, 0.0 }
 0x1d8   : > { %6731 = vmatprep.subr.msk.mxu0 %vm649_vm6, %v8408_v32  ;;  %5378 = vmatprep.mubr.f32.mxu1 %v10280_v48  ;;  %vm3838_vm9 = vcmp.eq.s32.totalorder %v7221_v52, %v8957_v39  ;;  %v9027_v15 = vadd.f32 %v3240_v19, %v3212_v18  ;;  %v9029_v24 = vadd.f32 %v3241_v35, %v3213_v10  ;;  %v3880_v17 = vsel %vm3866_vm11, %v3873_v60, 0.0 }
 0x1d9   : > { %5892 = vmatprep.mubr.f32.mxu0 %v10280_v48  ;;  %6709 = vmatmul.mubr.msk.f32.gmra.mrb[92].mxu1 %vm639_vm13, %v8389_v25  ;;  %vm3839_vm12 = vcmp.eq.s32.totalorder %v7221_v52, %v8975_v55  ;;  %v3851_v50 = vsel %vm3837_vm0, %v3849_v58, 0.0  ;;  %v3879_v45 = vsel %vm3865_vm3, %v3877_v53, 0.0  ;;  %v3852_v19 = vsel %vm3838_vm9, %v3845_v20, 0.0 }
 0x1da   : > { %6717 = vmatpush1.msk.msra.mxu1 %vm649_vm6, %v8357_v7  ;;  %6724 = vmatmul.mubr.msk.f32.gmra.mrb[98].mxu0 %vm639_vm13, %v8404_v51  ;;  %v9040_v7 = vadd.f32 %v3878_v1, %v3850_v37  ;;  %v10297_v51 = vld [vmem:[#allocation16_spill] sm:$0xff]  ;;  %vm3867_vm14 = vcmp.eq.s32.totalorder %v7221_v52, %v8979_v26  ;;  %v9063_v35 = vadd.f32 %v3880_v17, %v3852_v19  ;;  %v3853_v10 = vsel %vm3839_vm12, %v3849_v58, 0.0 }
 0x1db   : > { %6732 = vmatpush1.msk.msra.mxu0 %vm649_vm6, %v8379_v23  ;;  %6891 = vmatprep.subr.bf16.mxu1 %v8377_v41  ;;  %v9046_v36 = vrot.slane %v7901_v43, %v10297_v51  ;;  %vm3868_vm15 = vcmp.eq.s32.totalorder %v7245_v2, %v8931_v31  ;;  %v9069_v18 = vrot.slane %v7828_v27, %v10297_v51  ;;  %v3881_v19 = vsel %vm3867_vm14, %v3877_v53, 0.0 }
 0x1dc   : > { %5384 = vmatprep.mubr.f32.mxu1 %v10280_v48  ;;  %5898 = vmatprep.mubr.f32.mxu0 %v10280_v48  ;;  %10298 = vst [vmem:[#allocation15_spill] sm:$0xff] %v9063_v35  ;;  %v9073_v1 = vrot.slane %v7922_v8, %v10297_v51  ;;  %vm3840_vm2 = vcmp.eq.s32.totalorder %v7245_v2, %v8957_v39 }
 0x1dd   : > { %6710 = vmatmul.mubr.msk.f32.gmra.mrb[94].mxu1 %vm639_vm13, %v8452_v6  ;;  %v9082_v31 = vrot.slane %v7874_v11, %v10297_v51  ;;  %v9086_v37 = vrot.slane %v7862_v62, %v10297_v51  ;;  %v9089_v17 = vadd.f32 %v3879_v45, %v3851_v50  ;;  %vm3869_vm4 = vcmp.eq.s32.totalorder %v7245_v2, %v8979_v26 }
 0x1de   : > { %6725 = vmatmul.mubr.msk.f32.gmra.mrb[100].mxu0 %vm639_vm13, %v8470_v61  ;;  %5628 = vmatprep.mubr.f32.mxu1 %v10280_v48  ;;  %vm4506_vm1 = vcmp.eq.s32.totalorder %v7211_v33, %v9046_v36  ;;  %v3882_v61 = vsel %vm3868_vm15, %v3873_v60, 0.0  ;;  %vm3841_vm8 = vcmp.eq.s32.totalorder %v7245_v2, %v8975_v55  ;;  %v9099_v39 = vrot.slane %v7837_v14, %v10297_v51 }
 0x1df   : > { %6142 = vmatprep.mubr.f32.mxu0 %v10280_v48  ;;  %10299 = vst [vmem:[#allocation16_spill] sm:$0xff] %v9089_v17  ;;  %v4519_v35 = vrot.slane %v7907_v12, %v10297_v51  ;;  %v3854_v50 = vsel %vm3840_vm2, %v3845_v20, 0.0  ;;  %vm4478_vm5 = vcmp.eq.s32.totalorder %v7211_v33, %v9069_v18  ;;  %v4491_v60 = vrot.slane %v7848_v59, %v10297_v51 }
 0x1e0   : > { %vm4507_vm7 = vcmp.eq.s32.totalorder %v7211_v33, %v9073_v1  ;;  %v3883_v26 = vsel %vm3869_vm4, %v3877_v53, 0.0  ;;  %v4520_v45 = vsel %vm4506_vm1, %v9082_v31, 0.0  ;;  %vm4479_vm10 = vcmp.eq.s32.totalorder %v7211_v33, %v9086_v37 }
 0x1e1   : > { %6718 = vmatmul.mubr.msk.f32.vlgmr.msra.gmra.mrb[96].mxu1 %vm639_vm13, %v8511_v22  ;;  %vm4508_vm11 = vcmp.eq.s32.totalorder %v7221_v52, %v9046_v36  ;;  %v9122_v20 = vadd.f32 %v3881_v19, %v3853_v10  ;;  %v9124_v51 = vadd.f32 %v3882_v61, %v3854_v50  ;;  %vm4480_vm0 = vcmp.eq.s32.totalorder %v7221_v52, %v9069_v18 }
 0x1e2   : > { %6893 = vmatpush1.bf16.msra.mxu1 %v8423_v21  ;;  %6733 = vmatmul.mubr.msk.f32.vlgmr.msra.gmra.mrb[102].mxu0 %vm639_vm13, %v8189_v30  ;;  %v3855_v30 = vsel %vm3841_vm8, %v3849_v58, 0.0  ;;  %v4492_v53 = vsel %vm4478_vm5, %v9099_v39, 0.0  ;;  %v4521_v17 = vsel %vm4507_vm7, %v4519_v35, 0.0  ;;  %vm4509_vm3 = vcmp.eq.s32.totalorder %v7221_v52, %v9073_v1 }
 0x1e3   : > { %6726 = vmatprep.subr.msk.mxu1 %vm649_vm6, %v8408_v32  ;;  %5634 = vmatprep.mubr.f32.mxu1 %v10280_v48  ;;  %v9140_v10 = vrot.slane %v7901_v43, %v7779_v3  ;;  %v9144_v55 = vadd.f32 %v3883_v26, %v3855_v30  ;;  %v9146_v58 = vadd.f32 %v4520_v45, %v4492_v53  ;;  %v4493_v19 = vsel %vm4479_vm10, %v4491_v60, 0.0  ;;  %v10302_v53 = vld [vmem:[#allocation9_spill] sm:$0xff] }
 0x1e4   : > { %6148 = vmatprep.mubr.f32.mxu0 %v10280_v48  ;;  %v4522_v61 = vsel %vm4508_vm11, %v9082_v31, 0.0  ;;  %v4494_v43 = vsel %vm4480_vm0, %v9099_v39, 0.0  ;;  %vm4481_vm9 = vcmp.eq.s32.totalorder %v7221_v52, %v9086_v37  ;;  %v9164_v50 = vrot.slane %v7828_v27, %v7779_v3 }
 0x1e5   : > { %6719 = vmatmul.mubr.msk.f32.gmra.mrb[98].mxu1 %vm639_vm13, %v8568_v40  ;;  %v9168_v26 = vrot.slane %v7922_v8, %v7779_v3  ;;  %v9172_v45 = vadd.f32 %v4521_v17, %v4493_v19  ;;  %v9179_v30 = vrot.slane %v7874_v11, %v7779_v3  ;;  %v9183_v27 = vrot.slane %v7862_v62, %v7779_v3  ;;  %v10301_v17 = vld [vmem:[#allocation17_spill] sm:$0xff] }
 0x1e6   : > { %6727 = vmatpush1.msk.msra.mxu1 %vm649_vm6, %v8379_v23  ;;  %6734 = vmatmul.mubr.msk.f32.gmra.mrb[104].mxu0 %vm639_vm13, %v8250_v4  ;;  %v4523_v4 = vsel %vm4509_vm3, %v4519_v35, 0.0  ;;  %v9186_v8 = vadd.f32 %v4522_v61, %v4494_v43  ;;  %vm4510_vm12 = vcmp.eq.s32.totalorder %v7245_v2, %v9046_v36  ;;  %vm4511_vm14 = vcmp.eq.s32.totalorder %v7245_v2, %v9073_v1  ;;  %v10307_v43 = vld [vmem:[#allocation13_spill] sm:$0xff] }
 0x1e7   : > { %6899 = vmatprep.subr.bf16.mxu1 %v8377_v41  ;;  %5640 = vmatprep.mubr.f32.mxu1 %v10280_v48  ;;  %vm5148_vm15 = vcmp.eq.s32.totalorder %v7211_v33, %v9140_v10  ;;  %vm4482_vm2 = vcmp.eq.s32.totalorder %v7245_v2, %v9069_v18  ;;  %vm4483_vm4 = vcmp.eq.s32.totalorder %v7245_v2, %v9086_v37  ;;  %v4495_v41 = vsel %vm4481_vm9, %v4491_v60, 0.0 }
 0x1e8   : > { %6154 = vmatprep.mubr.f32.mxu0 %v10280_v48  ;;  %v9202_v62 = vrot.slane %v7837_v14, %v7779_v3  ;;  %v5161_v11 = vrot.slane %v7907_v12, %v7779_v3  ;;  %vm5120_vm1 = vcmp.eq.s32.totalorder %v7211_v33, %v9164_v50  ;;  %v5133_v36 = vrot.slane %v7848_v59, %v7779_v3 }
 0x1e9   : > { %6720 = vmatmul.mubr.msk.f32.gmra.mrb[100].mxu1 %vm639_vm13, %v8620_v16  ;;  %vm5149_vm8 = vcmp.eq.s32.totalorder %v7211_v33, %v9168_v26  ;;  %v4524_v12 = vsel %vm4510_vm12, %v9082_v31, 0.0  ;;  %v4525_v14 = vsel %vm4511_vm14, %v4519_v35, 0.0  ;;  %vm5121_vm5 = vcmp.eq.s32.totalorder %v7211_v33, %v9183_v27 }
 0x1ea   : > { %6735 = vmatmul.mubr.msk.f32.gmra.mrb[106].mxu0 %vm639_vm13, %v8301_v54  ;;  %6014 = vmatprep.mubr.f32.mxu1 %v10280_v48  ;;  %v5162_v54 = vsel %vm5148_vm15, %v9179_v30, 0.0  ;;  %v9223_v1 = vadd.f32 %v4523_v4, %v4495_v41  ;;  %v4496_v3 = vsel %vm4482_vm2, %v9099_v39, 0.0  ;;  %v4497_v59 = vsel %vm4483_vm4, %v4491_v60, 0.0 }
 0x1eb   : > { %6418 = vmatprep.mubr.f32.mxu0 %v10280_v48  ;;  %vm5150_vm7 = vcmp.eq.s32.totalorder %v7221_v52, %v9140_v10  ;;  %v5134_v35 = vsel %vm5120_vm1, %v9202_v62, 0.0  ;;  %v5163_v31 = vsel %vm5149_vm8, %v5161_v11, 0.0  ;;  %vm5122_vm10 = vcmp.eq.s32.totalorder %v7221_v52, %v9164_v50 }
 0x1ec   : > { %10300 = vst [vmem:[#allocation31_spill] sm:$0xff] %v9223_v1  ;;  %v9241_v18 = vrot.slane %v10302_v53, %v10301_v17  ;;  %v9245_v37 = vadd.f32 %v4524_v12, %v4496_v3  ;;  %v9247_v39 = vadd.f32 %v4525_v14, %v4497_v59  ;;  %v9249_v60 = vadd.f32 %v5162_v54, %v5134_v35  ;;  %v10310_v54 = vld [vmem:[#allocation11_spill] sm:$0xff] }
 0x1ed   : > { %6728 = vmatmul.mubr.msk.f32.vlgmr.msra.gmra.mrb[102].mxu1 %vm639_vm13, %v8338_v5  ;;  %v5135_v5 = vsel %vm5121_vm5, %v5133_v36, 0.0  ;;  %v5164_v19 = vsel %vm5150_vm7, %v9179_v30, 0.0  ;;  %vm5151_vm11 = vcmp.eq.s32.totalorder %v7221_v52, %v9168_v26  ;;  %v9265_v4 = vrot.slane %v10307_v43, %v10301_v17 }
 0x1ee   : > { %6901 = vmatpush1.bf16.msra.mxu1 %v8423_v21  ;;  %6020 = vmatprep.mubr.f32.mxu1 %v10280_v48  ;;  %10303 = vst [vmem:[#allocation17_spill] sm:$0xff] %v9245_v37  ;;  %10304 = vst [vmem:[#allocation9_spill] sm:$0xff] %v9247_v39  ;;  %v10306_v21 = vld [vmem:[#allocation6_spill] sm:$0xff]  ;;  %v9267_v41 = vadd.f32 %v5163_v31, %v5135_v5  ;;  %v5136_v12 = vsel %vm5122_vm10, %v9202_v62, 0.0  ;;  %vm5123_vm0 = vcmp.eq.s32.totalorder %v7221_v52, %v9183_v27 }
 0x1ef   : > { %10305 = vst [vmem:[#allocation32_spill] sm:$0xff] %v9249_v60  ;;  %6736 = vmatprep.subr.msk.mxu1 %vm649_vm6, %v8408_v32  ;;  %v9261_v61 = vrot.slane %v10306_v21, %v10301_v17  ;;  %v10309_v32 = vld [vmem:[#allocation8_spill] sm:$0xff]  ;;  %vm5152_vm3 = vcmp.eq.s32.totalorder %v7245_v2, %v9140_v10  ;;  %vm5153_vm9 = vcmp.eq.s32.totalorder %v7245_v2, %v9168_v26  ;;  %v10312_v10 = vld [vmem:[#allocation7_spill] sm:$0xff]  ;;  %v10314_v21 = vld [vmem:[#allocation10_spill] sm:$0xff] }
 0x1f0   : > { %10308 = vst [vmem:[#allocation6_spill] sm:$0xff] %v9267_v41  ;;  %v9274_v14 = vrot.slane %v10309_v32, %v10301_v17  ;;  %vm5790_vm12 = vcmp.eq.s32.totalorder %v7211_v33, %v9241_v18  ;;  %v9286_v3 = vrot.slane %v10310_v54, %v10301_v17  ;;  %v9291_v59 = vadd.f32 %v5164_v19, %v5136_v12  ;;  %v10313_v26 = vld [vmem:[#allocation12_spill] sm:$0xff] }
 0x1f1   : > { %6729 = vmatmul.mubr.msk.f32.gmra.mrb[104].mxu1 %vm639_vm13, %v8389_v25  ;;  %v5165_v25 = vsel %vm5151_vm11, %v5161_v11, 0.0  ;;  %v9295_v35 = vrot.slane %v10312_v10, %v10301_v17  ;;  %v9299_v31 = vrot.slane %v10313_v26, %v10301_v17  ;;  %vm5124_vm14 = vcmp.eq.s32.totalorder %v7245_v2, %v9164_v50 }
 0x1f2   : > { %6737 = vmatpush1.msk.msra.mxu1 %vm649_vm6, %v8379_v23  ;;  %6026 = vmatprep.mubr.f32.mxu1 %v10280_v48  ;;  %10311 = vst [vmem:[#allocation13_spill] sm:$0xff] %v9291_v59  ;;  %vm5125_vm15 = vcmp.eq.s32.totalorder %v7245_v2, %v9183_v27  ;;  %vm5762_vm2 = vcmp.eq.s32.totalorder %v7211_v33, %v9261_v61  ;;  %v5166_v53 = vsel %vm5152_vm3, %v9179_v30, 0.0  ;;  %v5167_v5 = vsel %vm5153_vm9, %v5161_v11, 0.0 }
 0x1f3   : > { %vm5791_vm4 = vcmp.eq.s32.totalorder %v7211_v33, %v9265_v4  ;;  %v722_v23 = vpop.f32.mrb[0].mxu1  ;;  %v5804_v19 = vsel %vm5790_vm12, %v9274_v14, 0.0  ;;  %v9313_v43 = vrot.slane %v10314_v21, %v10301_v17  ;;  %v5137_v54 = vsel %vm5123_vm0, %v5133_v36, 0.0 }
 0x1f4   : > { %v999_v12 = vpop.f32.mrb[6].mxu0  ;;  %v724_v32 = vpop.f32.mrb[1].mxu1  ;;  %vm5763_vm1 = vcmp.eq.s32.totalorder %v7211_v33, %v9286_v3  ;;  %vm5764_vm8 = vcmp.eq.s32.totalorder %v7221_v52, %v9261_v61  ;;  %vm5792_vm5 = vcmp.eq.s32.totalorder %v7221_v52, %v9241_v18  ;;  %v5139_v11 = vsel %vm5125_vm15, %v5133_v36, 0.0  ;;  %v10319_v33 = vld [vmem:[#allocation18_spill] sm:$0xff] }
 0x1f5   : > { %6730 = vmatmul.mubr.msk.f32.gmra.mrb[106].mxu1 %vm639_vm13, %v8452_v6  ;;  %v1001_v30 = vpop.f32.mrb[7].mxu0  ;;  %v5138_v6 = vsel %vm5124_vm14, %v9202_v62, 0.0  ;;  %v5776_v17 = vsel %vm5762_vm2, %v9295_v35, 0.0  ;;  %v5805_v10 = vsel %vm5791_vm4, %v9299_v31, 0.0  ;;  %v9342_v26 = vadd.f32 %v5165_v25, %v5137_v54 }
 0x1f6   : > { %6270 = vmatprep.mubr.f32.mxu1 %v10280_v48  ;;  %v9344_v21 = vadd.f32 %v5166_v53, %v5138_v6  ;;  %v9346_v50 = vadd.f32 %v5167_v5, %v5139_v11  ;;  %v9348_v62 = vadd.f32 %v5804_v19, %v5776_v17  ;;  %v5777_v36 = vsel %vm5763_vm1, %v9313_v43, 0.0 }
 0x1f7   : > { %10315 = vst [vmem:[#allocation8_spill] sm:$0xff] %v9342_v26  ;;  %v728_v27 = vpop.f32.mrb[2].mxu1  ;;  %v5778_v59 = vsel %vm5764_vm8, %v9295_v35, 0.0  ;;  %v5806_v41 = vsel %vm5792_vm5, %v9274_v14, 0.0  ;;  %vm5793_vm7 = vcmp.eq.s32.totalorder %v7221_v52, %v9265_v4  ;;  %v739_v60 = vmul.f32 %v722_v23, %v10319_v33 }
 0x1f8   : > { %10316 = vst [vmem:[#allocation11_spill] sm:$0xff] %v9344_v21  ;;  %10317 = vst [vmem:[#allocation7_spill] sm:$0xff] %v9346_v50  ;;  %v741_v25 = vmul.f32 %v728_v27, %v8500_v56  ;;  %v730_v54 = vpop.f32.mrb[3].mxu1  ;;  %v9359_v5 = vadd.f32 %v5805_v10, %v5777_v36  ;;  %vm5765_vm10 = vcmp.eq.s32.totalorder %v7221_v52, %v9286_v3  ;;  %v5807_v10 = vsel %vm5793_vm7, %v9299_v31, 0.0 }
 0x1f9   : > { %10318 = vst [vmem:[#allocation12_spill] sm:$0xff] %v9348_v62  ;;  %v1005_v53 = vpop.f32.mrb[8].mxu0  ;;  %6738 = vmatmul.mubr.msk.f32.vlgmr.msra.gmra.mrb[108].mxu1 %vm639_vm13, %v8511_v22  ;;  %v1016_v19 = vmul.f32 %v999_v12, %v10319_v33  ;;  %v740_v6 = vmul.f32 %v724_v32, %v8393_v57  ;;  %v742_v23 = vmul.f32 %v730_v54, %v8502_v46  ;;  %vm10360_vm14 = vcmask 293888  }
 0x1fa   : > { %10320 = vst [vmem:[#allocation10_spill] sm:$0xff] %v9359_v5  ;;  %v1018_v11 = vmul.f32 %v1005_v53, %v8500_v56  ;;  %v1007_v17 = vpop.f32.mrb[9].mxu0  ;;  %6276 = vmatprep.mubr.f32.mxu1 %v10280_v48  ;;  %v1017_v27 = vmul.f32 %v1001_v30, %v8393_v57  ;;  %v745_v62 = vadd.f32 %v741_v25, %v739_v60  ;;  %v5779_v25 = vsel %vm5765_vm10, %v9313_v43, 0.0 }
 0x1fb   : > { %v1019_v22 = vmul.f32 %v1007_v17, %v8502_v46  ;;  %v754_v36 = vadd.f32 %v742_v23, %v740_v6  ;;  %v734_v32 = vpop.f32.mrb[4].mxu1  ;;  %v9374_v5 = vadd.f32 %v5806_v41, %v5778_v59  ;;  %vm5794_vm11 = vcmp.eq.s32.totalorder %v7245_v2, %v9241_v18 }
 0x1fc   : > { %v1022_v12 = vadd.f32 %v1018_v11, %v1016_v19  ;;  %v743_v54 = vmul.f32 %v734_v32, %v8526_v49  ;;  %v736_v60 = vpop.f32.mrb[5].mxu1  ;;  %vm5795_vm0 = vcmp.eq.s32.totalorder %v7245_v2, %v9265_v4  ;;  %v9390_v6 = vadd.f32 %v5807_v10, %v5779_v25 }
 0x1fd   : > { %10321 = vst [vmem:[#allocation18_spill] sm:$0xff] %v9374_v5  ;;  %v1031_v53 = vadd.f32 %v1019_v22, %v1017_v27  ;;  %v1011_v30 = vpop.f32.mrb[10].mxu0  ;;  %6739 = vmatmul.mubr.msk.f32.gmra.mrb[110].mxu1 %vm639_vm13, %v8568_v40  ;;  %v744_v59 = vmul.f32 %v736_v60, %v8528_v28  ;;  %vm5766_vm3 = vcmp.eq.s32.totalorder %v7245_v2, %v9261_v61  ;;  %v5808_v4 = vsel %vm5794_vm11, %v9274_v14, 0.0  ;;  %v10325_v61 = vld [vmem:[#allocation19_spill] sm:$0xff] }
 0x1fe   : > { %v1020_v41 = vmul.f32 %v1011_v30, %v8526_v49  ;;  %v1013_v19 = vpop.f32.mrb[11].mxu0  ;;  %6282 = vmatprep.mubr.f32.mxu1 %v10280_v48  ;;  %10322 = vst [vmem:[#allocation33_spill] sm:$0xff] %v9390_v6  ;;  %v746_v40 = vsel %vm649_vm6, %v743_v54, 0.0  ;;  %vm5767_vm9 = vcmp.eq.s32.totalorder %v7245_v2, %v9286_v3  ;;  %v5809_v27 = vsel %vm5795_vm0, %v9299_v31, 0.0 }
 0x1ff   : > { %v1021_v52 = vmul.f32 %v1013_v19, %v8528_v28  ;;  %v747_v11 = vadd.f32 %v746_v40, %v745_v62  ;;  %v755_v23 = vsel %vm649_vm6, %v744_v59, 0.0  ;;  %v862_v17 = vpop.f32.mrb[6].mxu1  ;;  %v5780_v18 = vsel %vm5766_vm3, %v9295_v35, 0.0 }
 0x200   : > { %v1023_v48 = vsel %vm649_vm6, %v1020_v41, 0.0  ;;  %v756_v10 = vadd.f32 %v755_v23, %v754_v36  ;;  %v864_v30 = vpop.f32.mrb[7].mxu1  ;;  %v9412_v25 = vadd.f32 %v5808_v4, %v5780_v18  ;;  %v5781_v31 = vsel %vm5767_vm9, %v9313_v43, 0.0 }
 0x201   : > { %v1024_v22 = vadd.f32 %v1023_v48, %v1022_v12  ;;  %v1032_v32 = vsel %vm649_vm6, %v1021_v52, 0.0  ;;  %v1394_v54 = vpop.f32.mrb[12].mxu0  ;;  %6740 = vmatmul.mubr.msk.f32.gmra.mrb[112].mxu1 %vm639_vm13, %v8620_v16  ;;  %v748_v14 = vrot.slane %v747_v11, 4  ;;  %v879_v41 = vmul.f32 %v862_v17, %v10319_v33  ;;  %v10326_v48 = vld [vmem:[#allocation20_spill] sm:$0xff]  ;;  %v10327_v17 = vld [vmem:[#allocation21_spill] sm:$0xff] }
 0x202   : > { %v1033_v62 = vadd.f32 %v1032_v32, %v1031_v53  ;;  %v1396_v60 = vpop.f32.mrb[13].mxu0  ;;  %10323 = vst [vmem:[#allocation34_spill] sm:$0xff] %v9412_v25  ;;  %v757_v36 = vrot.slane %v756_v10, 4  ;;  %v9419_v16 = vadd.f32 %v5809_v27, %v5781_v31  ;;  %v1411_v35 = vmul.f32 %v1394_v54, %v10325_v61 }
 0x203   : > { %v1025_v12 = vrot.slane %v1024_v22, 4  ;;  %v749_v59 = vadd.f32 %v748_v14, %v747_v11  ;;  %v880_v53 = vmul.f32 %v864_v30, %v8393_v57  ;;  %v868_v40 = vpop.f32.mrb[8].mxu1  ;;  %v1412_v23 = vmul.f32 %v1396_v60, %v10326_v48 }
 0x204   : > { %10324 = vst [vmem:[#allocation35_spill] sm:$0xff] %v9419_v16  ;;  %v1034_v19 = vrot.slane %v1033_v62, 4  ;;  %v758_v4 = vadd.f32 %v757_v36, %v756_v10  ;;  %v881_v2 = vmul.f32 %v868_v40, %v8500_v56  ;;  %v870_v43 = vpop.f32.mrb[9].mxu1 }
 0x205   : > { %v1026_v52 = vadd.f32 %v1025_v12, %v1024_v22  ;;  %v1400_v3 = vpop.f32.mrb[14].mxu0  ;;  %v750_v32 = vrot.slane %v749_v59, 2  ;;  %v882_v11 = vmul.f32 %v870_v43, %v8502_v46  ;;  %v10328_v43 = vlaneseq }
 0x206   : > { %v1035_v18 = vadd.f32 %v1034_v19, %v1033_v62  ;;  %v1413_v27 = vmul.f32 %v1400_v3, %v10327_v17  ;;  %v1402_v14 = vpop.f32.mrb[15].mxu0  ;;  %v759_v54 = vrot.slane %v758_v4, 2  ;;  %v885_v16 = vadd.f32 %v881_v2, %v879_v41 }
 0x207   : > { %v1027_v31 = vrot.slane %v1026_v52, 2  ;;  %v1414_v30 = vmul.f32 %v1402_v14, %v8655_v13  ;;  %v751_v22 = vadd.f32 %v750_v32, %v749_v59  ;;  %v894_v60 = vadd.f32 %v882_v11, %v880_v53  ;;  %v874_v36 = vpop.f32.mrb[10].mxu1 }
 0x208   : > { %v1036_v10 = vrot.slane %v1035_v18, 2  ;;  %v1417_v12 = vadd.f32 %v1413_v27, %v1411_v35  ;;  %v760_v25 = vadd.f32 %v759_v54, %v758_v4  ;;  %v883_v62 = vmul.f32 %v874_v36, %v8526_v49  ;;  %v876_v3 = vpop.f32.mrb[11].mxu1 }
 0x209   : > { %v1028_v40 = vadd.f32 %v1027_v31, %v1026_v52  ;;  %v1426_v6 = vadd.f32 %v1414_v30, %v1412_v23  ;;  %v1406_v19 = vpop.f32.mrb[16].mxu0  ;;  %v752_v5 = vrot.slane %v751_v22, 1  ;;  %vm9430_vm13 = vcmp.lt.s32.totalorder %v10328_v43, 256 }
 0x20a   : > { %v1037_v41 = vadd.f32 %v1036_v10, %v1035_v18  ;;  %v1415_v59 = vmul.f32 %v1406_v19, %v8657_v9  ;;  %v884_v35 = vmul.f32 %v876_v3, %v8528_v28  ;;  %v1408_v53 = vpop.f32.mrb[17].mxu0  ;;  %v761_v52 = vrot.slane %v760_v25, 1 }
 0x20b   : > { %v1029_v2 = vrot.slane %v1028_v40, 1  ;;  %v886_v4 = vsel %vm649_vm6, %v883_v62, 0.0  ;;  %v1416_v23 = vmul.f32 %v1408_v53, %v8673_v34  ;;  %v753_v32 = vadd.f32 %v752_v5, %v751_v22  ;;  %v1136_v31 = vpop.f32.mrb[12].mxu1 }
 0x20c   : > { %v1038_v27 = vrot.slane %v1037_v41, 1  ;;  %v887_v11 = vadd.f32 %v886_v4, %v885_v16  ;;  %v1418_v14 = vsel %vm649_vm6, %v1415_v59, 0.0  ;;  %v762_v30 = vadd.f32 %v761_v52, %v760_v25  ;;  %v1138_v19 = vpop.f32.mrb[13].mxu1 }
 0x20d   : > { %v1030_v54 = vadd.f32 %v1029_v2, %v1028_v40  ;;  %v1419_v18 = vadd.f32 %v1418_v14, %v1417_v12  ;;  %v895_v10 = vsel %vm649_vm6, %v884_v35, 0.0  ;;  %v1650_v36 = vpop.f32.mrb[18].mxu0  ;;  %v1427_v62 = vsel %vm649_vm6, %v1416_v23, 0.0 }
 0x20e   : > { %v1039_v3 = vadd.f32 %v1038_v27, %v1037_v41  ;;  %v888_v43 = vrot.slane %v887_v11, 4  ;;  %v896_v21 = vadd.f32 %v895_v10, %v894_v60  ;;  %v1652_v26 = vpop.f32.mrb[19].mxu0  ;;  %v765_v53 = vcombine.low %v753_v32, %v762_v30 }
 0x20f   : > { %v1420_v5 = vrot.slane %v1419_v18, 4  ;;  %v1428_v22 = vadd.f32 %v1427_v62, %v1426_v6  ;;  %v1153_v16 = vmul.f32 %v1136_v31, %v10319_v33  ;;  %v1667_v25 = vmul.f32 %v1650_v36, %v10325_v61  ;;  %v1142_v12 = vpop.f32.mrb[14].mxu1 }
 0x210   : > { %v1042_v59 = vcombine.low %v1030_v54, %v1039_v3  ;;  %v889_v4 = vadd.f32 %v888_v43, %v887_v11  ;;  %v897_v40 = vrot.slane %v896_v21, 4  ;;  %v772_v35 = vrot.slane %v765_v53, %v8800_v63  ;;  %v1144_v23 = vpop.f32.mrb[15].mxu1 }
 0x211   : > { %v1421_v2 = vadd.f32 %v1420_v5, %v1419_v18  ;;  %v1429_v41 = vrot.slane %v1428_v22, 4  ;;  %v1154_v60 = vmul.f32 %v1138_v19, %v8393_v57  ;;  %v1656_v52 = vpop.f32.mrb[20].mxu0  ;;  %v1668_v33 = vmul.f32 %v1652_v26, %v10326_v48 }
 0x212   : > { %v1049_v32 = vrot.slane %v1042_v59, %v8800_v63  ;;  %v890_v27 = vrot.slane %v889_v4, 2  ;;  %v898_v6 = vadd.f32 %v897_v40, %v896_v21  ;;  %v1658_v14 = vpop.f32.mrb[21].mxu0  ;;  %v779_v11 = vrot.slane %v772_v35, %v8800_v63 }
 0x213   : > { %v1422_v31 = vrot.slane %v1421_v2, 2  ;;  %v1430_v54 = vadd.f32 %v1429_v41, %v1428_v22  ;;  %v1155_v30 = vmul.f32 %v1142_v12, %v8500_v56  ;;  %v1669_v57 = vmul.f32 %v1656_v52, %v10327_v17  ;;  %v1148_v19 = vpop.f32.mrb[16].mxu1 }
 0x214   : > { %v1056_v18 = vrot.slane %v1049_v32, %v8800_v63  ;;  %v891_v10 = vadd.f32 %v890_v27, %v889_v4  ;;  %v899_v36 = vrot.slane %v898_v6, 2  ;;  %785 = vst.msk [vmem:[#allocation2] ss:$8 sm:$0x3] %vm9430_vm13, %v779_v11  ;;  %v1156_v43 = vmul.f32 %v1144_v23, %v8502_v46  ;;  %v1150_v53 = vpop.f32.mrb[17].mxu1 }
 0x215   : > { %v1423_v21 = vadd.f32 %v1422_v31, %v1421_v2  ;;  %v1431_v3 = vrot.slane %v1430_v54, 2  ;;  %v1159_v26 = vadd.f32 %v1155_v30, %v1153_v16  ;;  %v1662_v62 = vpop.f32.mrb[22].mxu0  ;;  %v1673_v22 = vadd.f32 %v1669_v57, %v1667_v25 }
 0x216   : > { %1059 = vst.msk [vmem:[#allocation2 + $0x2] ss:$8 sm:$0x3] %vm9430_vm13, %v1056_v18  ;;  %v892_v56 = vrot.slane %v891_v10, 1  ;;  %v900_v5 = vadd.f32 %v899_v36, %v898_v6  ;;  %v1670_v59 = vmul.f32 %v1658_v14, %v8655_v13  ;;  %v1664_v4 = vpop.f32.mrb[23].mxu0  ;;  %v1168_v35 = vadd.f32 %v1156_v43, %v1154_v60 }
 0x217   : > { %v1424_v40 = vrot.slane %v1423_v21, 1  ;;  %v1432_v12 = vadd.f32 %v1431_v3, %v1430_v54  ;;  %v1157_v2 = vmul.f32 %v1148_v19, %v8526_v49  ;;  %v1671_v46 = vmul.f32 %v1662_v62, %v8657_v9  ;;  %v1522_v23 = vpop.f32.mrb[18].mxu1 }
 0x218   : > { %v893_v41 = vadd.f32 %v892_v56, %v891_v10  ;;  %v901_v16 = vrot.slane %v900_v5, 1  ;;  %v1682_v52 = vadd.f32 %v1670_v59, %v1668_v33  ;;  %v1158_v25 = vmul.f32 %v1150_v53, %v8528_v28  ;;  %v1524_v14 = vpop.f32.mrb[19].mxu1 }
 0x219   : > { %v1425_v32 = vadd.f32 %v1424_v40, %v1423_v21  ;;  %v1433_v27 = vrot.slane %v1432_v12, 1  ;;  %v1160_v11 = vsel %vm649_vm6, %v1157_v2, 0.0  ;;  %v2036_v6 = vpop.f32.mrb[24].mxu0  ;;  %v1674_v60 = vsel %vm649_vm6, %v1671_v46, 0.0 }
 0x21a   : > { %v902_v31 = vadd.f32 %v901_v16, %v900_v5  ;;  %v1161_v30 = vadd.f32 %v1160_v11, %v1159_v26  ;;  %v1672_v49 = vmul.f32 %v1664_v4, %v8673_v34  ;;  %v2038_v54 = vpop.f32.mrb[25].mxu0  ;;  %v1675_v33 = vadd.f32 %v1674_v60, %v1673_v22  ;;  %v10331_v16 = vld [vmem:[#allocation22_spill] sm:$0xff] }
 0x21b   : > { %v1434_v18 = vadd.f32 %v1433_v27, %v1432_v12  ;;  %v1169_v10 = vsel %vm649_vm6, %v1158_v25, 0.0  ;;  %v1539_v36 = vmul.f32 %v1522_v23, %v10325_v61  ;;  %v1528_v3 = vpop.f32.mrb[20].mxu1  ;;  %v2053_v53 = vmul.f32 %v2036_v6, %v8675_v47 }
 0x21c   : > { %v905_v57 = vcombine.low %v893_v41, %v902_v31  ;;  %v1162_v19 = vrot.slane %v1161_v30, 4  ;;  %v1170_v21 = vadd.f32 %v1169_v10, %v1168_v35  ;;  %v1683_v28 = vsel %vm649_vm6, %v1672_v49, 0.0  ;;  %v1530_v5 = vpop.f32.mrb[21].mxu1 }
 0x21d   : > { %v1437_v43 = vcombine.low %v1425_v32, %v1434_v18  ;;  %v1676_v62 = vrot.slane %v1675_v33, 4  ;;  %v1684_v26 = vadd.f32 %v1683_v28, %v1682_v52  ;;  %v2042_v56 = vpop.f32.mrb[26].mxu0  ;;  %v1540_v40 = vmul.f32 %v1524_v14, %v10326_v48 }
 0x21e   : > { %v912_v59 = vrot.slane %v905_v57, %v8800_v63  ;;  %v1163_v22 = vadd.f32 %v1162_v19, %v1161_v30  ;;  %v1171_v4 = vrot.slane %v1170_v21, 4  ;;  %v2044_v12 = vpop.f32.mrb[27].mxu0  ;;  %v2054_v46 = vmul.f32 %v2038_v54, %v10331_v16  ;;  %v10332_v30 = vld [vmem:[#allocation23_spill] sm:$0xff] }
 0x21f   : > { %v1444_v2 = vrot.slane %v1437_v43, %v8800_v63  ;;  %v1677_v35 = vadd.f32 %v1676_v62, %v1675_v33  ;;  %v1685_v41 = vrot.slane %v1684_v26, 4  ;;  %v1541_v27 = vmul.f32 %v1528_v3, %v10327_v17  ;;  %v1534_v11 = vpop.f32.mrb[22].mxu1  ;;  %v10333_v3 = vld [vmem:[#allocation24_spill] sm:$0xff] }
 0x220   : > { %v919_v23 = vrot.slane %v912_v59, %v8800_v63  ;;  %v1164_v52 = vrot.slane %v1163_v22, 2  ;;  %v1172_v32 = vadd.f32 %v1171_v4, %v1170_v21  ;;  %v2055_v14 = vmul.f32 %v2042_v56, %v10332_v30  ;;  %v1536_v49 = vpop.f32.mrb[23].mxu1 }
 0x221   : > { %v1451_v25 = vrot.slane %v1444_v2, %v8800_v63  ;;  %v1678_v6 = vrot.slane %v1677_v35, 2  ;;  %v1686_v31 = vadd.f32 %v1685_v41, %v1684_v26  ;;  %v2048_v60 = vpop.f32.mrb[28].mxu0  ;;  %v1545_v33 = vadd.f32 %v1541_v27, %v1539_v36  ;;  %v10334_v41 = vld [vmem:[#allocation25_spill] sm:$0xff] }
 0x222   : > { %922 = vst.msk [vmem:[#allocation2 + $0x1] ss:$8 sm:$0x3] %vm9430_vm13, %v919_v23  ;;  %v1165_v18 = vadd.f32 %v1164_v52, %v1163_v22  ;;  %v1173_v54 = vrot.slane %v1172_v32, 2  ;;  %v1542_v10 = vmul.f32 %v1530_v5, %v8655_v13  ;;  %v2050_v57 = vpop.f32.mrb[29].mxu0  ;;  %v2059_v28 = vadd.f32 %v2055_v14, %v2053_v53 }
 0x223   : > { %1454 = vst.msk [vmem:[#allocation2 + $0x4] ss:$8 sm:$0x3] %vm9430_vm13, %v1451_v25  ;;  %v1679_v19 = vadd.f32 %v1678_v6, %v1677_v35  ;;  %v1687_v21 = vrot.slane %v1686_v31, 2  ;;  %v2056_v43 = vmul.f32 %v2044_v12, %v10333_v3  ;;  %v1543_v59 = vmul.f32 %v1534_v11, %v8657_v9  ;;  %v1778_v4 = vpop.f32.mrb[24].mxu1 }
 0x224   : > { %v1166_v62 = vrot.slane %v1165_v18, 1  ;;  %v1174_v26 = vadd.f32 %v1173_v54, %v1172_v32  ;;  %v1554_v56 = vadd.f32 %v1542_v10, %v1540_v40  ;;  %v2057_v5 = vmul.f32 %v2048_v60, %v10334_v41  ;;  %v1780_v52 = vpop.f32.mrb[25].mxu1 }
 0x225   : > { %v1680_v22 = vrot.slane %v1679_v19, 1  ;;  %v1688_v2 = vadd.f32 %v1687_v21, %v1686_v31  ;;  %v2068_v36 = vadd.f32 %v2056_v43, %v2054_v46  ;;  %v2292_v23 = vpop.f32.mrb[30].mxu0  ;;  %v1546_v35 = vsel %vm649_vm6, %v1543_v59, 0.0  ;;  %v10335_v31 = vld [vmem:[#allocation26_spill] sm:$0xff] }
 0x226   : > { %v1167_v27 = vadd.f32 %v1166_v62, %v1165_v18  ;;  %v1175_v25 = vrot.slane %v1174_v26, 1  ;;  %v1544_v53 = vmul.f32 %v1536_v49, %v8673_v34  ;;  %v2294_v12 = vpop.f32.mrb[31].mxu0  ;;  %v1547_v40 = vadd.f32 %v1546_v35, %v1545_v33 }
 0x227   : > { %v1681_v6 = vadd.f32 %v1680_v22, %v1679_v19  ;;  %v1689_v32 = vrot.slane %v1688_v2, 1  ;;  %v2060_v11 = vsel %vm649_vm6, %v2057_v5, 0.0  ;;  %v2058_v60 = vmul.f32 %v2050_v57, %v10335_v31  ;;  %v1784_v10 = vpop.f32.mrb[26].mxu1 }
 0x228   : > { %v1176_v14 = vadd.f32 %v1175_v25, %v1174_v26  ;;  %v2061_v54 = vadd.f32 %v2060_v11, %v2059_v28  ;;  %v1555_v46 = vsel %vm649_vm6, %v1544_v53, 0.0  ;;  %v1548_v18 = vrot.slane %v1547_v40, 4  ;;  %v1786_v49 = vpop.f32.mrb[27].mxu1 }
 0x229   : > { %v1690_v21 = vadd.f32 %v1689_v32, %v1688_v2  ;;  %v1556_v43 = vadd.f32 %v1555_v46, %v1554_v56  ;;  %v1795_v62 = vmul.f32 %v1778_v4, %v10325_v61  ;;  %v2298_v59 = vpop.f32.mrb[32].mxu0  ;;  %v2069_v33 = vsel %vm649_vm6, %v2058_v60, 0.0 }
 0x22a   : > { %v1179_v39 = vcombine.low %v1167_v27, %v1176_v14  ;;  %v2062_v19 = vrot.slane %v2061_v54, 4  ;;  %v2309_v22 = vmul.f32 %v2292_v23, %v8675_v47  ;;  %v2300_v26 = vpop.f32.mrb[33].mxu0  ;;  %v1549_v5 = vadd.f32 %v1548_v18, %v1547_v40 }
 0x22b   : > { %v1693_v28 = vcombine.low %v1681_v6, %v1690_v21  ;;  %v1557_v25 = vrot.slane %v1556_v43, 4  ;;  %v2070_v35 = vadd.f32 %v2069_v33, %v2068_v36  ;;  %v1796_v56 = vmul.f32 %v1780_v52, %v10326_v48  ;;  %v1790_v4 = vpop.f32.mrb[28].mxu1 }
 0x22c   : > { %v1186_v57 = vrot.slane %v1179_v39, %v8800_v63  ;;  %v2063_v2 = vadd.f32 %v2062_v19, %v2061_v54  ;;  %v2310_v61 = vmul.f32 %v2294_v12, %v10331_v16  ;;  %v1550_v53 = vrot.slane %v1549_v5, 2  ;;  %v1792_v23 = vpop.f32.mrb[29].mxu1 }
 0x22d   : > { %v1700_v27 = vrot.slane %v1693_v28, %v8800_v63  ;;  %v1558_v32 = vadd.f32 %v1557_v25, %v1556_v43  ;;  %v2071_v11 = vrot.slane %v2070_v35, 4  ;;  %v2304_v14 = vpop.f32.mrb[34].mxu0  ;;  %v1797_v36 = vmul.f32 %v1784_v10, %v10327_v17 }
 0x22e   : > { %v1193_v6 = vrot.slane %v1186_v57, %v8800_v63  ;;  %v2064_v40 = vrot.slane %v2063_v2, 2  ;;  %v2311_v39 = vmul.f32 %v2298_v59, %v10332_v30  ;;  %v2306_v54 = vpop.f32.mrb[35].mxu0  ;;  %v1551_v52 = vadd.f32 %v1550_v53, %v1549_v5 }
 0x22f   : > { %v1707_v48 = vrot.slane %v1700_v27, %v8800_v63  ;;  %v1559_v12 = vrot.slane %v1558_v32, 2  ;;  %v2072_v46 = vadd.f32 %v2071_v11, %v2070_v35  ;;  %v1801_v21 = vadd.f32 %v1797_v36, %v1795_v62  ;;  %v2164_v19 = vpop.f32.mrb[30].mxu1 }
 0x230   : > { %1196 = vst.msk [vmem:[#allocation2 + $0x3] ss:$8 sm:$0x3] %vm9430_vm13, %v1193_v6  ;;  %v2065_v60 = vadd.f32 %v2064_v40, %v2063_v2  ;;  %v2315_v18 = vadd.f32 %v2311_v39, %v2309_v22  ;;  %v1798_v43 = vmul.f32 %v1786_v49, %v8655_v13  ;;  %v1552_v17 = vrot.slane %v1551_v52, 1  ;;  %v2166_v5 = vpop.f32.mrb[31].mxu1 }
 0x231   : > { %1710 = vst.msk [vmem:[#allocation2 + $0x6] ss:$8 sm:$0x3] %vm9430_vm13, %v1707_v48  ;;  %v1560_v10 = vadd.f32 %v1559_v12, %v1558_v32  ;;  %v2073_v59 = vrot.slane %v2072_v46, 2  ;;  %v2312_v33 = vmul.f32 %v2300_v26, %v10333_v3  ;;  %v2678_v28 = vpop.f32.mrb[36].mxu0  ;;  %v1799_v57 = vmul.f32 %v1790_v4, %v8657_v9 }
 0x232   : > { %v2066_v25 = vrot.slane %v2065_v60, 1  ;;  %v1810_v35 = vadd.f32 %v1798_v43, %v1796_v56  ;;  %v2313_v62 = vmul.f32 %v2304_v14, %v10334_v41  ;;  %v2680_v22 = vpop.f32.mrb[37].mxu0  ;;  %v1553_v2 = vadd.f32 %v1552_v17, %v1551_v52  ;;  %v10336_v52 = vld [vmem:[#allocation27_spill] sm:$0xff] }
 0x233   : > { %v1561_v13 = vrot.slane %v1560_v10, 1  ;;  %v2074_v49 = vadd.f32 %v2073_v59, %v2072_v46  ;;  %v2324_v27 = vadd.f32 %v2312_v33, %v2310_v61  ;;  %v1802_v11 = vsel %vm649_vm6, %v1799_v57, 0.0  ;;  %v2170_v6 = vpop.f32.mrb[32].mxu1 }
 0x234   : > { %v2067_v53 = vadd.f32 %v2066_v25, %v2065_v60  ;;  %v2316_v32 = vsel %vm649_vm6, %v2313_v62, 0.0  ;;  %v1800_v26 = vmul.f32 %v1792_v23, %v8673_v34  ;;  %v1803_v56 = vadd.f32 %v1802_v11, %v1801_v21  ;;  %v2172_v4 = vpop.f32.mrb[33].mxu1  ;;  %v10338_v11 = vld [vmem:[#allocation28_spill] sm:$0xff] }
 0x235   : > { %v1562_v40 = vadd.f32 %v1561_v13, %v1560_v10  ;;  %v2075_v36 = vrot.slane %v2074_v49, 1  ;;  %v2317_v39 = vadd.f32 %v2316_v32, %v2315_v18  ;;  %v2684_v9 = vpop.f32.mrb[38].mxu0  ;;  %v2314_v48 = vmul.f32 %v2306_v54, %v10335_v31  ;;  %v10337_v18 = vld [vmem:[#allocation14_spill] sm:$0xff] }
 0x236   : > { %v1811_v14 = vsel %vm649_vm6, %v1800_v26, 0.0  ;;  %v2181_v61 = vmul.f32 %v2164_v19, %v8675_v47  ;;  %v2695_v12 = vmul.f32 %v2678_v28, %v10336_v52  ;;  %v2686_v46 = vpop.f32.mrb[39].mxu0  ;;  %v1804_v17 = vrot.slane %v1803_v56, 4 }
 0x237   : > { %v1565_v60 = vcombine.low %v1553_v2, %v1562_v40  ;;  %v2076_v43 = vadd.f32 %v2075_v36, %v2074_v49  ;;  %v2318_v34 = vrot.slane %v2317_v39, 4  ;;  %v1812_v23 = vadd.f32 %v1811_v14, %v1810_v35  ;;  %v2176_v33 = vpop.f32.mrb[34].mxu1 }
 0x238   : > { %v2325_v10 = vsel %vm649_vm6, %v2314_v48, 0.0  ;;  %v2182_v21 = vmul.f32 %v2166_v5, %v10331_v16  ;;  %v2696_v59 = vmul.f32 %v2680_v22, %v10337_v18  ;;  %v1805_v57 = vadd.f32 %v1804_v17, %v1803_v56  ;;  %v2178_v28 = vpop.f32.mrb[35].mxu1 }
 0x239   : > { %v1572_v25 = vrot.slane %v1565_v60, %v8800_v63  ;;  %v2079_v54 = vcombine.low %v2067_v53, %v2076_v43  ;;  %v2319_v19 = vadd.f32 %v2318_v34, %v2317_v39  ;;  %v2690_v62 = vpop.f32.mrb[40].mxu0  ;;  %v1813_v13 = vrot.slane %v1812_v23, 4 }
 0x23a   : > { %v2326_v2 = vadd.f32 %v2325_v10, %v2324_v27  ;;  %v2183_v49 = vmul.f32 %v2170_v6, %v10332_v30  ;;  %v2697_v35 = vmul.f32 %v2684_v9, %v10338_v11  ;;  %v2692_v32 = vpop.f32.mrb[41].mxu0  ;;  %v1806_v22 = vrot.slane %v1805_v57, 2  ;;  %v10339_v10 = vld [vmem:[#allocation29_spill] sm:$0xff] }
 0x23b   : > { %v1579_v26 = vrot.slane %v1572_v25, %v8800_v63  ;;  %v2086_v5 = vrot.slane %v2079_v54, %v8800_v63  ;;  %v2320_v40 = vrot.slane %v2319_v19, 2  ;;  %v1814_v36 = vadd.f32 %v1813_v13, %v1812_v23  ;;  %v2420_v39 = vpop.f32.mrb[36].mxu1 }
 0x23c   : > { %v2327_v14 = vrot.slane %v2326_v2, 4  ;;  %v2187_v53 = vadd.f32 %v2183_v49, %v2181_v61  ;;  %v2701_v56 = vadd.f32 %v2697_v35, %v2695_v12  ;;  %v1807_v6 = vadd.f32 %v1806_v22, %v1805_v57  ;;  %v2422_v43 = vpop.f32.mrb[37].mxu1  ;;  %v10340_v49 = vld [vmem:[#allocation30_spill] sm:$0xff] }
 0x23d   : > { %1582 = vst.msk [vmem:[#allocation2 + $0x5] ss:$8 sm:$0x3] %vm9430_vm13, %v1579_v26  ;;  %v2093_v27 = vrot.slane %v2086_v5, %v8800_v63  ;;  %v2321_v48 = vadd.f32 %v2320_v40, %v2319_v19  ;;  %v2184_v9 = vmul.f32 %v2172_v4, %v10333_v3  ;;  %v2934_v60 = vpop.f32.mrb[42].mxu0  ;;  %v1815_v17 = vrot.slane %v1814_v36, 2 }
 0x23e   : > { %v2328_v34 = vadd.f32 %v2327_v14, %v2326_v2  ;;  %v2698_v25 = vmul.f32 %v2686_v46, %v10339_v10  ;;  %v2185_v23 = vmul.f32 %v2176_v33, %v10334_v41  ;;  %v2936_v61 = vpop.f32.mrb[43].mxu0  ;;  %v1808_v12 = vrot.slane %v1807_v6, 1 }
 0x23f   : > { %2096 = vst.msk [vmem:[#allocation2 + $0x10] ss:$8 sm:$0x3] %vm9430_vm13, %v2093_v27  ;;  %v2322_v54 = vrot.slane %v2321_v48, 1  ;;  %v2196_v13 = vadd.f32 %v2184_v9, %v2182_v21  ;;  %v2699_v57 = vmul.f32 %v2690_v62, %v10340_v49  ;;  %v1816_v19 = vadd.f32 %v1815_v17, %v1814_v36  ;;  %v2426_v5 = vpop.f32.mrb[38].mxu1 }
 0x240   : > { %v2329_v35 = vrot.slane %v2328_v34, 2  ;;  %v2710_v4 = vadd.f32 %v2698_v25, %v2696_v59  ;;  %v2188_v26 = vsel %vm649_vm6, %v2185_v23, 0.0  ;;  %v1809_v2 = vadd.f32 %v1808_v12, %v1807_v6  ;;  %v2428_v14 = vpop.f32.mrb[39].mxu1 }
 0x241   : > { %v2323_v22 = vadd.f32 %v2322_v54, %v2321_v48  ;;  %v2189_v46 = vadd.f32 %v2188_v26, %v2187_v53  ;;  %v2702_v33 = vsel %vm649_vm6, %v2699_v57, 0.0  ;;  %v2940_v40 = vpop.f32.mrb[44].mxu0  ;;  %v1817_v37 = vrot.slane %v1816_v19, 1 }
 0x242   : > { %v2330_v27 = vadd.f32 %v2329_v35, %v2328_v34  ;;  %v2703_v1 = vadd.f32 %v2702_v33, %v2701_v56  ;;  %v2186_v21 = vmul.f32 %v2178_v28, %v10335_v31  ;;  %v2942_v9 = vpop.f32.mrb[45].mxu0  ;;  %v2700_v36 = vmul.f32 %v2692_v32, %v8936_v38 }
 0x243   : > { %v2190_v62 = vrot.slane %v2189_v46, 4  ;;  %v2437_v59 = vmul.f32 %v2420_v39, %v8675_v47  ;;  %v2951_v17 = vmul.f32 %v2934_v60, %v10336_v52  ;;  %v1818_v6 = vadd.f32 %v1817_v37, %v1816_v19  ;;  %v2432_v23 = vpop.f32.mrb[40].mxu1 }
 0x244   : > { %v2331_v48 = vrot.slane %v2330_v27, 1  ;;  %v2704_v53 = vrot.slane %v2703_v1, 4  ;;  %v2197_v25 = vsel %vm649_vm6, %v2186_v21, 0.0  ;;  %v2711_v56 = vsel %vm649_vm6, %v2700_v36, 0.0  ;;  %v2434_v57 = vpop.f32.mrb[41].mxu1 }
 0x245   : > { %v2191_v12 = vadd.f32 %v2190_v62, %v2189_v46  ;;  %v2198_v54 = vadd.f32 %v2197_v25, %v2196_v13  ;;  %v2438_v28 = vmul.f32 %v2422_v43, %v10331_v16  ;;  %v2946_v34 = vpop.f32.mrb[46].mxu0  ;;  %v1821_v35 = vcombine.low %v1809_v2, %v1818_v6 }
 0x246   : > { %v2332_v32 = vadd.f32 %v2331_v48, %v2330_v27  ;;  %v2705_v26 = vadd.f32 %v2704_v53, %v2703_v1  ;;  %v2712_v47 = vadd.f32 %v2711_v56, %v2710_v4  ;;  %v2948_v39 = vpop.f32.mrb[47].mxu0  ;;  %v2952_v19 = vmul.f32 %v2936_v61, %v10337_v18 }
 0x247   : > { %v2192_v60 = vrot.slane %v2191_v12, 2  ;;  %v2199_v37 = vrot.slane %v2198_v54, 4  ;;  %v2439_v33 = vmul.f32 %v2426_v5, %v10332_v30  ;;  %v1828_v46 = vrot.slane %v1821_v35, %v8800_v63  ;;  %v2806_v36 = vpop.f32.mrb[42].mxu1 }
 0x248   : > { %v2335_v13 = vcombine.low %v2323_v22, %v2332_v32  ;;  %v2706_v21 = vrot.slane %v2705_v26, 2  ;;  %v2713_v62 = vrot.slane %v2712_v47, 4  ;;  %v2953_v2 = vmul.f32 %v2940_v40, %v10338_v11  ;;  %v2808_v4 = vpop.f32.mrb[43].mxu1 }
 0x249   : > { %v2193_v16 = vadd.f32 %v2192_v60, %v2191_v12  ;;  %v2200_v43 = vadd.f32 %v2199_v37, %v2198_v54  ;;  %v2443_v25 = vadd.f32 %v2439_v33, %v2437_v59  ;;  %v3320_v1 = vpop.f32.mrb[48].mxu0  ;;  %v1835_v27 = vrot.slane %v1828_v46, %v8800_v63 }
 0x24a   : > { %v2342_v6 = vrot.slane %v2335_v13, %v8800_v63  ;;  %v2707_v61 = vadd.f32 %v2706_v21, %v2705_v26  ;;  %v2714_v48 = vadd.f32 %v2713_v62, %v2712_v47  ;;  %v3322_v30 = vpop.f32.mrb[49].mxu0  ;;  %v2957_v22 = vadd.f32 %v2953_v2, %v2951_v17 }
 0x24b   : > { %v2194_v5 = vrot.slane %v2193_v16, 1  ;;  %v2201_v53 = vrot.slane %v2200_v43, 2  ;;  %v2440_v56 = vmul.f32 %v2428_v14, %v10333_v3  ;;  %1838 = vst.msk [vmem:[#allocation2 + $0x7] ss:$8 sm:$0x3] %vm9430_vm13, %v1835_v27  ;;  %v2954_v54 = vmul.f32 %v2942_v9, %v10339_v10  ;;  %v2812_v35 = vpop.f32.mrb[44].mxu1 }
 0x24c   : > { %v2349_v59 = vrot.slane %v2342_v6, %v8800_v63  ;;  %v2708_v40 = vrot.slane %v2707_v61, 1  ;;  %v2715_v12 = vrot.slane %v2714_v48, 2  ;;  %v2441_v47 = vmul.f32 %v2432_v23, %v10334_v41  ;;  %v2814_v33 = vpop.f32.mrb[45].mxu1 }
 0x24d   : > { %v2195_v32 = vadd.f32 %v2194_v5, %v2193_v16  ;;  %v2202_v60 = vadd.f32 %v2201_v53, %v2200_v43  ;;  %v2452_v26 = vadd.f32 %v2440_v56, %v2438_v28  ;;  %v3326_v37 = vpop.f32.mrb[50].mxu0  ;;  %v2966_v17 = vadd.f32 %v2954_v54, %v2952_v19 }
 0x24e   : > { %2352 = vst.msk [vmem:[#allocation2 + $0x12] ss:$8 sm:$0x3] %vm9430_vm13, %v2349_v59  ;;  %v2709_v3 = vadd.f32 %v2708_v40, %v2707_v61  ;;  %v2716_v14 = vadd.f32 %v2715_v12, %v2714_v48  ;;  %v2955_v46 = vmul.f32 %v2946_v34, %v10340_v49  ;;  %v3328_v13 = vpop.f32.mrb[51].mxu0  ;;  %v2444_v9 = vsel %vm649_vm6, %v2441_v47, 0.0 }
 0x24f   : > { %v2203_v21 = vrot.slane %v2202_v60, 1  ;;  %v2442_v62 = vmul.f32 %v2434_v57, %v10335_v31  ;;  %v2956_v28 = vmul.f32 %v2948_v39, %v8936_v38  ;;  %v2445_v41 = vadd.f32 %v2444_v9, %v2443_v25  ;;  %v2818_v2 = vpop.f32.mrb[46].mxu1 }
 0x250   : > { %v2717_v16 = vrot.slane %v2716_v14, 1  ;;  %v2958_v23 = vsel %vm649_vm6, %v2955_v46, 0.0  ;;  %v2823_v43 = vmul.f32 %v2806_v36, %v10336_v52  ;;  %v2820_v48 = vpop.f32.mrb[47].mxu1  ;;  %v3337_v59 = vmul.f32 %v3320_v1, %v8938_v44 }
 0x251   : > { %v2204_v27 = vadd.f32 %v2203_v21, %v2202_v60  ;;  %v2959_v6 = vadd.f32 %v2958_v23, %v2957_v22  ;;  %v2453_v19 = vsel %vm649_vm6, %v2442_v62, 0.0  ;;  %v2967_v34 = vsel %vm649_vm6, %v2956_v28, 0.0  ;;  %v3332_v61 = vpop.f32.mrb[52].mxu0 }
 0x252   : > { %v2718_v5 = vadd.f32 %v2717_v16, %v2716_v14  ;;  %v2446_v53 = vrot.slane %v2445_v41, 4  ;;  %v2454_v31 = vadd.f32 %v2453_v19, %v2452_v26  ;;  %v2968_v57 = vadd.f32 %v2967_v34, %v2966_v17  ;;  %v3334_v39 = vpop.f32.mrb[53].mxu0 }
 0x253   : > { %v2207_v56 = vcombine.low %v2195_v32, %v2204_v27  ;;  %v2960_v25 = vrot.slane %v2959_v6, 4  ;;  %v2824_v36 = vmul.f32 %v2808_v4, %v10337_v18  ;;  %v3062_v60 = vpop.f32.mrb[48].mxu1  ;;  %v3338_v14 = vmul.f32 %v3322_v30, %v8947_v0 }
 0x254   : > { %v2721_v40 = vcombine.low %v2709_v3, %v2718_v5  ;;  %v2447_v12 = vadd.f32 %v2446_v53, %v2445_v41  ;;  %v2455_v22 = vrot.slane %v2454_v31, 4  ;;  %v2969_v54 = vrot.slane %v2968_v57, 4  ;;  %v3064_v21 = vpop.f32.mrb[49].mxu1 }
 0x255   : > { %v2214_v47 = vrot.slane %v2207_v56, %v8800_v63  ;;  %v2961_v46 = vadd.f32 %v2960_v25, %v2959_v6  ;;  %v2825_v26 = vmul.f32 %v2812_v35, %v10338_v11  ;;  %v3576_v17 = vpop.f32.mrb[54].mxu0  ;;  %v3339_v41 = vmul.f32 %v3326_v37, %v8959_v29 }
 0x256   : > { %v2728_v32 = vrot.slane %v2721_v40, %v8800_v63  ;;  %v2448_v9 = vrot.slane %v2447_v12, 2  ;;  %v2456_v1 = vadd.f32 %v2455_v22, %v2454_v31  ;;  %v2970_v62 = vadd.f32 %v2969_v54, %v2968_v57  ;;  %v3578_v4 = vpop.f32.mrb[55].mxu0 }
 0x257   : > { %v2221_v3 = vrot.slane %v2214_v47, %v8800_v63  ;;  %v2962_v28 = vrot.slane %v2961_v46, 2  ;;  %v2829_v16 = vadd.f32 %v2825_v26, %v2823_v43  ;;  %v3068_v35 = vpop.f32.mrb[50].mxu1  ;;  %v3343_v34 = vadd.f32 %v3339_v41, %v3337_v59 }
 0x258   : > { %v2735_v23 = vrot.slane %v2728_v32, %v8800_v63  ;;  %v2449_v27 = vadd.f32 %v2448_v9, %v2447_v12  ;;  %v2457_v30 = vrot.slane %v2456_v1, 2  ;;  %v2971_v6 = vrot.slane %v2970_v62, 2  ;;  %v9575_v57 = vpop.f32.mrb[51].mxu1 }
 0x259   : > { %2224 = vst.msk [vmem:[#allocation2 + $0x11] ss:$8 sm:$0x3] %vm9430_vm13, %v2221_v3  ;;  %v2963_v19 = vadd.f32 %v2962_v28, %v2961_v46  ;;  %v2826_v5 = vmul.f32 %v2814_v33, %v10339_v10  ;;  %v3340_v53 = vmul.f32 %v3328_v13, %v8984_v42  ;;  %v3582_v31 = vpop.f32.mrb[56].mxu0  ;;  %v2827_v25 = vmul.f32 %v2818_v2, %v10340_v49 }
 0x25a   : > { %2738 = vst.msk [vmem:[#allocation2 + $0x14] ss:$8 sm:$0x3] %vm9430_vm13, %v2735_v23  ;;  %v2450_v37 = vrot.slane %v2449_v27, 1  ;;  %v2458_v43 = vadd.f32 %v2457_v30, %v2456_v1  ;;  %v2972_v56 = vadd.f32 %v2971_v6, %v2970_v62  ;;  %v3584_v40 = vpop.f32.mrb[57].mxu0  ;;  %v3341_v59 = vmul.f32 %v3332_v61, %v9027_v15 }
 0x25b   : > { %v2964_v12 = vrot.slane %v2963_v19, 1  ;;  %v2838_v22 = vadd.f32 %v2826_v5, %v2824_v36  ;;  %v3352_v54 = vadd.f32 %v3340_v53, %v3338_v14  ;;  %v2830_v46 = vsel %vm649_vm6, %v2827_v25, 0.0  ;;  %v3074_v26 = vpop.f32.mrb[52].mxu1 }
 0x25c   : > { %v2451_v33 = vadd.f32 %v2450_v37, %v2449_v27  ;;  %v2459_v47 = vrot.slane %v2458_v43, 1  ;;  %v2973_v13 = vrot.slane %v2972_v56, 1  ;;  %v2831_v9 = vadd.f32 %v2830_v46, %v2829_v16  ;;  %v9584_v2 = vpop.f32.mrb[53].mxu1 }
 0x25d   : > { %v2965_v32 = vadd.f32 %v2964_v12, %v2963_v19  ;;  %v3344_v3 = vsel %vm649_vm6, %v3341_v59, 0.0  ;;  %v2828_v1 = vmul.f32 %v2820_v48, %v8936_v38  ;;  %v3588_v62 = vpop.f32.mrb[58].mxu0  ;;  %v3342_v61 = vmul.f32 %v3334_v39, %v9029_v24 }
 0x25e   : > { %v2460_v28 = vadd.f32 %v2459_v47, %v2458_v43  ;;  %v2974_v36 = vadd.f32 %v2973_v13, %v2972_v56  ;;  %v3345_v14 = vadd.f32 %v3344_v3, %v3343_v34  ;;  %v9587_v41 = vpop.f32.mrb[59].mxu0  ;;  %v2832_v23 = vrot.slane %v2831_v9, 4 }
 0x25f   : > { %v2839_v27 = vsel %vm649_vm6, %v2828_v1, 0.0  ;;  %v3079_v30 = vmul.f32 %v3062_v60, %v10336_v52  ;;  %v3593_v16 = vmul.f32 %v3576_v17, %v8938_v44  ;;  %v3448_v53 = vpop.f32.mrb[54].mxu1  ;;  %v3353_v43 = vsel %vm649_vm6, %v3342_v61, 0.0 }
 0x260   : > { %v2463_v6 = vcombine.low %v2451_v33, %v2460_v28  ;;  %v2977_v19 = vcombine.low %v2965_v32, %v2974_v36  ;;  %v3346_v48 = vrot.slane %v3345_v14, 4  ;;  %v2840_v5 = vadd.f32 %v2839_v27, %v2838_v22  ;;  %v3450_v25 = vpop.f32.mrb[55].mxu1 }
 0x261   : > { %v2833_v37 = vadd.f32 %v2832_v23, %v2831_v9  ;;  %v3080_v34 = vmul.f32 %v3064_v21, %v10337_v18  ;;  %v3594_v39 = vmul.f32 %v3578_v4, %v8947_v0  ;;  %v3962_v56 = vpop.f32.mrb[60].mxu0  ;;  %v3354_v22 = vadd.f32 %v3353_v43, %v3352_v54 }
 0x262   : > { %v2470_v12 = vrot.slane %v2463_v6, %v8800_v63  ;;  %v2984_v52 = vrot.slane %v2977_v19, %v8800_v63  ;;  %v3347_v60 = vadd.f32 %v3346_v48, %v3345_v14  ;;  %v2841_v17 = vrot.slane %v2840_v5, 4  ;;  %v9597_v59 = vpop.f32.mrb[61].mxu0 }
 0x263   : > { %v2834_v33 = vrot.slane %v2833_v37, 2  ;;  %v3081_v47 = vmul.f32 %v3068_v35, %v10338_v11  ;;  %v3595_v13 = vmul.f32 %v3582_v31, %v8959_v29  ;;  %v3454_v32 = vpop.f32.mrb[56].mxu1  ;;  %v3355_v3 = vrot.slane %v3354_v22, 4 }
 0x264   : > { %v2477_v18 = vrot.slane %v2470_v12, %v8800_v63  ;;  %v2991_v21 = vrot.slane %v2984_v52, %v8800_v63  ;;  %v3348_v4 = vrot.slane %v3347_v60, 2  ;;  %v2842_v46 = vadd.f32 %v2841_v17, %v2840_v5  ;;  %v9603_v14 = vpop.f32.mrb[57].mxu1 }
 0x265   : > { %v2835_v9 = vadd.f32 %v2834_v33, %v2833_v37  ;;  %v3085_v1 = vadd.f32 %v3081_v47, %v3079_v30  ;;  %v3599_v28 = vadd.f32 %v3595_v13, %v3593_v16  ;;  %v3968_v36 = vpop.f32.mrb[62].mxu0  ;;  %v3082_v31 = vmul.f32 %v9575_v57, %v10339_v10 }
 0x266   : > { %2480 = vst.msk [vmem:[#allocation2 + $0x13] ss:$8 sm:$0x3] %vm9430_vm13, %v2477_v18  ;;  %2994 = vst.msk [vmem:[#allocation2 + $0x16] ss:$8 sm:$0x3] %vm9430_vm13, %v2991_v21  ;;  %v3349_v11 = vadd.f32 %v3348_v4, %v3347_v60  ;;  %v3596_v54 = vmul.f32 %v3584_v40, %v8984_v42  ;;  %v3356_v27 = vadd.f32 %v3355_v3, %v3354_v22 }
 0x267   : > { %v2843_v35 = vrot.slane %v2842_v46, 2  ;;  %v9612_v61 = vpop.f32.mrb[63].mxu0  ;;  %v2836_v23 = vrot.slane %v2835_v9, 1  ;;  %v3083_v30 = vmul.f32 %v3074_v26, %v10340_v49  ;;  %v3597_v16 = vmul.f32 %v3588_v62, %v9027_v15  ;;  %v9616_v37 = vpop.f32.mrb[58].mxu1 }
 0x268   : > { %v3350_v6 = vrot.slane %v3349_v11, 1  ;;  %v3094_v48 = vadd.f32 %v3082_v31, %v3080_v34  ;;  %v3608_v5 = vadd.f32 %v3596_v54, %v3594_v39  ;;  %v3357_v12 = vrot.slane %v3356_v27, 2  ;;  %v9622_v52 = vpop.f32.mrb[59].mxu1 }
 0x269   : > { %v2844_v19 = vadd.f32 %v2843_v35, %v2842_v46  ;;  %v2837_v43 = vadd.f32 %v2836_v23, %v2835_v9  ;;  %v3086_v10 = vsel %vm649_vm6, %v3083_v30, 0.0  ;;  %v3600_v57 = vsel %vm649_vm6, %v3597_v16, 0.0  ;;  %v9620_v40 = vpop.f32.mrb[64].mxu0 }
 0x26a   : > { %v3351_v60 = vadd.f32 %v3350_v6, %v3349_v11  ;;  %v3087_v26 = vadd.f32 %v3086_v10, %v3085_v1  ;;  %v3601_v62 = vadd.f32 %v3600_v57, %v3599_v28  ;;  %v9624_v17 = vpop.f32.mrb[65].mxu0  ;;  %v3358_v34 = vadd.f32 %v3357_v12, %v3356_v27 }
 0x26b   : > { %v2845_v49 = vrot.slane %v2844_v19, 1  ;;  %v3084_v39 = vmul.f32 %v9584_v2, %v8936_v38  ;;  %v3598_v33 = vmul.f32 %v9587_v41, %v9029_v24  ;;  %v3465_v22 = vmul.f32 %v3448_v53, %v8938_v44  ;;  %v3704_v4 = vpop.f32.mrb[60].mxu1 }
 0x26c   : > { %v3088_v13 = vrot.slane %v3087_v26, 4  ;;  %v3602_v18 = vrot.slane %v3601_v62, 4  ;;  %v3979_v21 = vmul.f32 %v3962_v56, %v9040_v7  ;;  %v3359_v46 = vrot.slane %v3358_v34, 1  ;;  %v9635_v38 = vpop.f32.mrb[61].mxu1  ;;  %v10341_v56 = vld [vmem:[#allocation16_spill] sm:$0xff] }
 0x26d   : > { %v2846_v47 = vadd.f32 %v2845_v49, %v2844_v19  ;;  %v3095_v9 = vsel %vm649_vm6, %v3084_v39, 0.0  ;;  %v3609_v3 = vsel %vm649_vm6, %v3598_v33, 0.0  ;;  %v3466_v1 = vmul.f32 %v3450_v25, %v8947_v0  ;;  %v4218_v28 = vpop.f32.mrb[66].mxu0 }
 0x26e   : > { %v3089_v41 = vadd.f32 %v3088_v13, %v3087_v26  ;;  %v3603_v11 = vadd.f32 %v3602_v18, %v3601_v62  ;;  %v3096_v53 = vadd.f32 %v3095_v9, %v3094_v48  ;;  %v9637_v35 = vpop.f32.mrb[67].mxu0  ;;  %v3360_v31 = vadd.f32 %v3359_v46, %v3358_v34  ;;  %v10342_v48 = vld [vmem:[#allocation15_spill] sm:$0xff] }
 0x26f   : > { %v2849_v2 = vcombine.low %v2837_v43, %v2846_v47  ;;  %v3610_v54 = vadd.f32 %v3609_v3, %v3608_v5  ;;  %v3980_v23 = vmul.f32 %v9597_v59, %v10341_v56  ;;  %v3467_v27 = vmul.f32 %v3454_v32, %v8959_v29  ;;  %v9643_v19 = vpop.f32.mrb[62].mxu1 }
 0x270   : > { %v3090_v16 = vrot.slane %v3089_v41, 2  ;;  %v3604_v25 = vrot.slane %v3603_v11, 2  ;;  %v3097_v6 = vrot.slane %v3096_v53, 4  ;;  %v3363_v43 = vcombine.low %v3351_v60, %v3360_v31  ;;  %v9646_v26 = vpop.f32.mrb[63].mxu1 }
 0x271   : > { %v2856_v30 = vrot.slane %v2849_v2, %v8800_v63  ;;  %v3611_v12 = vrot.slane %v3610_v54, 4  ;;  %v3471_v10 = vadd.f32 %v3467_v27, %v3465_v22  ;;  %v3981_v57 = vmul.f32 %v3968_v36, %v10342_v48  ;;  %v4224_v49 = vpop.f32.mrb[68].mxu0 }
 0x272   : > { %v3091_v59 = vadd.f32 %v3090_v16, %v3089_v41  ;;  %v3605_v62 = vadd.f32 %v3604_v25, %v3603_v11  ;;  %v3098_v32 = vadd.f32 %v3097_v6, %v3096_v53  ;;  %v9649_v34 = vpop.f32.mrb[69].mxu0  ;;  %v3370_v39 = vrot.slane %v3363_v43, %v8800_v63 }
 0x273   : > { %v2863_v5 = vrot.slane %v2856_v30, %v8800_v63  ;;  %v3612_v33 = vadd.f32 %v3611_v12, %v3610_v54  ;;  %v3985_v47 = vadd.f32 %v3981_v57, %v3979_v21  ;;  %v3468_v60 = vmul.f32 %v9603_v14, %v8984_v42  ;;  %v9658_v46 = vpop.f32.mrb[64].mxu1 }
 0x274   : > { %v3092_v36 = vrot.slane %v3091_v59, 1  ;;  %v3606_v22 = vrot.slane %v3605_v62, 1  ;;  %v3099_v13 = vrot.slane %v3098_v32, 2  ;;  %v3982_v18 = vmul.f32 %v9612_v61, %v9122_v20  ;;  %v9665_v14 = vpop.f32.mrb[65].mxu1 }
 0x275   : > { %2866 = vst.msk [vmem:[#allocation2 + $0x15] ss:$8 sm:$0x3] %vm9430_vm13, %v2863_v5  ;;  %v3377_v9 = vrot.slane %v3370_v39, %v8800_v63  ;;  %v3613_v3 = vrot.slane %v3612_v33, 2  ;;  %v3480_v2 = vadd.f32 %v3468_v60, %v3466_v1  ;;  %v3469_v21 = vmul.f32 %v9616_v37, %v9027_v15  ;;  %v9663_v41 = vpop.f32.mrb[70].mxu0 }
 0x276   : > { %v3093_v11 = vadd.f32 %v3092_v36, %v3091_v59  ;;  %v3607_v53 = vadd.f32 %v3606_v22, %v3605_v62  ;;  %v3100_v31 = vadd.f32 %v3099_v13, %v3098_v32  ;;  %v3994_v54 = vadd.f32 %v3982_v18, %v3980_v23  ;;  %v9667_v27 = vpop.f32.mrb[71].mxu0 }
 0x277   : > { %3380 = vst.msk [vmem:[#allocation2 + $0x20] ss:$8 sm:$0x3] %vm9430_vm13, %v3377_v9  ;;  %v3614_v61 = vadd.f32 %v3613_v3, %v3612_v33  ;;  %v3472_v30 = vsel %vm649_vm6, %v3469_v21, 0.0  ;;  %v3983_v1 = vmul.f32 %v9620_v40, %v9124_v51  ;;  %v3470_v37 = vmul.f32 %v9622_v52, %v9029_v24  ;;  %v9679_v43 = vpop.f32.mrb[66].mxu1 }
 0x278   : > { %v3101_v16 = vrot.slane %v3100_v31, 1  ;;  %v3473_v25 = vadd.f32 %v3472_v30, %v3471_v10  ;;  %v3984_v6 = vmul.f32 %v9624_v17, %v9144_v55  ;;  %v3721_v23 = vmul.f32 %v3704_v4, %v8938_v44  ;;  %v9686_v62 = vpop.f32.mrb[67].mxu1 }
 0x279   : > { %v3615_v12 = vrot.slane %v3614_v61, 1  ;;  %v3986_v57 = vsel %vm649_vm6, %v3983_v1, 0.0  ;;  %v3481_v5 = vsel %vm649_vm6, %v3470_v37, 0.0  ;;  %v4235_v59 = vmul.f32 %v4218_v28, %v9040_v7  ;;  %v9684_v40 = vpop.f32.mrb[72].mxu0 }
 0x27a   : > { %v3102_v52 = vadd.f32 %v3101_v16, %v3100_v31  ;;  %v3474_v10 = vrot.slane %v3473_v25, 4  ;;  %v3987_v32 = vadd.f32 %v3986_v57, %v3985_v47  ;;  %v3482_v39 = vadd.f32 %v3481_v5, %v3480_v2  ;;  %v9688_v17 = vpop.f32.mrb[73].mxu0 }
 0x27b   : > { %v3616_v44 = vadd.f32 %v3615_v12, %v3614_v61  ;;  %v3995_v4 = vsel %vm649_vm6, %v3984_v6, 0.0  ;;  %v3722_v33 = vmul.f32 %v9635_v38, %v8947_v0  ;;  %v4236_v60 = vmul.f32 %v9637_v35, %v10341_v56  ;;  %v9695_v18 = vpop.f32.mrb[68].mxu1 }
 0x27c   : > { %v3105_v28 = vcombine.low %v3093_v11, %v3102_v52  ;;  %v3475_v36 = vadd.f32 %v3474_v10, %v3473_v25  ;;  %v3988_v22 = vrot.slane %v3987_v32, 4  ;;  %v3483_v13 = vrot.slane %v3482_v39, 4  ;;  %v9702_v31 = vpop.f32.mrb[69].mxu1 }
 0x27d   : > { %v3619_v9 = vcombine.low %v3607_v53, %v3616_v44  ;;  %v3996_v47 = vadd.f32 %v3995_v4, %v3994_v54  ;;  %v3723_v3 = vmul.f32 %v9643_v19, %v8959_v29  ;;  %v4237_v2 = vmul.f32 %v4224_v49, %v10342_v48  ;;  %v9700_v21 = vpop.f32.mrb[74].mxu0 }
 0x27e   : > { %v3112_v0 = vrot.slane %v3105_v28, %v8800_v63  ;;  %v3476_v38 = vrot.slane %v3475_v36, 2  ;;  %v3989_v35 = vadd.f32 %v3988_v22, %v3987_v32  ;;  %v3484_v11 = vadd.f32 %v3483_v13, %v3482_v39  ;;  %v9705_v61 = vpop.f32.mrb[75].mxu0 }
 0x27f   : > { %v3626_v30 = vrot.slane %v3619_v9, %v8800_v63  ;;  %v3997_v53 = vrot.slane %v3996_v47, 4  ;;  %v3727_v54 = vadd.f32 %v3723_v3, %v3721_v23  ;;  %v4241_v1 = vadd.f32 %v4237_v2, %v4235_v59  ;;  %v9709_v16 = vpop.f32.mrb[70].mxu1 }
 0x280   : > { %v3119_v29 = vrot.slane %v3112_v0, %v8800_v63  ;;  %v3477_v19 = vadd.f32 %v3476_v38, %v3475_v36  ;;  %v3990_v49 = vrot.slane %v3989_v35, 2  ;;  %v3485_v37 = vrot.slane %v3484_v11, 2  ;;  %v9718_v23 = vpop.f32.mrb[71].mxu1 }
 0x281   : > { %v3633_v25 = vrot.slane %v3626_v30, %v8800_v63  ;;  %v3998_v6 = vadd.f32 %v3997_v53, %v3996_v47  ;;  %v3724_v12 = vmul.f32 %v9646_v26, %v8984_v42  ;;  %v4238_v57 = vmul.f32 %v9649_v34, %v9122_v20  ;;  %v9716_v5 = vpop.f32.mrb[76].mxu0 }
 0x282   : > { %3122 = vst.msk [vmem:[#allocation2 + $0x17] ss:$8 sm:$0x3] %vm9430_vm13, %v3119_v29  ;;  %v3478_v59 = vrot.slane %v3477_v19, 1  ;;  %v3991_v52 = vadd.f32 %v3990_v49, %v3989_v35  ;;  %v3486_v10 = vadd.f32 %v3485_v37, %v3484_v11  ;;  %v3725_v32 = vmul.f32 %v9658_v46, %v9027_v15  ;;  %v9724_v39 = vpop.f32.mrb[77].mxu0 }
 0x283   : > { %3636 = vst.msk [vmem:[#allocation2 + $0x22] ss:$8 sm:$0x3] %vm9430_vm13, %v3633_v25  ;;  %v3999_v42 = vrot.slane %v3998_v6, 2  ;;  %v3736_v26 = vadd.f32 %v3724_v12, %v3722_v33  ;;  %v4250_v34 = vadd.f32 %v4238_v57, %v4236_v60  ;;  %v4239_v44 = vmul.f32 %v9663_v41, %v9124_v51  ;;  %v9731_v13 = vpop.f32.mrb[72].mxu1 }
 0x284   : > { %v3479_v4 = vadd.f32 %v3478_v59, %v3477_v19  ;;  %v3992_v28 = vrot.slane %v3991_v52, 1  ;;  %v3487_v36 = vrot.slane %v3486_v10, 1  ;;  %v3728_v22 = vsel %vm649_vm6, %v3725_v32, 0.0  ;;  %v9738_v33 = vpop.f32.mrb[73].mxu1 }
 0x285   : > { %v4000_v9 = vadd.f32 %v3999_v42, %v3998_v6  ;;  %v3729_v15 = vadd.f32 %v3728_v22, %v3727_v54  ;;  %v4242_v46 = vsel %vm649_vm6, %v4239_v44, 0.0  ;;  %v3726_v47 = vmul.f32 %v9665_v14, %v9029_v24  ;;  %v9736_v3 = vpop.f32.mrb[78].mxu0 }
 0x286   : > { %v3993_v60 = vadd.f32 %v3992_v28, %v3991_v52  ;;  %v3488_v41 = vadd.f32 %v3487_v36, %v3486_v10  ;;  %v4243_v2 = vadd.f32 %v4242_v46, %v4241_v1  ;;  %v4240_v0 = vmul.f32 %v9667_v27, %v9144_v55  ;;  %v9742_v38 = vpop.f32.mrb[79].mxu0 }
 0x287   : > { %v4001_v35 = vrot.slane %v4000_v9, 1  ;;  %v3730_v11 = vrot.slane %v3729_v15, 4  ;;  %v3737_v30 = vsel %vm649_vm6, %v3726_v47, 0.0  ;;  %v4107_v53 = vmul.f32 %v9679_v43, %v9040_v7  ;;  %v9748_v19 = vpop.f32.mrb[74].mxu1 }
 0x288   : > { %v3491_v24 = vcombine.low %v3479_v4, %v3488_v41  ;;  %v4244_v14 = vrot.slane %v4243_v2, 4  ;;  %v3738_v54 = vadd.f32 %v3737_v30, %v3736_v26  ;;  %v4251_v29 = vsel %vm649_vm6, %v4240_v0, 0.0  ;;  %v9754_v6 = vpop.f32.mrb[75].mxu1 }
 0x289   : > { %v4002_v1 = vadd.f32 %v4001_v35, %v4000_v9  ;;  %v3731_v49 = vadd.f32 %v3730_v11, %v3729_v15  ;;  %v4252_v37 = vadd.f32 %v4251_v29, %v4250_v34  ;;  %v4621_v27 = vmul.f32 %v9684_v40, %v9146_v58  ;;  %v9752_v25 = vpop.f32.mrb[80].mxu0  ;;  %v6338_v41 = vld [vmem:[#allocation2 + $0x18] sm:$0xff] }
 0x28a   : > { %v3498_v12 = vrot.slane %v3491_v24, %v8800_v63  ;;  %v4245_v43 = vadd.f32 %v4244_v14, %v4243_v2  ;;  %v3739_v57 = vrot.slane %v3738_v54, 4  ;;  %v4108_v59 = vmul.f32 %v9686_v62, %v10341_v56  ;;  %v9759_v52 = vpop.f32.mrb[81].mxu0 }
 0x28b   : > { %v4005_v10 = vcombine.low %v3993_v60, %v4002_v1  ;;  %v3732_v32 = vrot.slane %v3731_v49, 2  ;;  %v4253_v42 = vrot.slane %v4252_v37, 4  ;;  %v4622_v26 = vmul.f32 %v9688_v17, %v9172_v45  ;;  %v9766_v28 = vpop.f32.mrb[76].mxu1  ;;  %v6336_v1 = vld [vmem:[#allocation2 + $0x8] sm:$0xff] }
 0x28c   : > { %v3505_v40 = vrot.slane %v3498_v12, %v8800_v63  ;;  %v4246_v34 = vrot.slane %v4245_v43, 2  ;;  %v3740_v44 = vadd.f32 %v3739_v57, %v3738_v54  ;;  %v4109_v4 = vmul.f32 %v9695_v18, %v10342_v48  ;;  %v9773_v46 = vpop.f32.mrb[77].mxu1  ;;  %v10343_v54 = vld [vmem:[#allocation31_spill] sm:$0xff] }
 0x28d   : > { %v4012_v36 = vrot.slane %v4005_v10, %v8800_v63  ;;  %v3733_v62 = vadd.f32 %v3732_v32, %v3731_v49  ;;  %v4254_v22 = vadd.f32 %v4253_v42, %v4252_v37  ;;  %v4623_v9 = vmul.f32 %v9700_v21, %v9186_v8  ;;  %v9771_v15 = vpop.f32.mrb[82].mxu0  ;;  %v6337_v49 = vld [vmem:[#allocation2 + $0x10] sm:$0xff]  ;;  %v10344_v32 = vld [vmem:[#allocation17_spill] sm:$0xff] }
 0x28e   : > { %3508 = vst.msk [vmem:[#allocation2 + $0x21] ss:$8 sm:$0x3] %vm9430_vm13, %v3505_v40  ;;  %v4247_v17 = vadd.f32 %v4246_v34, %v4245_v43  ;;  %v3741_v47 = vrot.slane %v3740_v44, 2  ;;  %v4113_v60 = vadd.f32 %v4109_v4, %v4107_v53  ;;  %v4110_v18 = vmul.f32 %v9702_v31, %v9122_v20  ;;  %v9779_v2 = vpop.f32.mrb[83].mxu0  ;;  %v6335_v40 = vld [vmem:[#allocation2] sm:$0xff] }
 0x28f   : > { %v4019_v0 = vrot.slane %v4012_v36, %v8800_v63  ;;  %v3734_v35 = vrot.slane %v3733_v62, 1  ;;  %v4255_v21 = vrot.slane %v4254_v22, 2  ;;  %v4627_v11 = vadd.f32 %v4623_v9, %v4621_v27  ;;  %v9784_v53 = vpop.f32.mrb[78].mxu1 }
 0x290   : > { %v4248_v30 = vrot.slane %v4247_v17, 1  ;;  %v3742_v24 = vadd.f32 %v3741_v47, %v3740_v44  ;;  %v4122_v14 = vadd.f32 %v4110_v18, %v4108_v59  ;;  %v4624_v29 = vmul.f32 %v9705_v61, %v10343_v54  ;;  %v9792_v57 = vpop.f32.mrb[79].mxu1 }
 0x291   : > { %4022 = vst.msk [vmem:[#allocation2 + $0x24] ss:$8 sm:$0x3] %vm9430_vm13, %v4019_v0  ;;  %v3735_v31 = vadd.f32 %v3734_v35, %v3733_v62  ;;  %v4256_v37 = vadd.f32 %v4255_v21, %v4254_v22  ;;  %v6902_v12 = vpack.c.bf16 %v6338_v41, %v6336_v1  ;;  %v4111_v43 = vmul.f32 %v9709_v16, %v9124_v51  ;;  %v9790_v27 = vpop.f32.mrb[84].mxu0 }
 0x292   : > { %v4249_v59 = vadd.f32 %v4248_v30, %v4247_v17  ;;  %v3743_v10 = vrot.slane %v3742_v24, 1  ;;  %v4636_v61 = vadd.f32 %v4624_v29, %v4622_v26  ;;  %v4625_v42 = vmul.f32 %v9716_v5, %v10344_v32  ;;  %v9796_v34 = vpop.f32.mrb[85].mxu0  ;;  %v10345_v17 = vld [vmem:[#allocation9_spill] sm:$0xff] }
 0x293   : > { %v4257_v44 = vrot.slane %v4256_v37, 1  ;;  %6903 = vmatprep.subr.bf16.mxu0 %v6902_v12  ;;  %v4114_v4 = vsel %vm649_vm6, %v4111_v43, 0.0  ;;  %v6904_v36 = vpack.c.bf16 %v6337_v49, %v6335_v40  ;;  %v4112_v16 = vmul.f32 %v9718_v23, %v9144_v55  ;;  %v9804_v47 = vpop.f32.mrb[80].mxu1 }
 0x294   : > { %v3744_v62 = vadd.f32 %v3743_v10, %v3742_v24  ;;  %v4115_v22 = vadd.f32 %v4114_v4, %v4113_v60  ;;  %v4628_v9 = vsel %vm649_vm6, %v4625_v42, 0.0  ;;  %v4626_v26 = vmul.f32 %v9724_v39, %v10345_v17  ;;  %v9811_v23 = vpop.f32.mrb[81].mxu1 }
 0x295   : > { %v4258_v5 = vadd.f32 %v4257_v44, %v4256_v37  ;;  %v4629_v18 = vadd.f32 %v4628_v9, %v4627_v11  ;;  %6905 = vmatpush1.bf16.msra.mxu0 %v6904_v36  ;;  %v4123_v41 = vsel %vm649_vm6, %v4112_v16, 0.0  ;;  %v4363_v0 = vmul.f32 %v9731_v13, %v9040_v7  ;;  %v9809_v35 = vpop.f32.mrb[86].mxu0 }
 0x296   : > { %v3747_v60 = vcombine.low %v3735_v31, %v3744_v62  ;;  %v4116_v21 = vrot.slane %v4115_v22, 4  ;;  %v4124_v30 = vadd.f32 %v4123_v41, %v4122_v14  ;;  %v4637_v24 = vsel %vm649_vm6, %v4626_v26, 0.0  ;;  %v9814_v39 = vpop.f32.mrb[87].mxu0 }
 0x297   : > { %v4261_v29 = vcombine.low %v4249_v59, %v4258_v5  ;;  %v4630_v1 = vrot.slane %v4629_v18, 4  ;;  %v4638_v11 = vadd.f32 %v4637_v24, %v4636_v61  ;;  %v4877_v49 = vmul.f32 %v9736_v3, %v9146_v58  ;;  %v9821_v31 = vpop.f32.mrb[82].mxu1 }
 0x298   : > { %v3754_v37 = vrot.slane %v3747_v60, %v8800_v63  ;;  %v4117_v7 = vadd.f32 %v4116_v21, %v4115_v22  ;;  %v4125_v13 = vrot.slane %v4124_v30, 4  ;;  %v4364_v12 = vmul.f32 %v9738_v33, %v10341_v56  ;;  %v9828_v42 = vpop.f32.mrb[83].mxu1 }
 0x299   : > { %v4268_v14 = vrot.slane %v4261_v29, %v8800_v63  ;;  %v4631_v43 = vadd.f32 %v4630_v1, %v4629_v18  ;;  %v4639_v10 = vrot.slane %v4638_v11, 4  ;;  %v4878_v59 = vmul.f32 %v9742_v38, %v9172_v45  ;;  %v9826_v61 = vpop.f32.mrb[88].mxu0 }
 0x29a   : > { %v3761_v3 = vrot.slane %v3754_v37, %v8800_v63  ;;  %v4118_v40 = vrot.slane %v4117_v7, 2  ;;  %v4126_v44 = vadd.f32 %v4125_v13, %v4124_v30  ;;  %v4365_v56 = vmul.f32 %v9748_v19, %v10342_v48  ;;  %v9833_v33 = vpop.f32.mrb[89].mxu0 }
 0x29b   : > { %v4275_v4 = vrot.slane %v4268_v14, %v8800_v63  ;;  %v4632_v36 = vrot.slane %v4631_v43, 2  ;;  %v4640_v16 = vadd.f32 %v4639_v10, %v4638_v11  ;;  %v4879_v38 = vmul.f32 %v9752_v25, %v9186_v8  ;;  %v9842_v5 = vpop.f32.mrb[84].mxu1 }
 0x29c   : > { %3764 = vst.msk [vmem:[#allocation2 + $0x23] ss:$8 sm:$0x3] %vm9430_vm13, %v3761_v3  ;;  %v4119_v62 = vadd.f32 %v4118_v40, %v4117_v7  ;;  %v4127_v22 = vrot.slane %v4126_v44, 2  ;;  %v4369_v9 = vadd.f32 %v4365_v56, %v4363_v0  ;;  %v4366_v26 = vmul.f32 %v9754_v6, %v9122_v20  ;;  %v9850_v60 = vpop.f32.mrb[85].mxu1 }
 0x29d   : > { %4278 = vst.msk [vmem:[#allocation2 + $0x26] ss:$8 sm:$0x3] %vm9430_vm13, %v4275_v4  ;;  %v4633_v48 = vadd.f32 %v4632_v36, %v4631_v43  ;;  %v4641_v19 = vrot.slane %v4640_v16, 2  ;;  %v4883_v18 = vadd.f32 %v4879_v38, %v4877_v49  ;;  %v4880_v25 = vmul.f32 %v9759_v52, %v10343_v54  ;;  %v9848_v41 = vpop.f32.mrb[90].mxu0 }
 0x29e   : > { %v4120_v21 = vrot.slane %v4119_v62, 1  ;;  %v4128_v0 = vadd.f32 %v4127_v22, %v4126_v44  ;;  %v4378_v30 = vadd.f32 %v4366_v26, %v4364_v12  ;;  %v4367_v20 = vmul.f32 %v9766_v28, %v9124_v51  ;;  %v9854_v6 = vpop.f32.mrb[91].mxu0 }
 0x29f   : > { %v4634_v24 = vrot.slane %v4633_v48, 1  ;;  %v4642_v29 = vadd.f32 %v4641_v19, %v4640_v16  ;;  %v4892_v1 = vadd.f32 %v4880_v25, %v4878_v59  ;;  %v4881_v11 = vmul.f32 %v9771_v15, %v10344_v32 }
 0x2a0   : > { %v4121_v49 = vadd.f32 %v4120_v21, %v4119_v62  ;;  %v4129_v52 = vrot.slane %v4128_v0, 1  ;;  %v4370_v37 = vsel %vm649_vm6, %v4367_v20, 0.0  ;;  %v4368_v7 = vmul.f32 %v9773_v46, %v9144_v55  ;;  %v9861_v13 = vpop.f32.mrb[86].mxu1  ;;  %v10346_v62 = vld [vmem:[#allocation32_spill] sm:$0xff] }
 0x2a1   : > { %v4635_v12 = vadd.f32 %v4634_v24, %v4633_v48  ;;  %v4643_v14 = vrot.slane %v4642_v29, 1  ;;  %v4371_v51 = vadd.f32 %v4370_v37, %v4369_v9  ;;  %v4884_v28 = vsel %vm649_vm6, %v4881_v11, 0.0  ;;  %v9864_v43 = vpop.f32.mrb[92].mxu0  ;;  %v9866_v10 = vpop.f32.mrb[87].mxu1 }
 0x2a2   : > { %v4130_v59 = vadd.f32 %v4129_v52, %v4128_v0  ;;  %v4885_v15 = vadd.f32 %v4884_v28, %v4883_v18  ;;  %v4379_v3 = vsel %vm649_vm6, %v4368_v7, 0.0  ;;  %v4882_v40 = vmul.f32 %v9779_v2, %v10345_v17  ;;  %v9871_v44 = vpop.f32.mrb[93].mxu0  ;;  %v10348_v7 = vld [vmem:[#allocation13_spill] sm:$0xff] }
 0x2a3   : > { %v4644_v55 = vadd.f32 %v4643_v14, %v4642_v29  ;;  %v4372_v46 = vrot.slane %v4371_v51, 4  ;;  %v4380_v56 = vadd.f32 %v4379_v3, %v4378_v30  ;;  %v4749_v4 = vmul.f32 %v9784_v53, %v9146_v58  ;;  %v10347_v30 = vld [vmem:[#allocation6_spill] sm:$0xff] }
 0x2a4   : > { %v4133_v36 = vcombine.low %v4121_v49, %v4130_v59  ;;  %v4886_v16 = vrot.slane %v4885_v15, 4  ;;  %v4893_v38 = vsel %vm649_vm6, %v4882_v40, 0.0  ;;  %v5263_v22 = vmul.f32 %v9790_v27, %v10346_v62  ;;  %v9878_v9 = vpop.f32.mrb[88].mxu1 }
 0x2a5   : > { %v4647_v26 = vcombine.low %v4635_v12, %v4644_v55  ;;  %v4373_v48 = vadd.f32 %v4372_v46, %v4371_v51  ;;  %v4381_v2 = vrot.slane %v4380_v56, 4  ;;  %v4894_v19 = vadd.f32 %v4893_v38, %v4892_v1  ;;  %v9880_v18 = vpop.f32.mrb[94].mxu0  ;;  %v9882_v25 = vpop.f32.mrb[89].mxu1 }
 0x2a6   : > { %v4140_v21 = vrot.slane %v4133_v36, %v8800_v63  ;;  %v4887_v53 = vadd.f32 %v4886_v16, %v4885_v15  ;;  %v4750_v0 = vmul.f32 %v9792_v57, %v9172_v45  ;;  %v5264_v20 = vmul.f32 %v9796_v34, %v10347_v30  ;;  %v9889_v27 = vpop.f32.mrb[95].mxu0  ;;  %v10349_v16 = vld [vmem:[#allocation8_spill] sm:$0xff] }
 0x2a7   : > { %v4654_v24 = vrot.slane %v4647_v26, %v8800_v63  ;;  %v4374_v29 = vrot.slane %v4373_v48, 2  ;;  %v4382_v11 = vadd.f32 %v4381_v2, %v4380_v56  ;;  %v4895_v1 = vrot.slane %v4894_v19, 4 }
 0x2a8   : > { %v4147_v49 = vrot.slane %v4140_v21, %v8800_v63  ;;  %v4888_v52 = vrot.slane %v4887_v53, 2  ;;  %v4751_v37 = vmul.f32 %v9804_v47, %v9186_v8  ;;  %v5265_v12 = vmul.f32 %v9809_v35, %v10348_v7  ;;  %v9897_v57 = vpop.f32.mrb[90].mxu1 }
 0x2a9   : > { %v4661_v34 = vrot.slane %v4654_v24, %v8800_v63  ;;  %v4375_v14 = vadd.f32 %v4374_v29, %v4373_v48  ;;  %v4383_v51 = vrot.slane %v4382_v11, 2  ;;  %v4896_v28 = vadd.f32 %v4895_v1, %v4894_v19  ;;  %v9900_v59 = vpop.f32.mrb[96].mxu0  ;;  %v9902_v15 = vpop.f32.mrb[91].mxu1 }
 0x2aa   : > { %4150 = vst.msk [vmem:[#allocation2 + $0x25] ss:$8 sm:$0x3] %vm9430_vm13, %v4147_v49  ;;  %v4889_v3 = vadd.f32 %v4888_v52, %v4887_v53  ;;  %v4755_v40 = vadd.f32 %v4751_v37, %v4749_v4  ;;  %v5269_v47 = vadd.f32 %v5265_v12, %v5263_v22  ;;  %v4752_v35 = vmul.f32 %v9811_v23, %v10343_v54  ;;  %v9908_v55 = vpop.f32.mrb[97].mxu0  ;;  %v10350_v22 = vld [vmem:[#allocation11_spill] sm:$0xff] }
 0x2ab   : > { %4664 = vst.msk [vmem:[#allocation2 + $0x30] ss:$8 sm:$0x3] %vm9430_vm13, %v4661_v34  ;;  %v4376_v46 = vrot.slane %v4375_v14, 1  ;;  %v4384_v56 = vadd.f32 %v4383_v51, %v4382_v11  ;;  %v4897_v36 = vrot.slane %v4896_v28, 2  ;;  %v5266_v38 = vmul.f32 %v9814_v39, %v10349_v16  ;;  %v10351_v34 = vld [vmem:[#allocation7_spill] sm:$0xff] }
 0x2ac   : > { %v4890_v26 = vrot.slane %v4889_v3, 1  ;;  %v4764_v48 = vadd.f32 %v4752_v35, %v4750_v0  ;;  %v4753_v4 = vmul.f32 %v9821_v31, %v10344_v32  ;;  %v5267_v2 = vmul.f32 %v9826_v61, %v10350_v22  ;;  %v9918_v23 = vpop.f32.mrb[92].mxu1 }
 0x2ad   : > { %v4377_v19 = vadd.f32 %v4376_v46, %v4375_v14  ;;  %v4385_v21 = vrot.slane %v4384_v56, 1  ;;  %v4898_v53 = vadd.f32 %v4897_v36, %v4896_v28  ;;  %v5278_v24 = vadd.f32 %v5266_v38, %v5264_v20  ;;  %v9920_v29 = vpop.f32.mrb[98].mxu0  ;;  %v9922_v11 = vpop.f32.mrb[93].mxu1 }
 0x2ae   : > { %v4891_v1 = vadd.f32 %v4890_v26, %v4889_v3  ;;  %v4756_v39 = vsel %vm649_vm6, %v4753_v4, 0.0  ;;  %v5270_v0 = vsel %vm649_vm6, %v5267_v2, 0.0  ;;  %v4754_v31 = vmul.f32 %v9828_v42, %v10345_v17  ;;  %v9928_v49 = vpop.f32.mrb[99].mxu0 }
 0x2af   : > { %v4386_v61 = vadd.f32 %v4385_v21, %v4384_v56  ;;  %v4899_v52 = vrot.slane %v4898_v53, 1  ;;  %v4757_v37 = vadd.f32 %v4756_v39, %v4755_v40  ;;  %v5271_v12 = vadd.f32 %v5270_v0, %v5269_v47 }
 0x2b0   : > { %v4765_v20 = vsel %vm649_vm6, %v4754_v31, 0.0  ;;  %v5268_v14 = vmul.f32 %v9833_v33, %v10351_v34  ;;  %v5005_v51 = vmul.f32 %v9842_v5, %v9146_v58  ;;  %v5519_v28 = vmul.f32 %v9848_v41, %v10346_v62  ;;  %v9937_v3 = vpop.f32.mrb[94].mxu1 }
 0x2b1   : > { %v4389_v42 = vcombine.low %v4377_v19, %v4386_v61  ;;  %v4900_v35 = vadd.f32 %v4899_v52, %v4898_v53  ;;  %v4758_v46 = vrot.slane %v4757_v37, 4  ;;  %v5272_v56 = vrot.slane %v5271_v12, 4  ;;  %v9939_v36 = vpop.f32.mrb[100].mxu0  ;;  %v9941_v40 = vpop.f32.mrb[95].mxu1 }
 0x2b2   : > { %v4766_v47 = vadd.f32 %v4765_v20, %v4764_v48  ;;  %v5279_v38 = vsel %vm649_vm6, %v5268_v14, 0.0  ;;  %v5006_v33 = vmul.f32 %v9850_v60, %v9172_v45  ;;  %v5520_v58 = vmul.f32 %v9854_v6, %v10347_v30  ;;  %v9948_v5 = vpop.f32.mrb[101].mxu0 }
 0x2b3   : > { %v4396_v41 = vrot.slane %v4389_v42, %v8800_v63  ;;  %v4903_v26 = vcombine.low %v4891_v1, %v4900_v35  ;;  %v4759_v4 = vadd.f32 %v4758_v46, %v4757_v37  ;;  %v5273_v2 = vadd.f32 %v5272_v56, %v5271_v12 }
 0x2b4   : > { %v4767_v19 = vrot.slane %v4766_v47, 4  ;;  %v5280_v21 = vadd.f32 %v5279_v38, %v5278_v24  ;;  %v5007_v48 = vmul.f32 %v9861_v13, %v9186_v8  ;;  %v5521_v53 = vmul.f32 %v9864_v43, %v10348_v7  ;;  %v9955_v39 = vpop.f32.mrb[96].mxu1 }
 0x2b5   : > { %v4403_v45 = vrot.slane %v4396_v41, %v8800_v63  ;;  %v4910_v60 = vrot.slane %v4903_v26, %v8800_v63  ;;  %v4760_v6 = vrot.slane %v4759_v4, 2  ;;  %v5274_v0 = vrot.slane %v5273_v2, 2  ;;  %v9959_v31 = vpop.f32.mrb[102].mxu0  ;;  %v9961_v1 = vpop.f32.mrb[97].mxu1 }
 0x2b6   : > { %v4768_v61 = vadd.f32 %v4767_v19, %v4766_v47  ;;  %v5281_v24 = vrot.slane %v5280_v21, 4  ;;  %v5011_v52 = vadd.f32 %v5007_v48, %v5005_v51  ;;  %v5525_v37 = vadd.f32 %v5521_v53, %v5519_v28  ;;  %v9963_v8 = vpop.f32.mrb[103].mxu0 }
 0x2b7   : > { %4406 = vst.msk [vmem:[#allocation2 + $0x27] ss:$8 sm:$0x3] %vm9430_vm13, %v4403_v45  ;;  %v4917_v13 = vrot.slane %v4910_v60, %v8800_v63  ;;  %v4761_v43 = vadd.f32 %v4760_v6, %v4759_v4  ;;  %v5275_v12 = vadd.f32 %v5274_v0, %v5273_v2  ;;  %v5008_v20 = vmul.f32 %v9866_v10, %v10343_v54  ;;  %v10352_v0 = vld [vmem:[#allocation12_spill] sm:$0xff] }
 0x2b8   : > { %v4769_v14 = vrot.slane %v4768_v61, 2  ;;  %v5282_v42 = vadd.f32 %v5281_v24, %v5280_v21  ;;  %v5522_v35 = vmul.f32 %v9871_v44, %v10349_v16  ;;  %v5009_v51 = vmul.f32 %v9878_v9, %v10344_v32  ;;  %v9974_v28 = vpop.f32.mrb[98].mxu1 }
 0x2b9   : > { %4920 = vst.msk [vmem:[#allocation2 + $0x32] ss:$8 sm:$0x3] %vm9430_vm13, %v4917_v13  ;;  %v4762_v46 = vrot.slane %v4761_v43, 1  ;;  %v5276_v56 = vrot.slane %v5275_v12, 1  ;;  %v5020_v47 = vadd.f32 %v5008_v20, %v5006_v33  ;;  %v5523_v38 = vmul.f32 %v9880_v18, %v10350_v22  ;;  %v9980_v54 = vpop.f32.mrb[104].mxu0 }
 0x2ba   : > { %v9982_v10 = vpop.f32.mrb[99].mxu1  ;;  %v4770_v41 = vadd.f32 %v4769_v14, %v4768_v61  ;;  %v5283_v44 = vrot.slane %v5282_v42, 2  ;;  %v5534_v26 = vadd.f32 %v5522_v35, %v5520_v58  ;;  %v5012_v32 = vsel %vm649_vm6, %v5009_v51, 0.0  ;;  %v9985_v9 = vpop.f32.mrb[105].mxu0 }
 0x2bb   : > { %v4763_v4 = vadd.f32 %v4762_v46, %v4761_v43  ;;  %v5277_v2 = vadd.f32 %v5276_v56, %v5275_v12  ;;  %v5013_v19 = vadd.f32 %v5012_v32, %v5011_v52  ;;  %v5526_v21 = vsel %vm649_vm6, %v5523_v38, 0.0  ;;  %v10353_v38 = vld [vmem:[#allocation10_spill] sm:$0xff] }
 0x2bc   : > { %v4771_v33 = vrot.slane %v4770_v41, 1  ;;  %v5284_v48 = vadd.f32 %v5283_v44, %v5282_v42  ;;  %v5527_v53 = vadd.f32 %v5526_v21, %v5525_v37  ;;  %v5010_v18 = vmul.f32 %v9882_v25, %v10345_v17  ;;  %v9990_v45 = vpop.f32.mrb[100].mxu1 }
 0x2bd   : > { %v5014_v60 = vrot.slane %v5013_v19, 4  ;;  %v5524_v58 = vmul.f32 %v9889_v27, %v10351_v34  ;;  %v5391_v6 = vmul.f32 %v9897_v57, %v10346_v62  ;;  %v5905_v61 = vmul.f32 %v9900_v59, %v10352_v0  ;;  %v9998_v24 = vpop.f32.mrb[106].mxu0  ;;  %v10000_v52 = vpop.f32.mrb[101].mxu1 }
 0x2be   : > { %v4772_v37 = vadd.f32 %v4771_v33, %v4770_v41  ;;  %v5285_v13 = vrot.slane %v5284_v48, 1  ;;  %v5528_v43 = vrot.slane %v5527_v53, 4  ;;  %v5021_v17 = vsel %vm649_vm6, %v5010_v18, 0.0  ;;  %v10003_v25 = vpop.f32.mrb[107].mxu0 }
 0x2bf   : > { %v5015_v12 = vadd.f32 %v5014_v60, %v5013_v19  ;;  %v5022_v20 = vadd.f32 %v5021_v17, %v5020_v47  ;;  %v5535_v27 = vsel %vm649_vm6, %v5524_v58, 0.0  ;;  %v5392_v57 = vmul.f32 %v9902_v15, %v10347_v30 }
 0x2c0   : > { %v4775_v14 = vcombine.low %v4763_v4, %v4772_v37  ;;  %v5286_v59 = vadd.f32 %v5285_v13, %v5284_v48  ;;  %v5529_v42 = vadd.f32 %v5528_v43, %v5527_v53  ;;  %v5536_v35 = vadd.f32 %v5535_v27, %v5534_v26  ;;  %v10008_v51 = vpop.f32.mrb[102].mxu1  ;;  %v10354_v48 = vld [vmem:[#allocation18_spill] sm:$0xff] }
 0x2c1   : > { %v5016_v46 = vrot.slane %v5015_v12, 2  ;;  %v5023_v56 = vrot.slane %v5022_v20, 4  ;;  %v5906_v41 = vmul.f32 %v9908_v55, %v10353_v38  ;;  %v5393_v44 = vmul.f32 %v9918_v23, %v10348_v7  ;;  %v10014_v47 = vpop.f32.mrb[103].mxu1 }
 0x2c2   : > { %v4782_v32 = vrot.slane %v4775_v14, %v8800_v63  ;;  %v5289_v19 = vcombine.low %v5277_v2, %v5286_v59  ;;  %v5530_v15 = vrot.slane %v5529_v42, 2  ;;  %v5537_v4 = vrot.slane %v5536_v35, 4 }
 0x2c3   : > { %v5017_v21 = vadd.f32 %v5016_v46, %v5015_v12  ;;  %v5024_v33 = vadd.f32 %v5023_v56, %v5022_v20  ;;  %v5397_v26 = vadd.f32 %v5393_v44, %v5391_v6  ;;  %v5907_v53 = vmul.f32 %v9920_v29, %v10354_v48  ;;  %v10355_v20 = vld [vmem:[#allocation33_spill] sm:$0xff]  ;;  %v10356_v56 = vld [vmem:[#allocation34_spill] sm:$0xff] }
 0x2c4   : > { %v4789_v18 = vrot.slane %v4782_v32, %v8800_v63  ;;  %v5296_v55 = vrot.slane %v5289_v19, %v8800_v63  ;;  %v5531_v60 = vadd.f32 %v5530_v15, %v5529_v42  ;;  %v5538_v58 = vadd.f32 %v5537_v4, %v5536_v35  ;;  %v10021_v23 = vpop.f32.mrb[104].mxu1  ;;  %v10357_v15 = vld [vmem:[#allocation35_spill] sm:$0xff] }
 0x2c5   : > { %v5018_v37 = vrot.slane %v5017_v21, 1  ;;  %v5025_v13 = vrot.slane %v5024_v33, 2  ;;  %v5911_v43 = vadd.f32 %v5907_v53, %v5905_v61  ;;  %v5394_v2 = vmul.f32 %v9922_v11, %v10349_v16  ;;  %v10025_v17 = vpop.f32.mrb[105].mxu1 }
 0x2c6   : > { %4792 = vst.msk [vmem:[#allocation2 + $0x31] ss:$8 sm:$0x3] %vm9430_vm13, %v4789_v18  ;;  %v5303_v29 = vrot.slane %v5296_v55, %v8800_v63  ;;  %v5532_v6 = vrot.slane %v5531_v60, 1  ;;  %v5539_v12 = vrot.slane %v5538_v58, 2  ;;  %v5908_v27 = vmul.f32 %v9928_v49, %v10355_v20 }
 0x2c7   : > { %v5019_v14 = vadd.f32 %v5018_v37, %v5017_v21  ;;  %v5026_v59 = vadd.f32 %v5025_v13, %v5024_v33  ;;  %v5406_v42 = vadd.f32 %v5394_v2, %v5392_v57  ;;  %v5395_v61 = vmul.f32 %v9937_v3, %v10350_v22 }
 0x2c8   : > { %5306 = vst.msk [vmem:[#allocation2 + $0x34] ss:$8 sm:$0x3] %vm9430_vm13, %v5303_v29  ;;  %v5533_v11 = vadd.f32 %v5532_v6, %v5531_v60  ;;  %v5540_v35 = vadd.f32 %v5539_v12, %v5538_v58  ;;  %v5920_v46 = vadd.f32 %v5908_v27, %v5906_v41  ;;  %v5909_v44 = vmul.f32 %v9939_v36, %v10356_v56  ;;  %v10038_v32 = vpop.f32.mrb[106].mxu1 }
 0x2c9   : > { %v5027_v19 = vrot.slane %v5026_v59, 1  ;;  %v5398_v49 = vsel %vm649_vm6, %v5395_v61, 0.0  ;;  %v5396_v57 = vmul.f32 %v9941_v40, %v10351_v34  ;;  %v5910_v3 = vmul.f32 %v9948_v5, %v10357_v15  ;;  %v10045_v4 = vpop.f32.mrb[107].mxu1 }
 0x2ca   : > { %v5541_v21 = vrot.slane %v5540_v35, 1  ;;  %v5399_v33 = vadd.f32 %v5398_v49, %v5397_v26  ;;  %v5912_v41 = vsel %vm649_vm6, %v5909_v44, 0.0  ;;  %v5647_v36 = vmul.f32 %v9955_v39, %v10346_v62 }
 0x2cb   : > { %v5028_v53 = vadd.f32 %v5027_v19, %v5026_v59  ;;  %v5913_v18 = vadd.f32 %v5912_v41, %v5911_v43  ;;  %v5407_v55 = vsel %vm649_vm6, %v5396_v57, 0.0  ;;  %v5921_v60 = vsel %vm649_vm6, %v5910_v3, 0.0 }
 0x2cc   : > { %v5542_v58 = vadd.f32 %v5541_v21, %v5540_v35  ;;  %v5400_v40 = vrot.slane %v5399_v33, 4  ;;  %v5408_v37 = vadd.f32 %v5407_v55, %v5406_v42  ;;  %v5922_v13 = vadd.f32 %v5921_v60, %v5920_v46  ;;  %v10052_v5 = vpop.f32.mrb[108].mxu1 }
 0x2cd   : > { %v5031_v2 = vcombine.low %v5019_v14, %v5028_v53  ;;  %v5914_v29 = vrot.slane %v5913_v18, 4  ;;  %v6161_v26 = vmul.f32 %v9959_v31, %v10352_v0  ;;  %v5648_v62 = vmul.f32 %v9961_v1, %v10347_v30  ;;  %v10058_v39 = vpop.f32.mrb[109].mxu1 }
 0x2ce   : > { %v5545_v43 = vcombine.low %v5533_v11, %v5542_v58  ;;  %v5401_v6 = vadd.f32 %v5400_v40, %v5399_v33  ;;  %v5409_v12 = vrot.slane %v5408_v37, 4  ;;  %v5923_v27 = vrot.slane %v5922_v13, 4 }
 0x2cf   : > { %v5038_v59 = vrot.slane %v5031_v2, %v8800_v63  ;;  %v5915_v42 = vadd.f32 %v5914_v29, %v5913_v18  ;;  %v6162_v61 = vmul.f32 %v9963_v8, %v10353_v38  ;;  %v5649_v14 = vmul.f32 %v9974_v28, %v10348_v7 }
 0x2d0   : > { %v5552_v31 = vrot.slane %v5545_v43, %v8800_v63  ;;  %v5402_v35 = vrot.slane %v5401_v6, 2  ;;  %v5410_v46 = vadd.f32 %v5409_v12, %v5408_v37  ;;  %v5924_v30 = vadd.f32 %v5923_v27, %v5922_v13  ;;  %v10066_v1 = vpop.f32.mrb[110].mxu1 }
 0x2d1   : > { %v5045_v11 = vrot.slane %v5038_v59, %v8800_v63  ;;  %v5916_v44 = vrot.slane %v5915_v42, 2  ;;  %v5653_v19 = vadd.f32 %v5649_v14, %v5647_v36  ;;  %v6163_v49 = vmul.f32 %v9980_v54, %v10354_v48  ;;  %v10071_v57 = vpop.f32.mrb[111].mxu1 }
 0x2d2   : > { %v5559_v8 = vrot.slane %v5552_v31, %v8800_v63  ;;  %v5403_v3 = vadd.f32 %v5402_v35, %v5401_v6  ;;  %v5411_v7 = vrot.slane %v5410_v46, 2  ;;  %v5925_v28 = vrot.slane %v5924_v30, 2 }
 0x2d3   : > { %5048 = vst.msk [vmem:[#allocation2 + $0x33] ss:$8 sm:$0x3] %vm9430_vm13, %v5045_v11  ;;  %v5917_v21 = vadd.f32 %v5916_v44, %v5915_v42  ;;  %v6167_v33 = vadd.f32 %v6163_v49, %v6161_v26  ;;  %v5650_v41 = vmul.f32 %v9982_v10, %v10349_v16  ;;  %v6164_v36 = vmul.f32 %v9985_v9, %v10355_v20 }
 0x2d4   : > { %5562 = vst.msk [vmem:[#allocation2 + $0x36] ss:$8 sm:$0x3] %vm9430_vm13, %v5559_v8  ;;  %v5404_v54 = vrot.slane %v5403_v3, 1  ;;  %v5412_v53 = vadd.f32 %v5411_v7, %v5410_v46  ;;  %v5926_v18 = vadd.f32 %v5925_v28, %v5924_v30  ;;  %v5651_v55 = vmul.f32 %v9990_v45, %v10350_v22  ;;  %v10084_v60 = vpop.f32.mrb[112].mxu1 }
 0x2d5   : > { %v5918_v58 = vrot.slane %v5917_v21, 1  ;;  %v5662_v40 = vadd.f32 %v5650_v41, %v5648_v62  ;;  %v6176_v37 = vadd.f32 %v6164_v36, %v6162_v61  ;;  %v6165_v16 = vmul.f32 %v9998_v24, %v10356_v56  ;;  %v10088_v10 = vpop.f32.mrb[113].mxu1 }
 0x2d6   : > { %v5405_v9 = vadd.f32 %v5404_v54, %v5403_v3  ;;  %v5413_v13 = vrot.slane %v5412_v53, 1  ;;  %v5927_v2 = vrot.slane %v5926_v18, 1  ;;  %v5654_v29 = vsel %vm649_vm6, %v5651_v55, 0.0 }
 0x2d7   : > { %v5919_v26 = vadd.f32 %v5918_v58, %v5917_v21  ;;  %v5655_v43 = vadd.f32 %v5654_v29, %v5653_v19  ;;  %v6168_v6 = vsel %vm649_vm6, %v6165_v16, 0.0  ;;  %v5652_v22 = vmul.f32 %v10000_v52, %v10351_v34 }
 0x2d8   : > { %v5414_v45 = vadd.f32 %v5413_v13, %v5412_v53  ;;  %v5928_v62 = vadd.f32 %v5927_v2, %v5926_v18  ;;  %v6169_v12 = vadd.f32 %v6168_v6, %v6167_v33  ;;  %v6166_v24 = vmul.f32 %v10003_v25, %v10357_v15 }
 0x2d9   : > { %v5656_v27 = vrot.slane %v5655_v43, 4  ;;  %v5663_v59 = vsel %vm649_vm6, %v5652_v22, 0.0  ;;  %v6033_v42 = vmul.f32 %v10008_v51, %v10352_v0  ;;  %v6034_v61 = vmul.f32 %v10014_v47, %v10353_v38 }
 0x2da   : > { %v5417_v14 = vcombine.low %v5405_v9, %v5414_v45  ;;  %v5931_v31 = vcombine.low %v5919_v26, %v5928_v62  ;;  %v6170_v35 = vrot.slane %v6169_v12, 4  ;;  %v5664_v46 = vadd.f32 %v5663_v59, %v5662_v40 }
 0x2db   : > { %v5657_v34 = vadd.f32 %v5656_v27, %v5655_v43  ;;  %v6177_v52 = vsel %vm649_vm6, %v6166_v24, 0.0  ;;  %v6035_v30 = vmul.f32 %v10021_v23, %v10354_v48  ;;  %v6036_v25 = vmul.f32 %v10025_v17, %v10355_v20 }
 0x2dc   : > { %v5424_v11 = vrot.slane %v5417_v14, %v8800_v63  ;;  %v5938_v51 = vrot.slane %v5931_v31, %v8800_v63  ;;  %v6171_v44 = vadd.f32 %v6170_v35, %v6169_v12  ;;  %v5665_v19 = vrot.slane %v5664_v46, 4 }
 0x2dd   : > { %v5658_v47 = vrot.slane %v5657_v34, 2  ;;  %v6178_v49 = vadd.f32 %v6177_v52, %v6176_v37  ;;  %v6039_v8 = vadd.f32 %v6035_v30, %v6033_v42  ;;  %v6048_v3 = vadd.f32 %v6036_v25, %v6034_v61 }
 0x2de   : > { %v5431_v7 = vrot.slane %v5424_v11, %v8800_v63  ;;  %v5945_v28 = vrot.slane %v5938_v51, %v8800_v63  ;;  %v6172_v21 = vrot.slane %v6171_v44, 2  ;;  %v5666_v33 = vadd.f32 %v5665_v19, %v5664_v46 }
 0x2df   : > { %v5659_v23 = vadd.f32 %v5658_v47, %v5657_v34  ;;  %v6179_v41 = vrot.slane %v6178_v49, 4  ;;  %v6037_v17 = vmul.f32 %v10038_v32, %v10356_v56  ;;  %v6038_v36 = vmul.f32 %v10045_v4, %v10357_v15 }
 0x2e0   : > { %5434 = vst.msk [vmem:[#allocation2 + $0x35] ss:$8 sm:$0x3] %vm9430_vm13, %v5431_v7  ;;  %5948 = vst.msk [vmem:[#allocation2 + $0x40] ss:$8 sm:$0x3] %vm9430_vm13, %v5945_v28  ;;  %v6173_v54 = vadd.f32 %v6172_v21, %v6171_v44  ;;  %v6289_v18 = vmul.f32 %v10052_v5, %v10352_v0  ;;  %v6290_v9 = vmul.f32 %v10058_v39, %v10353_v38 }
 0x2e1   : > { %v5667_v53 = vrot.slane %v5666_v33, 2  ;;  %v5660_v55 = vrot.slane %v5659_v23, 1  ;;  %v6180_v58 = vadd.f32 %v6179_v41, %v6178_v49  ;;  %v6040_v40 = vsel %vm649_vm6, %v6037_v17, 0.0  ;;  %v6340_v17 = vld [vmem:[#allocation2 + $0x28] sm:$0xff] }
 0x2e2   : > { %v6049_v32 = vsel %vm649_vm6, %v6038_v36, 0.0  ;;  %v6041_v16 = vadd.f32 %v6040_v40, %v6039_v8  ;;  %v6174_v13 = vrot.slane %v6173_v54, 1  ;;  %v6291_v29 = vmul.f32 %v10066_v1, %v10354_v48 }
 0x2e3   : > { %v5668_v37 = vadd.f32 %v5667_v53, %v5666_v33  ;;  %v6050_v4 = vadd.f32 %v6049_v32, %v6048_v3  ;;  %v6181_v2 = vrot.slane %v6180_v58, 2  ;;  %v6292_v0 = vmul.f32 %v10071_v57, %v10355_v20 }
 0x2e4   : > { %v5661_v5 = vadd.f32 %v5660_v55, %v5659_v23  ;;  %v6042_v43 = vrot.slane %v6041_v16, 4  ;;  %v6295_v45 = vadd.f32 %v6291_v29, %v6289_v18  ;;  %v6293_v12 = vmul.f32 %v10084_v60, %v10356_v56  ;;  %v6339_v18 = vld [vmem:[#allocation2 + $0x20] sm:$0xff] }
 0x2e5   : > { %v5669_v26 = vrot.slane %v5668_v37, 1  ;;  %v6051_v6 = vrot.slane %v6050_v4, 4  ;;  %v6182_v22 = vadd.f32 %v6181_v2, %v6180_v58  ;;  %v6304_v62 = vadd.f32 %v6292_v0, %v6290_v9  ;;  %v6334_v2 = vld [vmem:[%s10212_s4] sm:$0xff] }
 0x2e6   : > { %v6043_v38 = vadd.f32 %v6042_v43, %v6041_v16  ;;  %v6294_v27 = vmul.f32 %v10088_v10, %v10357_v15  ;;  %v6175_v48 = vadd.f32 %v6174_v13, %v6173_v54  ;;  %v6296_v20 = vsel %vm649_vm6, %v6293_v12, 0.0 }
 0x2e7   : > { %v5670_v24 = vadd.f32 %v5669_v26, %v5668_v37  ;;  %v6052_v39 = vadd.f32 %v6051_v6, %v6050_v4  ;;  %v6183_v1 = vrot.slane %v6182_v22, 1  ;;  %v6297_v61 = vadd.f32 %v6296_v20, %v6295_v45 }
 0x2e8   : > { %v6044_v59 = vrot.slane %v6043_v38, 2  ;;  %v6305_v31 = vsel %vm649_vm6, %v6294_v27, 0.0  ;;  %vm10358_vm6 = vcmask 1043456  }
 0x2e9   : > { %v5673_v57 = vcombine.low %v5661_v5, %v5670_v24  ;;  %v6053_v42 = vrot.slane %v6052_v39, 2  ;;  %v6184_v14 = vadd.f32 %v6183_v1, %v6182_v22  ;;  %v6298_v46 = vrot.slane %v6297_v61, 4  ;;  %vm10359_vm12 = vmmov %vm10358_vm6 }
 0x2ea   : > { %v6045_v56 = vadd.f32 %v6044_v59, %v6043_v38  ;;  %v6306_v52 = vadd.f32 %v6305_v31, %v6304_v62 }
 0x2eb   : > { %v5680_v35 = vrot.slane %v5673_v57, %v8800_v63  ;;  %v6054_v60 = vadd.f32 %v6053_v42, %v6052_v39  ;;  %v6187_v34 = vcombine.low %v6175_v48, %v6184_v14  ;;  %v6299_v25 = vadd.f32 %v6298_v46, %v6297_v61 }
 0x2ec   : > { %v6046_v10 = vrot.slane %v6045_v56, 1  ;;  %v6307_v51 = vrot.slane %v6306_v52, 4 }
 0x2ed   : > { %v5687_v15 = vrot.slane %v5680_v35, %v8800_v63  ;;  %v6055_v30 = vrot.slane %v6054_v60, 1  ;;  %v6194_v11 = vrot.slane %v6187_v34, %v8800_v63  ;;  %v6300_v47 = vrot.slane %v6299_v25, 2 }
 0x2ee   : > { %v6047_v44 = vadd.f32 %v6046_v10, %v6045_v56  ;;  %v6308_v8 = vadd.f32 %v6307_v51, %v6306_v52 }
 0x2ef   : > { %5690 = vst.msk [vmem:[#allocation2 + $0x37] ss:$8 sm:$0x3] %vm9430_vm13, %v5687_v15  ;;  %v6056_v19 = vadd.f32 %v6055_v30, %v6054_v60  ;;  %v6201_v49 = vrot.slane %v6194_v11, %v8800_v63  ;;  %v6301_v7 = vadd.f32 %v6300_v47, %v6299_v25 }
 0x2f0   : > { %v6309_v28 = vrot.slane %v6308_v8, 2 }
 0x2f1   : > { %v6059_v3 = vcombine.low %v6047_v44, %v6056_v19  ;;  %6204 = vst.msk [vmem:[#allocation2 + $0x42] ss:$8 sm:$0x3] %vm9430_vm13, %v6201_v49  ;;  %v6302_v33 = vrot.slane %v6301_v7, 1 }
 0x2f2   : > { %v6310_v23 = vadd.f32 %v6309_v28, %v6308_v8 }
 0x2f3   : > { %v6066_v21 = vrot.slane %v6059_v3, %v8800_v63  ;;  %v6303_v36 = vadd.f32 %v6302_v33, %v6301_v7 }
 0x2f4   : > { %v6311_v54 = vrot.slane %v6310_v23, 1 }
 0x2f5   : > { %v6073_v41 = vrot.slane %v6066_v21, %v8800_v63 }
 0x2f6   : > { %v6342_v53 = vld [vmem:[#allocation2 + $0x38] sm:$0xff]  ;;  %v6341_v55 = vld [vmem:[#allocation2 + $0x30] sm:$0xff]  ;;  %v6312_v32 = vadd.f32 %v6311_v54, %v6310_v23 }
 0x2f7   : > { %6076 = vst.msk [vmem:[#allocation2 + $0x41] ss:$8 sm:$0x3] %vm9430_vm13, %v6073_v41  ;;  %v6906_v58 = vpack.c.bf16 %v6342_v53, %v6340_v17  ;;  %v6908_v40 = vpack.c.bf16 %v6341_v55, %v6339_v18 }
 0x2f8   : > { %v6315_v37 = vcombine.low %v6303_v36, %v6312_v32 }
 0x2f9   : > { %6907 = vmatprep.subr.bf16.mxu0 %v6906_v58 }
 0x2fa   : > { %6909 = vmatpush1.bf16.msra.mxu0 %v6908_v40  ;;  %v6322_v16 = vrot.slane %v6315_v37, %v8800_v63 }
 0x2fc   : > { %v6329_v4 = vrot.slane %v6322_v16, %v8800_v63 }
 0x2fe   : > { %6332 = vst.msk [vmem:[#allocation2 + $0x43] ss:$8 sm:$0x3] %vm9430_vm13, %v6329_v4 }
 0x305   : > { %v6344_v9 = vld [vmem:[#allocation2 + $0x48] sm:$0xf]  ;;  %v6343_v13 = vld [vmem:[#allocation2 + $0x40] sm:$0xf] }
 0x306   : > { %6741 = vmatprep.subr.msk.mxu0 %vm10358_vm6, %v6344_v9 }
 0x307   : > { %6742 = vmatpush1.msk.msra.mxu0 %vm10359_vm12, %v6343_v13 }
 0x308   : > { %6743 = vmatmul.mubr.msk.f32.vlgmr.msra.gmra.mrb[108].mxu0 %vm10360_vm14, %v6334_v2 }
 0x3db   : > { %v6420_v63 = vpop.f32.mrb[108].mxu0 }
 0x3dc   : > { %6425 = vst [vmem:[%s273_s7] sm:$0xff] %v6420_v63  ;;  %v6422_v50 = vpop.f32.mrb[109].mxu0 }
 0x3dd   : > { %6426 = vst [vmem:[%s273_s7 + $0x8] sm:$0xff] %v6422_v50 }
 0x3de   : > { %7018 = shalt.err (!%p7015_p5)
}
 0x3df   : > { %s7019_s24 = scalar_lea.hbm %s10163_s13, 256  ;;  %s7023_s29 = scalar_lea.hbm %s10213_s5, 512 }
 0x3e0   : > { %p7020_p6 = scmp.ne.s32.totalorder %s10163_s13, %s7019_s24  ;;  %p7024_p10 = scmp.lt.u32.totalorder %s10163_s13, %s10213_s5 }
 0x3e1   : > { %p7025_p11 = scmp.lt.u32.totalorder %s7023_s29, %s7019_s24  ;;  %p7027_p13 = scmp.lt.u32.totalorder %s7019_s24, %s10163_s13 }
 0x3e2   : > { %p7021_p7 = pnand %p7020_p6, %p7158_p4 }
 0x3e3   : > { %p7026_p12 = por %p7025_p11, %p7024_p10 }
 0x3e4   : > { %p7022_p9 = pneg %p7021_p7 }
 0x3e5   : > { %p7028_p0 = por %p7027_p13, %p7026_p12 }
 0x3e7   : > { %p7029_p1 = pnand %p7028_p0, %p7022_p9 }
 0x3e9   : > { %7032 = shalt.err (!%p7029_p1)
}
 0x3ea   : > { %6936 = dma.vmem_to_hbm [thread:$0]  (%p7158_p4), %s10158_s9, 256, %s10163_s13, %s6428_s14  }
 0x3eb PF: > { %p6942_p2 = scmp.ge.s32.totalorder %s7083_s23, 2  ;;  %s6456_s10 = sand.u32 1, %s7063_s18  }
 0x3ec   : > { %s6457_s11 = scalar_lea.sflag [#allocation4], %s6456_s10 }
 0x3ed   : > { %p6939_p3 = pnand %p6942_p2, %p7165_p8 }
 0x3ef   : > { %7058 = dma.done.wait (!%p6939_p3), %s6457_s11, 256  }
 0x3f0   : > { %7060 = vsyncadd (!%p6939_p3), %s6457_s11, 4294967040  ;;  %s18_s23 = sadd.s32 1, %s7083_s23   ;;  %s10361_s18 = smov %s7067_s19 }
 0x3f1   : > { %p15_p5 = scmp.ge.s32.totalorder %s18_s23, 4   ;;  %s10362_s19 = smov %s7071_s20 }
 0x3f2   : > { %s10363_s20 = smov %s7171_s6  ;;  %s10364_s21 = smov %s7079_s22 }
 0x3f3   : > { %s10365_s22 = smov %s10367_s26  ;;  %17 = sbr.rel (!%p15_p5) target bundleno = 4 (0x4), region = 116 }
 0x3fa   :  { %6462 = vsyncpa [#allocation4], 1 }
 0x3fb   :  { %6464 = vsyncpa [#allocation4 + $0x1], 1 }

</bundles_post_ra>
